<compile_context>
chip_gen: v6e
topology: v6e:2x2x1
jax: 0.10.0
libtpu: 0.0.40
codegen_flags: <defaults>
</compile_context>

<pallas_src>
import functools

import jax
import jax.numpy as jnp
from jax.experimental import pallas as pl
from jax.experimental.pallas import tpu as pltpu

# ---------------- small mT5-like config ----------------
B = 2          # batch
S_IN = 8       # encoder sequence length
S_OUT = 8      # decoder sequence length (labels)
D_MODEL = 32
N_HEADS = 4
D_KV = 8
INNER = N_HEADS * D_KV        # 32
D_FF = 64
VOCAB = 128
N_LAYERS = 2
REL_BUCKETS = 32
REL_MAX_DIST = 128
NEG_INF = -1e9
OUT_LANES = 128               # lane-dense loss output row

assert S_IN == S_OUT, "id packing assumes equal encoder/decoder lengths"
TOK = B * S_IN                # tokens per stream after batch fold (16)
HT = N_HEADS * TOK            # rows in head-stacked attention layout (64)


# ---------------- static packing layouts (shared by host + kernel) ---------
def _build_layout(entries, align):
  """entries: [(name, size)] -> ({name: (start, size)}, padded_total)."""
  off, cur = {}, 0
  for name, n in entries:
    off[name] = (cur, n)
    cur += -(-n // align) * align
  return off, cur


def _w1_entries():
  # Everything whose LAST dim is D_MODEL (packed along rows).
  e = [("shared", VOCAB), ("enc_final_ln", 1), ("dec_final_ln", 1)]
  for l in range(N_LAYERS):
    e += [(f"enc_sa_ln_{l}", 1), (f"enc_ff_ln_{l}", 1),
          (f"dec_sa_ln_{l}", 1), (f"dec_ca_ln_{l}", 1), (f"dec_ff_ln_{l}", 1)]
  for l in range(N_LAYERS):
    e += [(f"enc_sa_wo_{l}", INNER), (f"enc_ff_wo_{l}", D_FF),
          (f"dec_sa_wo_{l}", INNER), (f"dec_ca_wo_{l}", INNER),
          (f"dec_ff_wo_{l}", D_FF)]
  return e


def _w2_entries():
  # Everything whose FIRST dim is D_MODEL (packed along lanes).
  e = [("lm_head", VOCAB)]
  for l in range(N_LAYERS):
    e += [(f"enc_sa_wqkv_{l}", 3 * INNER), (f"enc_ff_wi_{l}", 2 * D_FF),
          (f"dec_sa_wqkv_{l}", 3 * INNER), (f"dec_ca_wq_{l}", INNER),
          (f"dec_ca_wkv_{l}", 2 * INNER), (f"dec_ff_wi_{l}", 2 * D_FF)]
  return e


W1_OFF, W1_ROWS = _build_layout(_w1_entries(), align=8)     # (W1_ROWS, D_MODEL)
W2_OFF, W2_COLS = _build_layout(_w2_entries(), align=128)   # (D_MODEL, W2_COLS)


# ---------------- fused Pallas kernel (single program, whole batch) --------
def _mt5_fused_kernel(ids_ref, bias_ref, w1_ref, w2_ref, out_ref):
  """Whole mT5 forward (both batch elements) + lm_head + mean CE loss."""
  f32, bf16 = jnp.float32, jnp.bfloat16

  def w1(name):                                  # (n, D_MODEL) static slice
    s, n = W1_OFF[name]
    return w1_ref[s:s + n, :]

  def w2(name):                                  # (D_MODEL, n) static slice
    s, n = W2_OFF[name]
    return w2_ref[:, s:s + n]

  def mdot(a, b):
    # MXU matmul: bf16 inputs, f32 accumulation.  VPU math stays f32.
    return jnp.dot(a.astype(bf16), b.astype(bf16), preferred_element_type=f32)

  def rmsnorm(x, g):
    # T5 LayerNorm = RMS norm, no mean subtraction, no bias.
    var = jnp.mean(x * x, axis=-1, keepdims=True)
    return x * jax.lax.rsqrt(var + 1e-6) * g

  # One hoisted iota reused by both embeds and the CE one-hot.
  vocab_iota = jax.lax.broadcasted_iota(jnp.int32, (TOK, VOCAB), 1)
  shared_bf = w1("shared").astype(bf16)

  def embed(ids):                                # ids: (TOK, 1) int32
    onehot = (vocab_iota == ids).astype(bf16)    # bf16 one-hot, no f32 cast
    return jnp.dot(onehot, shared_bf, preferred_element_type=f32)

  def head_stack(x):                             # (TOK, INNER) -> (HT, D_KV)
    return jnp.concatenate(
        [x[:, h * D_KV:(h + 1) * D_KV] for h in range(N_HEADS)], axis=0)

  def head_merge(x):                             # (HT, D_KV) -> (TOK, INNER)
    return jnp.concatenate(
        [x[h * TOK:(h + 1) * TOK, :] for h in range(N_HEADS)], axis=1)

  def attention(q, k, v, wo, bias):
    # q/k/v: (TOK, INNER).  bias: (HT, HT) with (batch x head) block-diagonal
    # structure (rel-pos bias / causal inside blocks, NEG_INF elsewhere), so
    # QK^T, the softmax and P.V each run ONCE for all heads & both batch
    # elements.  T5 attention: NO 1/sqrt(d) scaling.
    qs, ks, vs = head_stack(q), head_stack(k), head_stack(v)
    scores = jax.lax.dot_general(
        qs.astype(bf16), ks.astype(bf16), (((1,), (1,)), ((), ())),
        preferred_element_type=f32) + bias                   # (HT, HT)
    m = jnp.max(scores, axis=-1, keepdims=True)
    e = jnp.exp(scores - m)
    probs = e * pl.reciprocal(jnp.sum(e, axis=-1, keepdims=True), approx=True)
    ctx = head_merge(mdot(probs, vs))                        # (TOK, INNER)
    return mdot(ctx, wo)                                     # (TOK, D_MODEL)

  def self_attn(x, ln_g, wqkv, wo, bias):
    ln = rmsnorm(x, ln_g)
    qkv = mdot(ln, wqkv)                                     # (TOK, 3*INNER)
    return x + attention(qkv[:, :INNER], qkv[:, INNER:2 * INNER],
                         qkv[:, 2 * INNER:], wo, bias)

  def cross_attn(y, ln_g, wq, wkv, wo, enc_out, bias):
    ln = rmsnorm(y, ln_g)
    q = mdot(ln, wq)
    kv = mdot(enc_out, wkv)                                  # (TOK, 2*INNER)
    return y + attention(q, kv[:, :INNER], kv[:, INNER:], wo, bias)

  def ffn(x, ln_g, wi, wo):
    # mT5 gated-gelu: gelu_new(wi_0(x)) * wi_1(x); wi0|wi1 pre-concatenated.
    ln = rmsnorm(x, ln_g)
    hi = mdot(ln, wi)                                        # (TOK, 2*D_FF)
    h = jax.nn.gelu(hi[:, :D_FF], approximate=True) * hi[:, D_FF:]
    return x + mdot(h, wo)

  enc_bias = bias_ref[0]      # (HT, HT)
  dec_bias = bias_ref[1]      # (HT, HT) incl. causal mask
  cross_bias = bias_ref[2]    # (HT, HT) batch/head mask only

  # ---------------- encoder ----------------
  x = embed(ids_ref[0])
  for l in range(N_LAYERS):
    x = self_attn(x, w1(f"enc_sa_ln_{l}"), w2(f"enc_sa_wqkv_{l}"),
                  w1(f"enc_sa_wo_{l}"), enc_bias)
    x = ffn(x, w1(f"enc_ff_ln_{l}"), w2(f"enc_ff_wi_{l}"), w1(f"enc_ff_wo_{l}"))
  enc_out = rmsnorm(x, w1("enc_final_ln"))

  # ---------------- decoder ----------------
  y = embed(ids_ref[1])
  for l in range(N_LAYERS):
    y = self_attn(y, w1(f"dec_sa_ln_{l}"), w2(f"dec_sa_wqkv_{l}"),
                  w1(f"dec_sa_wo_{l}"), dec_bias)
    y = cross_attn(y, w1(f"dec_ca_ln_{l}"), w2(f"dec_ca_wq_{l}"),
                   w2(f"dec_ca_wkv_{l}"), w1(f"dec_ca_wo_{l}"), enc_out,
                   cross_bias)
    y = ffn(y, w1(f"dec_ff_ln_{l}"), w2(f"dec_ff_wi_{l}"), w1(f"dec_ff_wo_{l}"))
  y = rmsnorm(y, w1("dec_final_ln"))

  # ------------- lm_head + mean cross-entropy (logits stay in VMEM) --------
  logits = mdot(y, w2("lm_head"))                            # (TOK, VOCAB)
  labels = ids_ref[2]                                        # (TOK, 1) int32
  m = jnp.max(logits, axis=-1, keepdims=True)
  lse = jnp.log(jnp.sum(jnp.exp(logits - m), axis=-1, keepdims=True)) + m
  tgt = jnp.sum(jnp.where(vocab_iota == labels, logits, 0.0),
                axis=-1, keepdims=True)
  valid = (labels != -100).astype(f32)                       # ignore_index=-100
  sum_loss = jnp.sum((lse - tgt) * valid)
  n_valid = jnp.sum(valid)
  loss = sum_loss / jnp.maximum(n_valid, 1.0)

  lane = jax.lax.broadcasted_iota(jnp.int32, (1, OUT_LANES), 1)
  out_ref[...] = jnp.where(lane == 0, loss, 0.0)


# ---------------- relative position bias (T5), computed once at init -------
def _relative_position_bucket(rel_pos, bidirectional, num_buckets, max_distance):
  rel_buckets = jnp.zeros_like(rel_pos)
  if bidirectional:
    num_buckets //= 2
    rel_buckets = rel_buckets + (rel_pos > 0).astype(jnp.int32) * num_buckets
    rel_pos = jnp.abs(rel_pos)
  else:
    rel_pos = -jnp.minimum(rel_pos, 0)
  max_exact = num_buckets // 2
  is_small = rel_pos < max_exact
  rel_pos_safe = jnp.maximum(rel_pos, 1).astype(jnp.float32)
  rel_if_large = max_exact + (
      jnp.log(rel_pos_safe / max_exact)
      / jnp.log(max_distance / max_exact)
      * (num_buckets - max_exact)
  ).astype(jnp.int32)
  rel_if_large = jnp.minimum(rel_if_large, num_buckets - 1)
  return rel_buckets + jnp.where(is_small, rel_pos, rel_if_large)


def compute_rel_bias(table, qlen, klen, bidirectional):
  # table: (REL_BUCKETS, N_HEADS) -> bias (N_HEADS, qlen, klen)
  context = jnp.arange(qlen, dtype=jnp.int32)[:, None]
  memory = jnp.arange(klen, dtype=jnp.int32)[None, :]
  rel = memory - context
  buckets = _relative_position_bucket(rel, bidirectional,
                                      REL_BUCKETS, REL_MAX_DIST)
  bias = table[buckets]                      # (q, k, H)
  return jnp.transpose(bias, (2, 0, 1))      # (H, q, k)


def _batch_block_diag(bias_h):
  # (H, S, S) -> (H, B*S, B*S): same-batch blocks keep bias, off-batch NEG_INF.
  h, sq, sk = bias_h.shape
  out = jnp.full((h, B * sq, B * sk), NEG_INF, jnp.float32)
  for b in range(B):
    out = out.at[:, b * sq:(b + 1) * sq, b * sk:(b + 1) * sk].set(bias_h)
  return out


def _head_block_diag(bias_h):
  # (H, T, T) -> (H*T, H*T): per-head diagonal blocks, off-head NEG_INF.
  h, tq, tk = bias_h.shape
  out = jnp.full((h * tq, h * tk), NEG_INF, jnp.float32)
  for i in range(h):
    out = out.at[i * tq:(i + 1) * tq, i * tk:(i + 1) * tk].set(bias_h[i])
  return out


# ---------------- glue ----------------
def shift_right(labels):
  # decoder_input_ids = [start(=pad=0)] + labels[:-1]; -100 -> pad (HF behavior)
  start = jnp.zeros((labels.shape[0], 1), dtype=labels.dtype)
  shifted = jnp.concatenate([start, labels[:, :-1]], axis=1)
  return jnp.where(shifted == -100, 0, shifted)


_VMEM_SPEC = pl.BlockSpec(memory_space=pltpu.MemorySpace.VMEM)
_COST = pl.CostEstimate(flops=3_000_000, transcendentals=40_000,
                        bytes_accessed=700_000)


def mt5_loss(params, input_ids, labels):
  dec_in = shift_right(labels)
  # Pack all three id streams into one int32 tensor: (3, TOK, 1).
  ids = jnp.stack([input_ids.reshape(-1), dec_in.reshape(-1),
                   labels.reshape(-1)]).astype(jnp.int32)[:, :, None]

  out = pl.pallas_call(
      _mt5_fused_kernel,
      out_shape=jax.ShapeDtypeStruct((1, OUT_LANES), jnp.float32),
      in_specs=[_VMEM_SPEC, _VMEM_SPEC, _VMEM_SPEC, _VMEM_SPEC],
      out_specs=_VMEM_SPEC,
      cost_estimate=_COST,
  )(ids, params["bias"], params["w1"], params["w2"])
  return out[0, 0]


# ---------------- deterministic parameter init (pre-packed weights) --------
def init_params(key):
  def nrm(k, shape, scale=0.05):
    return jax.random.normal(k, shape, jnp.float32) * scale

  keys = iter(jax.random.split(key, 256))

  w1 = jnp.zeros((W1_ROWS, D_MODEL), jnp.float32)
  w2 = jnp.zeros((D_MODEL, W2_COLS), jnp.float32)

  def put1(name, arr):
    nonlocal w1
    s, n = W1_OFF[name]
    w1 = w1.at[s:s + n, :].set(arr)

  def put2(name, arr):
    nonlocal w2
    s, n = W2_OFF[name]
    w2 = w2.at[:, s:s + n].set(arr)

  ones_ln = jnp.ones((1, D_MODEL), jnp.float32)
  put1("shared", nrm(next(keys), (VOCAB, D_MODEL), scale=1.0))
  put1("enc_final_ln", ones_ln)
  put1("dec_final_ln", ones_ln)
  put2("lm_head", nrm(next(keys), (D_MODEL, VOCAB)))   # un-tied lm_head (mT5)

  for l in range(N_LAYERS):
    for name in (f"enc_sa_ln_{l}", f"enc_ff_ln_{l}", f"dec_sa_ln_{l}",
                 f"dec_ca_ln_{l}", f"dec_ff_ln_{l}"):
      put1(name, ones_ln)
    put1(f"enc_sa_wo_{l}", nrm(next(keys), (INNER, D_MODEL)))
    put1(f"enc_ff_wo_{l}", nrm(next(keys), (D_FF, D_MODEL)))
    put1(f"dec_sa_wo_{l}", nrm(next(keys), (INNER, D_MODEL)))
    put1(f"dec_ca_wo_{l}", nrm(next(keys), (INNER, D_MODEL)))
    put1(f"dec_ff_wo_{l}", nrm(next(keys), (D_FF, D_MODEL)))
    put2(f"enc_sa_wqkv_{l}", nrm(next(keys), (D_MODEL, 3 * INNER)))
    put2(f"enc_ff_wi_{l}", nrm(next(keys), (D_MODEL, 2 * D_FF)))
    put2(f"dec_sa_wqkv_{l}", nrm(next(keys), (D_MODEL, 3 * INNER)))
    put2(f"dec_ca_wq_{l}", nrm(next(keys), (D_MODEL, INNER)))
    put2(f"dec_ca_wkv_{l}", nrm(next(keys), (D_MODEL, 2 * INNER)))
    put2(f"dec_ff_wi_{l}", nrm(next(keys), (D_MODEL, 2 * D_FF)))

  # Relative-position biases (T5: computed in layer 0, shared by all layers),
  # expanded to (batch x head) block-diagonal form for the folded attention.
  enc_tbl = nrm(next(keys), (REL_BUCKETS, N_HEADS))
  dec_tbl = nrm(next(keys), (REL_BUCKETS, N_HEADS))
  enc_rel = compute_rel_bias(enc_tbl, S_IN, S_IN, bidirectional=True)
  dec_rel = compute_rel_bias(dec_tbl, S_OUT, S_OUT, bidirectional=False)
  causal = jnp.tril(jnp.ones((S_OUT, S_OUT), jnp.float32))
  dec_rel = dec_rel + (1.0 - causal)[None] * NEG_INF
  cross_zero = jnp.zeros((N_HEADS, S_OUT, S_IN), jnp.float32)

  enc_bias = _head_block_diag(_batch_block_diag(enc_rel))       # (HT, HT)
  dec_bias = _head_block_diag(_batch_block_diag(dec_rel))       # (HT, HT)
  cross_bias = _head_block_diag(_batch_block_diag(cross_zero))  # (HT, HT)

  return {"w1": w1, "w2": w2,
          "bias": jnp.stack([enc_bias, dec_bias, cross_bias], axis=0)}


# ---------------- main ----------------
if __name__ == "__main__":
  key = jax.random.PRNGKey(0)
  k_params, k_inp, k_out = jax.random.split(key, 3)

  params = init_params(k_params)
  inp = jax.random.randint(k_inp, (B, S_IN), 0, VOCAB, dtype=jnp.int32)
  out = jax.random.randint(k_out, (B, S_OUT), 0, VOCAB, dtype=jnp.int32)

  loss_fn = jax.jit(functools.partial(mt5_loss, params))
  loss = loss_fn(inp, out)
  jax.block_until_ready(loss)
  assert loss.shape == () and bool(jnp.isfinite(loss))
  print("KERNEL_OK")
</pallas_src>

<mosaic_0001>
module attributes {stable_mosaic.version = 11 : i64} {
  func.func @_mt5_fused_kernel(%arg0: memref<3x16x1xi32, #tpu.memory_space<vmem>>, %arg1: memref<3x64x64xf32, #tpu.memory_space<vmem>>, %arg2: memref<672x32xf32, #tpu.memory_space<vmem>>, %arg3: memref<32x1664xf32, #tpu.memory_space<vmem>>, %arg4: memref<1x128xf32, #tpu.memory_space<vmem>>) attributes {dimension_semantics = [], scalar_prefetch = 0 : i64, scratch_operands = 0 : i64, tpu.core_type = #tpu.core_type<tc>} {
    %0 = tpu.iota {dimensions = array<i32: 1>} : vector<16x128xi32>
    %c0 = arith.constant 0 : index
    %c0_0 = arith.constant 0 : index
    %1 = vector.load %arg2[%c0, %c0_0] : memref<672x32xf32, #tpu.memory_space<vmem>>, vector<128x32xf32>
    %2 = arith.truncf %1 : vector<128x32xf32> to vector<128x32xbf16>
    %c0_1 = arith.constant 0 : index
    %c0_2 = arith.constant 0 : index
    %c0_3 = arith.constant 0 : index
    %3 = vector.load %arg1[%c0_1, %c0_2, %c0_3] : memref<3x64x64xf32, #tpu.memory_space<vmem>>, vector<1x64x64xf32>
    %4 = vector.shape_cast %3 : vector<1x64x64xf32> to vector<64x64xf32>
    %c1 = arith.constant 1 : index
    %c0_4 = arith.constant 0 : index
    %c0_5 = arith.constant 0 : index
    %5 = vector.load %arg1[%c1, %c0_4, %c0_5] : memref<3x64x64xf32, #tpu.memory_space<vmem>>, vector<1x64x64xf32>
    %6 = vector.shape_cast %5 : vector<1x64x64xf32> to vector<64x64xf32>
    %c2 = arith.constant 2 : index
    %c0_6 = arith.constant 0 : index
    %c0_7 = arith.constant 0 : index
    %7 = vector.load %arg1[%c2, %c0_6, %c0_7] : memref<3x64x64xf32, #tpu.memory_space<vmem>>, vector<1x64x64xf32>
    %8 = vector.shape_cast %7 : vector<1x64x64xf32> to vector<64x64xf32>
    %c0_8 = arith.constant 0 : index
    %c0_9 = arith.constant 0 : index
    %c0_10 = arith.constant 0 : index
    %9 = vector.load %arg0[%c0_8, %c0_9, %c0_10] : memref<3x16x1xi32, #tpu.memory_space<vmem>>, vector<1x16x1xi32>
    %10 = vector.shape_cast %9 : vector<1x16x1xi32> to vector<16x1xi32>
    %11 = vector.broadcast %10 : vector<16x1xi32> to vector<16x128xi32>
    %12 = arith.cmpi eq, %0, %11 : vector<16x128xi32>
    %13 = arith.extui %12 : vector<16x128xi1> to vector<16x128xi32>
    %14 = arith.sitofp %13 : vector<16x128xi32> to vector<16x128xf32>
    %15 = arith.truncf %14 : vector<16x128xf32> to vector<16x128xbf16>
    %cst = arith.constant dense<0.000000e+00> : vector<16x32xf32>
    %16 = tpu.matmul %15, %2, %cst {dimension_numbers = #tpu.dot_dimension_numbers<[1], [0], [0], [1], [0, 0, 1, 1], [], []>} : vector<16x128xbf16>, vector<128x32xbf16>, vector<16x32xf32> -> vector<16x32xf32>
    %c144 = arith.constant 144 : index
    %c0_11 = arith.constant 0 : index
    %17 = vector.load %arg2[%c144, %c0_11] : memref<672x32xf32, #tpu.memory_space<vmem>>, vector<1x32xf32>
    %c0_12 = arith.constant 0 : index
    %c128 = arith.constant 128 : index
    %18 = vector.load %arg3[%c0_12, %c128] : memref<32x1664xf32, #tpu.memory_space<vmem>>, vector<32x96xf32>
    %c224 = arith.constant 224 : index
    %c0_13 = arith.constant 0 : index
    %19 = vector.load %arg2[%c224, %c0_13] : memref<672x32xf32, #tpu.memory_space<vmem>>, vector<32x32xf32>
    %20 = arith.mulf %16, %16 : vector<16x32xf32>
    %cst_14 = arith.constant dense<0.000000e+00> : vector<16xf32>
    %21 = vector.multi_reduction <add>, %20, %cst_14 [1] : vector<16x32xf32> to vector<16xf32>
    %22 = vector.shape_cast %21 : vector<16xf32> to vector<16x1xf32>
    %cst_15 = arith.constant 3.200000e+01 : f32
    %23 = vector.broadcast %cst_15 : f32 to vector<16x1xf32>
    %24 = arith.divf %22, %23 : vector<16x1xf32>
    %cst_16 = arith.constant 9.99999997E-7 : f32
    %25 = vector.broadcast %cst_16 : f32 to vector<16x1xf32>
    %26 = arith.addf %24, %25 : vector<16x1xf32>
    %27 = math.rsqrt %26 : vector<16x1xf32>
    %28 = vector.broadcast %27 : vector<16x1xf32> to vector<16x32xf32>
    %29 = arith.mulf %16, %28 : vector<16x32xf32>
    %30 = vector.broadcast %17 : vector<1x32xf32> to vector<16x32xf32>
    %31 = arith.mulf %29, %30 : vector<16x32xf32>
    %32 = arith.truncf %31 : vector<16x32xf32> to vector<16x32xbf16>
    %33 = arith.truncf %18 : vector<32x96xf32> to vector<32x96xbf16>
    %cst_17 = arith.constant dense<0.000000e+00> : vector<16x96xf32>
    %34 = tpu.matmul %32, %33, %cst_17 {dimension_numbers = #tpu.dot_dimension_numbers<[1], [0], [0], [1], [0, 0, 1, 1], [], []>} : vector<16x32xbf16>, vector<32x96xbf16>, vector<16x96xf32> -> vector<16x96xf32>
    %35 = vector.extract_strided_slice %34 {offsets = [0, 0], sizes = [16, 32], strides = [1, 1]} : vector<16x96xf32> to vector<16x32xf32>
    %36 = vector.extract_strided_slice %34 {offsets = [0, 32], sizes = [16, 32], strides = [1, 1]} : vector<16x96xf32> to vector<16x32xf32>
    %37 = vector.extract_strided_slice %34 {offsets = [0, 64], sizes = [16, 32], strides = [1, 1]} : vector<16x96xf32> to vector<16x32xf32>
    %38 = vector.extract_strided_slice %35 {offsets = [0, 0], sizes = [16, 8], strides = [1, 1]} : vector<16x32xf32> to vector<16x8xf32>
    %39 = vector.extract_strided_slice %35 {offsets = [0, 8], sizes = [16, 8], strides = [1, 1]} : vector<16x32xf32> to vector<16x8xf32>
    %40 = vector.extract_strided_slice %35 {offsets = [0, 16], sizes = [16, 8], strides = [1, 1]} : vector<16x32xf32> to vector<16x8xf32>
    %41 = vector.extract_strided_slice %35 {offsets = [0, 24], sizes = [16, 8], strides = [1, 1]} : vector<16x32xf32> to vector<16x8xf32>
    %42 = tpu.concatenate %38, %39, %40, %41 in 0 : vector<16x8xf32>, vector<16x8xf32>, vector<16x8xf32>, vector<16x8xf32> -> vector<64x8xf32>
    %43 = vector.extract_strided_slice %36 {offsets = [0, 0], sizes = [16, 8], strides = [1, 1]} : vector<16x32xf32> to vector<16x8xf32>
    %44 = vector.extract_strided_slice %36 {offsets = [0, 8], sizes = [16, 8], strides = [1, 1]} : vector<16x32xf32> to vector<16x8xf32>
    %45 = vector.extract_strided_slice %36 {offsets = [0, 16], sizes = [16, 8], strides = [1, 1]} : vector<16x32xf32> to vector<16x8xf32>
    %46 = vector.extract_strided_slice %36 {offsets = [0, 24], sizes = [16, 8], strides = [1, 1]} : vector<16x32xf32> to vector<16x8xf32>
    %47 = tpu.concatenate %43, %44, %45, %46 in 0 : vector<16x8xf32>, vector<16x8xf32>, vector<16x8xf32>, vector<16x8xf32> -> vector<64x8xf32>
    %48 = vector.extract_strided_slice %37 {offsets = [0, 0], sizes = [16, 8], strides = [1, 1]} : vector<16x32xf32> to vector<16x8xf32>
    %49 = vector.extract_strided_slice %37 {offsets = [0, 8], sizes = [16, 8], strides = [1, 1]} : vector<16x32xf32> to vector<16x8xf32>
    %50 = vector.extract_strided_slice %37 {offsets = [0, 16], sizes = [16, 8], strides = [1, 1]} : vector<16x32xf32> to vector<16x8xf32>
    %51 = vector.extract_strided_slice %37 {offsets = [0, 24], sizes = [16, 8], strides = [1, 1]} : vector<16x32xf32> to vector<16x8xf32>
    %52 = tpu.concatenate %48, %49, %50, %51 in 0 : vector<16x8xf32>, vector<16x8xf32>, vector<16x8xf32>, vector<16x8xf32> -> vector<64x8xf32>
    %53 = arith.truncf %42 : vector<64x8xf32> to vector<64x8xbf16>
    %54 = arith.truncf %47 : vector<64x8xf32> to vector<64x8xbf16>
    %cst_18 = arith.constant dense<0.000000e+00> : vector<64x64xf32>
    %55 = tpu.matmul %53, %54, %cst_18 {dimension_numbers = #tpu.dot_dimension_numbers<[1], [1], [0], [0], [0, 0, 1, 0], [], []>} : vector<64x8xbf16>, vector<64x8xbf16>, vector<64x64xf32> -> vector<64x64xf32>
    %56 = arith.addf %55, %4 : vector<64x64xf32>
    %cst_19 = arith.constant dense<0xFF800000> : vector<64xf32>
    %57 = vector.multi_reduction <maximumf>, %56, %cst_19 [1] : vector<64x64xf32> to vector<64xf32>
    %58 = vector.shape_cast %57 : vector<64xf32> to vector<64x1xf32>
    %59 = vector.broadcast %58 : vector<64x1xf32> to vector<64x64xf32>
    %60 = arith.subf %56, %59 : vector<64x64xf32>
    %61 = math.exp %60 : vector<64x64xf32>
    %cst_20 = arith.constant dense<0.000000e+00> : vector<64xf32>
    %62 = vector.multi_reduction <add>, %61, %cst_20 [1] : vector<64x64xf32> to vector<64xf32>
    %63 = vector.shape_cast %62 : vector<64xf32> to vector<64x1xf32>
    %64 = tpu.reciprocal %63 {approx = true} : vector<64x1xf32> -> vector<64x1xf32>
    %65 = vector.broadcast %64 : vector<64x1xf32> to vector<64x64xf32>
    %66 = arith.mulf %61, %65 : vector<64x64xf32>
    %67 = arith.truncf %66 : vector<64x64xf32> to vector<64x64xbf16>
    %68 = arith.truncf %52 : vector<64x8xf32> to vector<64x8xbf16>
    %cst_21 = arith.constant dense<0.000000e+00> : vector<64x8xf32>
    %69 = tpu.matmul %67, %68, %cst_21 {dimension_numbers = #tpu.dot_dimension_numbers<[1], [0], [0], [1], [0, 0, 1, 1], [], []>} : vector<64x64xbf16>, vector<64x8xbf16>, vector<64x8xf32> -> vector<64x8xf32>
    %70 = vector.extract_strided_slice %69 {offsets = [0, 0], sizes = [16, 8], strides = [1, 1]} : vector<64x8xf32> to vector<16x8xf32>
    %71 = vector.extract_strided_slice %69 {offsets = [16, 0], sizes = [16, 8], strides = [1, 1]} : vector<64x8xf32> to vector<16x8xf32>
    %72 = vector.extract_strided_slice %69 {offsets = [32, 0], sizes = [16, 8], strides = [1, 1]} : vector<64x8xf32> to vector<16x8xf32>
    %73 = vector.extract_strided_slice %69 {offsets = [48, 0], sizes = [16, 8], strides = [1, 1]} : vector<64x8xf32> to vector<16x8xf32>
    %74 = tpu.concatenate %70, %71, %72, %73 in 1 : vector<16x8xf32>, vector<16x8xf32>, vector<16x8xf32>, vector<16x8xf32> -> vector<16x32xf32>
    %75 = arith.truncf %74 : vector<16x32xf32> to vector<16x32xbf16>
    %76 = arith.truncf %19 : vector<32x32xf32> to vector<32x32xbf16>
    %cst_22 = arith.constant dense<0.000000e+00> : vector<16x32xf32>
    %77 = tpu.matmul %75, %76, %cst_22 {dimension_numbers = #tpu.dot_dimension_numbers<[1], [0], [0], [1], [0, 0, 1, 1], [], []>} : vector<16x32xbf16>, vector<32x32xbf16>, vector<16x32xf32> -> vector<16x32xf32>
    %78 = arith.addf %16, %77 : vector<16x32xf32>
    %c152 = arith.constant 152 : index
    %c0_23 = arith.constant 0 : index
    %79 = vector.load %arg2[%c152, %c0_23] : memref<672x32xf32, #tpu.memory_space<vmem>>, vector<1x32xf32>
    %c0_24 = arith.constant 0 : index
    %c256 = arith.constant 256 : index
    %80 = vector.load %arg3[%c0_24, %c256] : memref<32x1664xf32, #tpu.memory_space<vmem>>, vector<32x128xf32>
    %c256_25 = arith.constant 256 : index
    %c0_26 = arith.constant 0 : index
    %81 = vector.load %arg2[%c256_25, %c0_26] : memref<672x32xf32, #tpu.memory_space<vmem>>, vector<64x32xf32>
    %82 = arith.mulf %78, %78 : vector<16x32xf32>
    %cst_27 = arith.constant dense<0.000000e+00> : vector<16xf32>
    %83 = vector.multi_reduction <add>, %82, %cst_27 [1] : vector<16x32xf32> to vector<16xf32>
    %84 = vector.shape_cast %83 : vector<16xf32> to vector<16x1xf32>
    %cst_28 = arith.constant 3.200000e+01 : f32
    %85 = vector.broadcast %cst_28 : f32 to vector<16x1xf32>
    %86 = arith.divf %84, %85 : vector<16x1xf32>
    %cst_29 = arith.constant 9.99999997E-7 : f32
    %87 = vector.broadcast %cst_29 : f32 to vector<16x1xf32>
    %88 = arith.addf %86, %87 : vector<16x1xf32>
    %89 = math.rsqrt %88 : vector<16x1xf32>
    %90 = vector.broadcast %89 : vector<16x1xf32> to vector<16x32xf32>
    %91 = arith.mulf %78, %90 : vector<16x32xf32>
    %92 = vector.broadcast %79 : vector<1x32xf32> to vector<16x32xf32>
    %93 = arith.mulf %91, %92 : vector<16x32xf32>
    %94 = arith.truncf %93 : vector<16x32xf32> to vector<16x32xbf16>
    %95 = arith.truncf %80 : vector<32x128xf32> to vector<32x128xbf16>
    %cst_30 = arith.constant dense<0.000000e+00> : vector<16x128xf32>
    %96 = tpu.matmul %94, %95, %cst_30 {dimension_numbers = #tpu.dot_dimension_numbers<[1], [0], [0], [1], [0, 0, 1, 1], [], []>} : vector<16x32xbf16>, vector<32x128xbf16>, vector<16x128xf32> -> vector<16x128xf32>
    %97 = vector.extract_strided_slice %96 {offsets = [0, 0], sizes = [16, 64], strides = [1, 1]} : vector<16x128xf32> to vector<16x64xf32>
    %98 = arith.mulf %97, %97 : vector<16x64xf32>
    %99 = arith.mulf %97, %98 : vector<16x64xf32>
    %cst_31 = arith.constant 4.471500e-02 : f32
    %100 = vector.broadcast %cst_31 : f32 to vector<16x64xf32>
    %101 = arith.mulf %100, %99 : vector<16x64xf32>
    %102 = arith.addf %97, %101 : vector<16x64xf32>
    %cst_32 = arith.constant 0.797884583 : f32
    %103 = vector.broadcast %cst_32 : f32 to vector<16x64xf32>
    %104 = arith.mulf %103, %102 : vector<16x64xf32>
    %105 = math.tanh %104 : vector<16x64xf32>
    %cst_33 = arith.constant 1.000000e+00 : f32
    %106 = vector.broadcast %cst_33 : f32 to vector<16x64xf32>
    %107 = arith.addf %106, %105 : vector<16x64xf32>
    %cst_34 = arith.constant 5.000000e-01 : f32
    %108 = vector.broadcast %cst_34 : f32 to vector<16x64xf32>
    %109 = arith.mulf %108, %107 : vector<16x64xf32>
    %110 = arith.mulf %97, %109 : vector<16x64xf32>
    %111 = vector.extract_strided_slice %96 {offsets = [0, 64], sizes = [16, 64], strides = [1, 1]} : vector<16x128xf32> to vector<16x64xf32>
    %112 = arith.mulf %110, %111 : vector<16x64xf32>
    %113 = arith.truncf %112 : vector<16x64xf32> to vector<16x64xbf16>
    %114 = arith.truncf %81 : vector<64x32xf32> to vector<64x32xbf16>
    %cst_35 = arith.constant dense<0.000000e+00> : vector<16x32xf32>
    %115 = tpu.matmul %113, %114, %cst_35 {dimension_numbers = #tpu.dot_dimension_numbers<[1], [0], [0], [1], [0, 0, 1, 1], [], []>} : vector<16x64xbf16>, vector<64x32xbf16>, vector<16x32xf32> -> vector<16x32xf32>
    %116 = arith.addf %78, %115 : vector<16x32xf32>
    %c184 = arith.constant 184 : index
    %c0_36 = arith.constant 0 : index
    %117 = vector.load %arg2[%c184, %c0_36] : memref<672x32xf32, #tpu.memory_space<vmem>>, vector<1x32xf32>
    %c0_37 = arith.constant 0 : index
    %c896 = arith.constant 896 : index
    %118 = vector.load %arg3[%c0_37, %c896] : memref<32x1664xf32, #tpu.memory_space<vmem>>, vector<32x96xf32>
    %c448 = arith.constant 448 : index
    %c0_38 = arith.constant 0 : index
    %119 = vector.load %arg2[%c448, %c0_38] : memref<672x32xf32, #tpu.memory_space<vmem>>, vector<32x32xf32>
    %120 = arith.mulf %116, %116 : vector<16x32xf32>
    %cst_39 = arith.constant dense<0.000000e+00> : vector<16xf32>
    %121 = vector.multi_reduction <add>, %120, %cst_39 [1] : vector<16x32xf32> to vector<16xf32>
    %122 = vector.shape_cast %121 : vector<16xf32> to vector<16x1xf32>
    %cst_40 = arith.constant 3.200000e+01 : f32
    %123 = vector.broadcast %cst_40 : f32 to vector<16x1xf32>
    %124 = arith.divf %122, %123 : vector<16x1xf32>
    %cst_41 = arith.constant 9.99999997E-7 : f32
    %125 = vector.broadcast %cst_41 : f32 to vector<16x1xf32>
    %126 = arith.addf %124, %125 : vector<16x1xf32>
    %127 = math.rsqrt %126 : vector<16x1xf32>
    %128 = vector.broadcast %127 : vector<16x1xf32> to vector<16x32xf32>
    %129 = arith.mulf %116, %128 : vector<16x32xf32>
    %130 = vector.broadcast %117 : vector<1x32xf32> to vector<16x32xf32>
    %131 = arith.mulf %129, %130 : vector<16x32xf32>
    %132 = arith.truncf %131 : vector<16x32xf32> to vector<16x32xbf16>
    %133 = arith.truncf %118 : vector<32x96xf32> to vector<32x96xbf16>
    %cst_42 = arith.constant dense<0.000000e+00> : vector<16x96xf32>
    %134 = tpu.matmul %132, %133, %cst_42 {dimension_numbers = #tpu.dot_dimension_numbers<[1], [0], [0], [1], [0, 0, 1, 1], [], []>} : vector<16x32xbf16>, vector<32x96xbf16>, vector<16x96xf32> -> vector<16x96xf32>
    %135 = vector.extract_strided_slice %134 {offsets = [0, 0], sizes = [16, 32], strides = [1, 1]} : vector<16x96xf32> to vector<16x32xf32>
    %136 = vector.extract_strided_slice %134 {offsets = [0, 32], sizes = [16, 32], strides = [1, 1]} : vector<16x96xf32> to vector<16x32xf32>
    %137 = vector.extract_strided_slice %134 {offsets = [0, 64], sizes = [16, 32], strides = [1, 1]} : vector<16x96xf32> to vector<16x32xf32>
    %138 = vector.extract_strided_slice %135 {offsets = [0, 0], sizes = [16, 8], strides = [1, 1]} : vector<16x32xf32> to vector<16x8xf32>
    %139 = vector.extract_strided_slice %135 {offsets = [0, 8], sizes = [16, 8], strides = [1, 1]} : vector<16x32xf32> to vector<16x8xf32>
    %140 = vector.extract_strided_slice %135 {offsets = [0, 16], sizes = [16, 8], strides = [1, 1]} : vector<16x32xf32> to vector<16x8xf32>
    %141 = vector.extract_strided_slice %135 {offsets = [0, 24], sizes = [16, 8], strides = [1, 1]} : vector<16x32xf32> to vector<16x8xf32>
    %142 = tpu.concatenate %138, %139, %140, %141 in 0 : vector<16x8xf32>, vector<16x8xf32>, vector<16x8xf32>, vector<16x8xf32> -> vector<64x8xf32>
    %143 = vector.extract_strided_slice %136 {offsets = [0, 0], sizes = [16, 8], strides = [1, 1]} : vector<16x32xf32> to vector<16x8xf32>
    %144 = vector.extract_strided_slice %136 {offsets = [0, 8], sizes = [16, 8], strides = [1, 1]} : vector<16x32xf32> to vector<16x8xf32>
    %145 = vector.extract_strided_slice %136 {offsets = [0, 16], sizes = [16, 8], strides = [1, 1]} : vector<16x32xf32> to vector<16x8xf32>
    %146 = vector.extract_strided_slice %136 {offsets = [0, 24], sizes = [16, 8], strides = [1, 1]} : vector<16x32xf32> to vector<16x8xf32>
    %147 = tpu.concatenate %143, %144, %145, %146 in 0 : vector<16x8xf32>, vector<16x8xf32>, vector<16x8xf32>, vector<16x8xf32> -> vector<64x8xf32>
    %148 = vector.extract_strided_slice %137 {offsets = [0, 0], sizes = [16, 8], strides = [1, 1]} : vector<16x32xf32> to vector<16x8xf32>
    %149 = vector.extract_strided_slice %137 {offsets = [0, 8], sizes = [16, 8], strides = [1, 1]} : vector<16x32xf32> to vector<16x8xf32>
    %150 = vector.extract_strided_slice %137 {offsets = [0, 16], sizes = [16, 8], strides = [1, 1]} : vector<16x32xf32> to vector<16x8xf32>
    %151 = vector.extract_strided_slice %137 {offsets = [0, 24], sizes = [16, 8], strides = [1, 1]} : vector<16x32xf32> to vector<16x8xf32>
    %152 = tpu.concatenate %148, %149, %150, %151 in 0 : vector<16x8xf32>, vector<16x8xf32>, vector<16x8xf32>, vector<16x8xf32> -> vector<64x8xf32>
    %153 = arith.truncf %142 : vector<64x8xf32> to vector<64x8xbf16>
    %154 = arith.truncf %147 : vector<64x8xf32> to vector<64x8xbf16>
    %cst_43 = arith.constant dense<0.000000e+00> : vector<64x64xf32>
    %155 = tpu.matmul %153, %154, %cst_43 {dimension_numbers = #tpu.dot_dimension_numbers<[1], [1], [0], [0], [0, 0, 1, 0], [], []>} : vector<64x8xbf16>, vector<64x8xbf16>, vector<64x64xf32> -> vector<64x64xf32>
    %156 = arith.addf %155, %4 : vector<64x64xf32>
    %cst_44 = arith.constant dense<0xFF800000> : vector<64xf32>
    %157 = vector.multi_reduction <maximumf>, %156, %cst_44 [1] : vector<64x64xf32> to vector<64xf32>
    %158 = vector.shape_cast %157 : vector<64xf32> to vector<64x1xf32>
    %159 = vector.broadcast %158 : vector<64x1xf32> to vector<64x64xf32>
    %160 = arith.subf %156, %159 : vector<64x64xf32>
    %161 = math.exp %160 : vector<64x64xf32>
    %cst_45 = arith.constant dense<0.000000e+00> : vector<64xf32>
    %162 = vector.multi_reduction <add>, %161, %cst_45 [1] : vector<64x64xf32> to vector<64xf32>
    %163 = vector.shape_cast %162 : vector<64xf32> to vector<64x1xf32>
    %164 = tpu.reciprocal %163 {approx = true} : vector<64x1xf32> -> vector<64x1xf32>
    %165 = vector.broadcast %164 : vector<64x1xf32> to vector<64x64xf32>
    %166 = arith.mulf %161, %165 : vector<64x64xf32>
    %167 = arith.truncf %166 : vector<64x64xf32> to vector<64x64xbf16>
    %168 = arith.truncf %152 : vector<64x8xf32> to vector<64x8xbf16>
    %cst_46 = arith.constant dense<0.000000e+00> : vector<64x8xf32>
    %169 = tpu.matmul %167, %168, %cst_46 {dimension_numbers = #tpu.dot_dimension_numbers<[1], [0], [0], [1], [0, 0, 1, 1], [], []>} : vector<64x64xbf16>, vector<64x8xbf16>, vector<64x8xf32> -> vector<64x8xf32>
    %170 = vector.extract_strided_slice %169 {offsets = [0, 0], sizes = [16, 8], strides = [1, 1]} : vector<64x8xf32> to vector<16x8xf32>
    %171 = vector.extract_strided_slice %169 {offsets = [16, 0], sizes = [16, 8], strides = [1, 1]} : vector<64x8xf32> to vector<16x8xf32>
    %172 = vector.extract_strided_slice %169 {offsets = [32, 0], sizes = [16, 8], strides = [1, 1]} : vector<64x8xf32> to vector<16x8xf32>
    %173 = vector.extract_strided_slice %169 {offsets = [48, 0], sizes = [16, 8], strides = [1, 1]} : vector<64x8xf32> to vector<16x8xf32>
    %174 = tpu.concatenate %170, %171, %172, %173 in 1 : vector<16x8xf32>, vector<16x8xf32>, vector<16x8xf32>, vector<16x8xf32> -> vector<16x32xf32>
    %175 = arith.truncf %174 : vector<16x32xf32> to vector<16x32xbf16>
    %176 = arith.truncf %119 : vector<32x32xf32> to vector<32x32xbf16>
    %cst_47 = arith.constant dense<0.000000e+00> : vector<16x32xf32>
    %177 = tpu.matmul %175, %176, %cst_47 {dimension_numbers = #tpu.dot_dimension_numbers<[1], [0], [0], [1], [0, 0, 1, 1], [], []>} : vector<16x32xbf16>, vector<32x32xbf16>, vector<16x32xf32> -> vector<16x32xf32>
    %178 = arith.addf %116, %177 : vector<16x32xf32>
    %c192 = arith.constant 192 : index
    %c0_48 = arith.constant 0 : index
    %179 = vector.load %arg2[%c192, %c0_48] : memref<672x32xf32, #tpu.memory_space<vmem>>, vector<1x32xf32>
    %c0_49 = arith.constant 0 : index
    %c1024 = arith.constant 1024 : index
    %180 = vector.load %arg3[%c0_49, %c1024] : memref<32x1664xf32, #tpu.memory_space<vmem>>, vector<32x128xf32>
    %c480 = arith.constant 480 : index
    %c0_50 = arith.constant 0 : index
    %181 = vector.load %arg2[%c480, %c0_50] : memref<672x32xf32, #tpu.memory_space<vmem>>, vector<64x32xf32>
    %182 = arith.mulf %178, %178 : vector<16x32xf32>
    %cst_51 = arith.constant dense<0.000000e+00> : vector<16xf32>
    %183 = vector.multi_reduction <add>, %182, %cst_51 [1] : vector<16x32xf32> to vector<16xf32>
    %184 = vector.shape_cast %183 : vector<16xf32> to vector<16x1xf32>
    %cst_52 = arith.constant 3.200000e+01 : f32
    %185 = vector.broadcast %cst_52 : f32 to vector<16x1xf32>
    %186 = arith.divf %184, %185 : vector<16x1xf32>
    %cst_53 = arith.constant 9.99999997E-7 : f32
    %187 = vector.broadcast %cst_53 : f32 to vector<16x1xf32>
    %188 = arith.addf %186, %187 : vector<16x1xf32>
    %189 = math.rsqrt %188 : vector<16x1xf32>
    %190 = vector.broadcast %189 : vector<16x1xf32> to vector<16x32xf32>
    %191 = arith.mulf %178, %190 : vector<16x32xf32>
    %192 = vector.broadcast %179 : vector<1x32xf32> to vector<16x32xf32>
    %193 = arith.mulf %191, %192 : vector<16x32xf32>
    %194 = arith.truncf %193 : vector<16x32xf32> to vector<16x32xbf16>
    %195 = arith.truncf %180 : vector<32x128xf32> to vector<32x128xbf16>
    %cst_54 = arith.constant dense<0.000000e+00> : vector<16x128xf32>
    %196 = tpu.matmul %194, %195, %cst_54 {dimension_numbers = #tpu.dot_dimension_numbers<[1], [0], [0], [1], [0, 0, 1, 1], [], []>} : vector<16x32xbf16>, vector<32x128xbf16>, vector<16x128xf32> -> vector<16x128xf32>
    %197 = vector.extract_strided_slice %196 {offsets = [0, 0], sizes = [16, 64], strides = [1, 1]} : vector<16x128xf32> to vector<16x64xf32>
    %198 = arith.mulf %197, %197 : vector<16x64xf32>
    %199 = arith.mulf %197, %198 : vector<16x64xf32>
    %cst_55 = arith.constant 4.471500e-02 : f32
    %200 = vector.broadcast %cst_55 : f32 to vector<16x64xf32>
    %201 = arith.mulf %200, %199 : vector<16x64xf32>
    %202 = arith.addf %197, %201 : vector<16x64xf32>
    %cst_56 = arith.constant 0.797884583 : f32
    %203 = vector.broadcast %cst_56 : f32 to vector<16x64xf32>
    %204 = arith.mulf %203, %202 : vector<16x64xf32>
    %205 = math.tanh %204 : vector<16x64xf32>
    %cst_57 = arith.constant 1.000000e+00 : f32
    %206 = vector.broadcast %cst_57 : f32 to vector<16x64xf32>
    %207 = arith.addf %206, %205 : vector<16x64xf32>
    %cst_58 = arith.constant 5.000000e-01 : f32
    %208 = vector.broadcast %cst_58 : f32 to vector<16x64xf32>
    %209 = arith.mulf %208, %207 : vector<16x64xf32>
    %210 = arith.mulf %197, %209 : vector<16x64xf32>
    %211 = vector.extract_strided_slice %196 {offsets = [0, 64], sizes = [16, 64], strides = [1, 1]} : vector<16x128xf32> to vector<16x64xf32>
    %212 = arith.mulf %210, %211 : vector<16x64xf32>
    %213 = arith.truncf %212 : vector<16x64xf32> to vector<16x64xbf16>
    %214 = arith.truncf %181 : vector<64x32xf32> to vector<64x32xbf16>
    %cst_59 = arith.constant dense<0.000000e+00> : vector<16x32xf32>
    %215 = tpu.matmul %213, %214, %cst_59 {dimension_numbers = #tpu.dot_dimension_numbers<[1], [0], [0], [1], [0, 0, 1, 1], [], []>} : vector<16x64xbf16>, vector<64x32xbf16>, vector<16x32xf32> -> vector<16x32xf32>
    %216 = arith.addf %178, %215 : vector<16x32xf32>
    %c128_60 = arith.constant 128 : index
    %c0_61 = arith.constant 0 : index
    %217 = vector.load %arg2[%c128_60, %c0_61] : memref<672x32xf32, #tpu.memory_space<vmem>>, vector<1x32xf32>
    %218 = arith.mulf %216, %216 : vector<16x32xf32>
    %cst_62 = arith.constant dense<0.000000e+00> : vector<16xf32>
    %219 = vector.multi_reduction <add>, %218, %cst_62 [1] : vector<16x32xf32> to vector<16xf32>
    %220 = vector.shape_cast %219 : vector<16xf32> to vector<16x1xf32>
    %cst_63 = arith.constant 3.200000e+01 : f32
    %221 = vector.broadcast %cst_63 : f32 to vector<16x1xf32>
    %222 = arith.divf %220, %221 : vector<16x1xf32>
    %cst_64 = arith.constant 9.99999997E-7 : f32
    %223 = vector.broadcast %cst_64 : f32 to vector<16x1xf32>
    %224 = arith.addf %222, %223 : vector<16x1xf32>
    %225 = math.rsqrt %224 : vector<16x1xf32>
    %226 = vector.broadcast %225 : vector<16x1xf32> to vector<16x32xf32>
    %227 = arith.mulf %216, %226 : vector<16x32xf32>
    %228 = vector.broadcast %217 : vector<1x32xf32> to vector<16x32xf32>
    %229 = arith.mulf %227, %228 : vector<16x32xf32>
    %c1_65 = arith.constant 1 : index
    %c0_66 = arith.constant 0 : index
    %c0_67 = arith.constant 0 : index
    %230 = vector.load %arg0[%c1_65, %c0_66, %c0_67] : memref<3x16x1xi32, #tpu.memory_space<vmem>>, vector<1x16x1xi32>
    %231 = vector.shape_cast %230 : vector<1x16x1xi32> to vector<16x1xi32>
    %232 = vector.broadcast %231 : vector<16x1xi32> to vector<16x128xi32>
    %233 = arith.cmpi eq, %0, %232 : vector<16x128xi32>
    %234 = arith.extui %233 : vector<16x128xi1> to vector<16x128xi32>
    %235 = arith.sitofp %234 : vector<16x128xi32> to vector<16x128xf32>
    %236 = arith.truncf %235 : vector<16x128xf32> to vector<16x128xbf16>
    %cst_68 = arith.constant dense<0.000000e+00> : vector<16x32xf32>
    %237 = tpu.matmul %236, %2, %cst_68 {dimension_numbers = #tpu.dot_dimension_numbers<[1], [0], [0], [1], [0, 0, 1, 1], [], []>} : vector<16x128xbf16>, vector<128x32xbf16>, vector<16x32xf32> -> vector<16x32xf32>
    %c160 = arith.constant 160 : index
    %c0_69 = arith.constant 0 : index
    %238 = vector.load %arg2[%c160, %c0_69] : memref<672x32xf32, #tpu.memory_space<vmem>>, vector<1x32xf32>
    %c0_70 = arith.constant 0 : index
    %c384 = arith.constant 384 : index
    %239 = vector.load %arg3[%c0_70, %c384] : memref<32x1664xf32, #tpu.memory_space<vmem>>, vector<32x96xf32>
    %c320 = arith.constant 320 : index
    %c0_71 = arith.constant 0 : index
    %240 = vector.load %arg2[%c320, %c0_71] : memref<672x32xf32, #tpu.memory_space<vmem>>, vector<32x32xf32>
    %241 = arith.mulf %237, %237 : vector<16x32xf32>
    %cst_72 = arith.constant dense<0.000000e+00> : vector<16xf32>
    %242 = vector.multi_reduction <add>, %241, %cst_72 [1] : vector<16x32xf32> to vector<16xf32>
    %243 = vector.shape_cast %242 : vector<16xf32> to vector<16x1xf32>
    %cst_73 = arith.constant 3.200000e+01 : f32
    %244 = vector.broadcast %cst_73 : f32 to vector<16x1xf32>
    %245 = arith.divf %243, %244 : vector<16x1xf32>
    %cst_74 = arith.constant 9.99999997E-7 : f32
    %246 = vector.broadcast %cst_74 : f32 to vector<16x1xf32>
    %247 = arith.addf %245, %246 : vector<16x1xf32>
    %248 = math.rsqrt %247 : vector<16x1xf32>
    %249 = vector.broadcast %248 : vector<16x1xf32> to vector<16x32xf32>
    %250 = arith.mulf %237, %249 : vector<16x32xf32>
    %251 = vector.broadcast %238 : vector<1x32xf32> to vector<16x32xf32>
    %252 = arith.mulf %250, %251 : vector<16x32xf32>
    %253 = arith.truncf %252 : vector<16x32xf32> to vector<16x32xbf16>
    %254 = arith.truncf %239 : vector<32x96xf32> to vector<32x96xbf16>
    %cst_75 = arith.constant dense<0.000000e+00> : vector<16x96xf32>
    %255 = tpu.matmul %253, %254, %cst_75 {dimension_numbers = #tpu.dot_dimension_numbers<[1], [0], [0], [1], [0, 0, 1, 1], [], []>} : vector<16x32xbf16>, vector<32x96xbf16>, vector<16x96xf32> -> vector<16x96xf32>
    %256 = vector.extract_strided_slice %255 {offsets = [0, 0], sizes = [16, 32], strides = [1, 1]} : vector<16x96xf32> to vector<16x32xf32>
    %257 = vector.extract_strided_slice %255 {offsets = [0, 32], sizes = [16, 32], strides = [1, 1]} : vector<16x96xf32> to vector<16x32xf32>
    %258 = vector.extract_strided_slice %255 {offsets = [0, 64], sizes = [16, 32], strides = [1, 1]} : vector<16x96xf32> to vector<16x32xf32>
    %259 = vector.extract_strided_slice %256 {offsets = [0, 0], sizes = [16, 8], strides = [1, 1]} : vector<16x32xf32> to vector<16x8xf32>
    %260 = vector.extract_strided_slice %256 {offsets = [0, 8], sizes = [16, 8], strides = [1, 1]} : vector<16x32xf32> to vector<16x8xf32>
    %261 = vector.extract_strided_slice %256 {offsets = [0, 16], sizes = [16, 8], strides = [1, 1]} : vector<16x32xf32> to vector<16x8xf32>
    %262 = vector.extract_strided_slice %256 {offsets = [0, 24], sizes = [16, 8], strides = [1, 1]} : vector<16x32xf32> to vector<16x8xf32>
    %263 = tpu.concatenate %259, %260, %261, %262 in 0 : vector<16x8xf32>, vector<16x8xf32>, vector<16x8xf32>, vector<16x8xf32> -> vector<64x8xf32>
    %264 = vector.extract_strided_slice %257 {offsets = [0, 0], sizes = [16, 8], strides = [1, 1]} : vector<16x32xf32> to vector<16x8xf32>
    %265 = vector.extract_strided_slice %257 {offsets = [0, 8], sizes = [16, 8], strides = [1, 1]} : vector<16x32xf32> to vector<16x8xf32>
    %266 = vector.extract_strided_slice %257 {offsets = [0, 16], sizes = [16, 8], strides = [1, 1]} : vector<16x32xf32> to vector<16x8xf32>
    %267 = vector.extract_strided_slice %257 {offsets = [0, 24], sizes = [16, 8], strides = [1, 1]} : vector<16x32xf32> to vector<16x8xf32>
    %268 = tpu.concatenate %264, %265, %266, %267 in 0 : vector<16x8xf32>, vector<16x8xf32>, vector<16x8xf32>, vector<16x8xf32> -> vector<64x8xf32>
    %269 = vector.extract_strided_slice %258 {offsets = [0, 0], sizes = [16, 8], strides = [1, 1]} : vector<16x32xf32> to vector<16x8xf32>
    %270 = vector.extract_strided_slice %258 {offsets = [0, 8], sizes = [16, 8], strides = [1, 1]} : vector<16x32xf32> to vector<16x8xf32>
    %271 = vector.extract_strided_slice %258 {offsets = [0, 16], sizes = [16, 8], strides = [1, 1]} : vector<16x32xf32> to vector<16x8xf32>
    %272 = vector.extract_strided_slice %258 {offsets = [0, 24], sizes = [16, 8], strides = [1, 1]} : vector<16x32xf32> to vector<16x8xf32>
    %273 = tpu.concatenate %269, %270, %271, %272 in 0 : vector<16x8xf32>, vector<16x8xf32>, vector<16x8xf32>, vector<16x8xf32> -> vector<64x8xf32>
    %274 = arith.truncf %263 : vector<64x8xf32> to vector<64x8xbf16>
    %275 = arith.truncf %268 : vector<64x8xf32> to vector<64x8xbf16>
    %cst_76 = arith.constant dense<0.000000e+00> : vector<64x64xf32>
    %276 = tpu.matmul %274, %275, %cst_76 {dimension_numbers = #tpu.dot_dimension_numbers<[1], [1], [0], [0], [0, 0, 1, 0], [], []>} : vector<64x8xbf16>, vector<64x8xbf16>, vector<64x64xf32> -> vector<64x64xf32>
    %277 = arith.addf %276, %6 : vector<64x64xf32>
    %cst_77 = arith.constant dense<0xFF800000> : vector<64xf32>
    %278 = vector.multi_reduction <maximumf>, %277, %cst_77 [1] : vector<64x64xf32> to vector<64xf32>
    %279 = vector.shape_cast %278 : vector<64xf32> to vector<64x1xf32>
    %280 = vector.broadcast %279 : vector<64x1xf32> to vector<64x64xf32>
    %281 = arith.subf %277, %280 : vector<64x64xf32>
    %282 = math.exp %281 : vector<64x64xf32>
    %cst_78 = arith.constant dense<0.000000e+00> : vector<64xf32>
    %283 = vector.multi_reduction <add>, %282, %cst_78 [1] : vector<64x64xf32> to vector<64xf32>
    %284 = vector.shape_cast %283 : vector<64xf32> to vector<64x1xf32>
    %285 = tpu.reciprocal %284 {approx = true} : vector<64x1xf32> -> vector<64x1xf32>
    %286 = vector.broadcast %285 : vector<64x1xf32> to vector<64x64xf32>
    %287 = arith.mulf %282, %286 : vector<64x64xf32>
    %288 = arith.truncf %287 : vector<64x64xf32> to vector<64x64xbf16>
    %289 = arith.truncf %273 : vector<64x8xf32> to vector<64x8xbf16>
    %cst_79 = arith.constant dense<0.000000e+00> : vector<64x8xf32>
    %290 = tpu.matmul %288, %289, %cst_79 {dimension_numbers = #tpu.dot_dimension_numbers<[1], [0], [0], [1], [0, 0, 1, 1], [], []>} : vector<64x64xbf16>, vector<64x8xbf16>, vector<64x8xf32> -> vector<64x8xf32>
    %291 = vector.extract_strided_slice %290 {offsets = [0, 0], sizes = [16, 8], strides = [1, 1]} : vector<64x8xf32> to vector<16x8xf32>
    %292 = vector.extract_strided_slice %290 {offsets = [16, 0], sizes = [16, 8], strides = [1, 1]} : vector<64x8xf32> to vector<16x8xf32>
    %293 = vector.extract_strided_slice %290 {offsets = [32, 0], sizes = [16, 8], strides = [1, 1]} : vector<64x8xf32> to vector<16x8xf32>
    %294 = vector.extract_strided_slice %290 {offsets = [48, 0], sizes = [16, 8], strides = [1, 1]} : vector<64x8xf32> to vector<16x8xf32>
    %295 = tpu.concatenate %291, %292, %293, %294 in 1 : vector<16x8xf32>, vector<16x8xf32>, vector<16x8xf32>, vector<16x8xf32> -> vector<16x32xf32>
    %296 = arith.truncf %295 : vector<16x32xf32> to vector<16x32xbf16>
    %297 = arith.truncf %240 : vector<32x32xf32> to vector<32x32xbf16>
    %cst_80 = arith.constant dense<0.000000e+00> : vector<16x32xf32>
    %298 = tpu.matmul %296, %297, %cst_80 {dimension_numbers = #tpu.dot_dimension_numbers<[1], [0], [0], [1], [0, 0, 1, 1], [], []>} : vector<16x32xbf16>, vector<32x32xbf16>, vector<16x32xf32> -> vector<16x32xf32>
    %299 = arith.addf %237, %298 : vector<16x32xf32>
    %c168 = arith.constant 168 : index
    %c0_81 = arith.constant 0 : index
    %300 = vector.load %arg2[%c168, %c0_81] : memref<672x32xf32, #tpu.memory_space<vmem>>, vector<1x32xf32>
    %c0_82 = arith.constant 0 : index
    %c512 = arith.constant 512 : index
    %301 = vector.load %arg3[%c0_82, %c512] : memref<32x1664xf32, #tpu.memory_space<vmem>>, vector<32x32xf32>
    %c0_83 = arith.constant 0 : index
    %c640 = arith.constant 640 : index
    %302 = vector.load %arg3[%c0_83, %c640] : memref<32x1664xf32, #tpu.memory_space<vmem>>, vector<32x64xf32>
    %c352 = arith.constant 352 : index
    %c0_84 = arith.constant 0 : index
    %303 = vector.load %arg2[%c352, %c0_84] : memref<672x32xf32, #tpu.memory_space<vmem>>, vector<32x32xf32>
    %304 = arith.mulf %299, %299 : vector<16x32xf32>
    %cst_85 = arith.constant dense<0.000000e+00> : vector<16xf32>
    %305 = vector.multi_reduction <add>, %304, %cst_85 [1] : vector<16x32xf32> to vector<16xf32>
    %306 = vector.shape_cast %305 : vector<16xf32> to vector<16x1xf32>
    %cst_86 = arith.constant 3.200000e+01 : f32
    %307 = vector.broadcast %cst_86 : f32 to vector<16x1xf32>
    %308 = arith.divf %306, %307 : vector<16x1xf32>
    %cst_87 = arith.constant 9.99999997E-7 : f32
    %309 = vector.broadcast %cst_87 : f32 to vector<16x1xf32>
    %310 = arith.addf %308, %309 : vector<16x1xf32>
    %311 = math.rsqrt %310 : vector<16x1xf32>
    %312 = vector.broadcast %311 : vector<16x1xf32> to vector<16x32xf32>
    %313 = arith.mulf %299, %312 : vector<16x32xf32>
    %314 = vector.broadcast %300 : vector<1x32xf32> to vector<16x32xf32>
    %315 = arith.mulf %313, %314 : vector<16x32xf32>
    %316 = arith.truncf %315 : vector<16x32xf32> to vector<16x32xbf16>
    %317 = arith.truncf %301 : vector<32x32xf32> to vector<32x32xbf16>
    %cst_88 = arith.constant dense<0.000000e+00> : vector<16x32xf32>
    %318 = tpu.matmul %316, %317, %cst_88 {dimension_numbers = #tpu.dot_dimension_numbers<[1], [0], [0], [1], [0, 0, 1, 1], [], []>} : vector<16x32xbf16>, vector<32x32xbf16>, vector<16x32xf32> -> vector<16x32xf32>
    %319 = arith.truncf %229 : vector<16x32xf32> to vector<16x32xbf16>
    %320 = arith.truncf %302 : vector<32x64xf32> to vector<32x64xbf16>
    %cst_89 = arith.constant dense<0.000000e+00> : vector<16x64xf32>
    %321 = tpu.matmul %319, %320, %cst_89 {dimension_numbers = #tpu.dot_dimension_numbers<[1], [0], [0], [1], [0, 0, 1, 1], [], []>} : vector<16x32xbf16>, vector<32x64xbf16>, vector<16x64xf32> -> vector<16x64xf32>
    %322 = vector.extract_strided_slice %321 {offsets = [0, 0], sizes = [16, 32], strides = [1, 1]} : vector<16x64xf32> to vector<16x32xf32>
    %323 = vector.extract_strided_slice %321 {offsets = [0, 32], sizes = [16, 32], strides = [1, 1]} : vector<16x64xf32> to vector<16x32xf32>
    %324 = vector.extract_strided_slice %318 {offsets = [0, 0], sizes = [16, 8], strides = [1, 1]} : vector<16x32xf32> to vector<16x8xf32>
    %325 = vector.extract_strided_slice %318 {offsets = [0, 8], sizes = [16, 8], strides = [1, 1]} : vector<16x32xf32> to vector<16x8xf32>
    %326 = vector.extract_strided_slice %318 {offsets = [0, 16], sizes = [16, 8], strides = [1, 1]} : vector<16x32xf32> to vector<16x8xf32>
    %327 = vector.extract_strided_slice %318 {offsets = [0, 24], sizes = [16, 8], strides = [1, 1]} : vector<16x32xf32> to vector<16x8xf32>
    %328 = tpu.concatenate %324, %325, %326, %327 in 0 : vector<16x8xf32>, vector<16x8xf32>, vector<16x8xf32>, vector<16x8xf32> -> vector<64x8xf32>
    %329 = vector.extract_strided_slice %322 {offsets = [0, 0], sizes = [16, 8], strides = [1, 1]} : vector<16x32xf32> to vector<16x8xf32>
    %330 = vector.extract_strided_slice %322 {offsets = [0, 8], sizes = [16, 8], strides = [1, 1]} : vector<16x32xf32> to vector<16x8xf32>
    %331 = vector.extract_strided_slice %322 {offsets = [0, 16], sizes = [16, 8], strides = [1, 1]} : vector<16x32xf32> to vector<16x8xf32>
    %332 = vector.extract_strided_slice %322 {offsets = [0, 24], sizes = [16, 8], strides = [1, 1]} : vector<16x32xf32> to vector<16x8xf32>
    %333 = tpu.concatenate %329, %330, %331, %332 in 0 : vector<16x8xf32>, vector<16x8xf32>, vector<16x8xf32>, vector<16x8xf32> -> vector<64x8xf32>
    %334 = vector.extract_strided_slice %323 {offsets = [0, 0], sizes = [16, 8], strides = [1, 1]} : vector<16x32xf32> to vector<16x8xf32>
    %335 = vector.extract_strided_slice %323 {offsets = [0, 8], sizes = [16, 8], strides = [1, 1]} : vector<16x32xf32> to vector<16x8xf32>
    %336 = vector.extract_strided_slice %323 {offsets = [0, 16], sizes = [16, 8], strides = [1, 1]} : vector<16x32xf32> to vector<16x8xf32>
    %337 = vector.extract_strided_slice %323 {offsets = [0, 24], sizes = [16, 8], strides = [1, 1]} : vector<16x32xf32> to vector<16x8xf32>
    %338 = tpu.concatenate %334, %335, %336, %337 in 0 : vector<16x8xf32>, vector<16x8xf32>, vector<16x8xf32>, vector<16x8xf32> -> vector<64x8xf32>
    %339 = arith.truncf %328 : vector<64x8xf32> to vector<64x8xbf16>
    %340 = arith.truncf %333 : vector<64x8xf32> to vector<64x8xbf16>
    %cst_90 = arith.constant dense<0.000000e+00> : vector<64x64xf32>
    %341 = tpu.matmul %339, %340, %cst_90 {dimension_numbers = #tpu.dot_dimension_numbers<[1], [1], [0], [0], [0, 0, 1, 0], [], []>} : vector<64x8xbf16>, vector<64x8xbf16>, vector<64x64xf32> -> vector<64x64xf32>
    %342 = arith.addf %341, %8 : vector<64x64xf32>
    %cst_91 = arith.constant dense<0xFF800000> : vector<64xf32>
    %343 = vector.multi_reduction <maximumf>, %342, %cst_91 [1] : vector<64x64xf32> to vector<64xf32>
    %344 = vector.shape_cast %343 : vector<64xf32> to vector<64x1xf32>
    %345 = vector.broadcast %344 : vector<64x1xf32> to vector<64x64xf32>
    %346 = arith.subf %342, %345 : vector<64x64xf32>
    %347 = math.exp %346 : vector<64x64xf32>
    %cst_92 = arith.constant dense<0.000000e+00> : vector<64xf32>
    %348 = vector.multi_reduction <add>, %347, %cst_92 [1] : vector<64x64xf32> to vector<64xf32>
    %349 = vector.shape_cast %348 : vector<64xf32> to vector<64x1xf32>
    %350 = tpu.reciprocal %349 {approx = true} : vector<64x1xf32> -> vector<64x1xf32>
    %351 = vector.broadcast %350 : vector<64x1xf32> to vector<64x64xf32>
    %352 = arith.mulf %347, %351 : vector<64x64xf32>
    %353 = arith.truncf %352 : vector<64x64xf32> to vector<64x64xbf16>
    %354 = arith.truncf %338 : vector<64x8xf32> to vector<64x8xbf16>
    %cst_93 = arith.constant dense<0.000000e+00> : vector<64x8xf32>
    %355 = tpu.matmul %353, %354, %cst_93 {dimension_numbers = #tpu.dot_dimension_numbers<[1], [0], [0], [1], [0, 0, 1, 1], [], []>} : vector<64x64xbf16>, vector<64x8xbf16>, vector<64x8xf32> -> vector<64x8xf32>
    %356 = vector.extract_strided_slice %355 {offsets = [0, 0], sizes = [16, 8], strides = [1, 1]} : vector<64x8xf32> to vector<16x8xf32>
    %357 = vector.extract_strided_slice %355 {offsets = [16, 0], sizes = [16, 8], strides = [1, 1]} : vector<64x8xf32> to vector<16x8xf32>
    %358 = vector.extract_strided_slice %355 {offsets = [32, 0], sizes = [16, 8], strides = [1, 1]} : vector<64x8xf32> to vector<16x8xf32>
    %359 = vector.extract_strided_slice %355 {offsets = [48, 0], sizes = [16, 8], strides = [1, 1]} : vector<64x8xf32> to vector<16x8xf32>
    %360 = tpu.concatenate %356, %357, %358, %359 in 1 : vector<16x8xf32>, vector<16x8xf32>, vector<16x8xf32>, vector<16x8xf32> -> vector<16x32xf32>
    %361 = arith.truncf %360 : vector<16x32xf32> to vector<16x32xbf16>
    %362 = arith.truncf %303 : vector<32x32xf32> to vector<32x32xbf16>
    %cst_94 = arith.constant dense<0.000000e+00> : vector<16x32xf32>
    %363 = tpu.matmul %361, %362, %cst_94 {dimension_numbers = #tpu.dot_dimension_numbers<[1], [0], [0], [1], [0, 0, 1, 1], [], []>} : vector<16x32xbf16>, vector<32x32xbf16>, vector<16x32xf32> -> vector<16x32xf32>
    %364 = arith.addf %299, %363 : vector<16x32xf32>
    %c176 = arith.constant 176 : index
    %c0_95 = arith.constant 0 : index
    %365 = vector.load %arg2[%c176, %c0_95] : memref<672x32xf32, #tpu.memory_space<vmem>>, vector<1x32xf32>
    %c0_96 = arith.constant 0 : index
    %c768 = arith.constant 768 : index
    %366 = vector.load %arg3[%c0_96, %c768] : memref<32x1664xf32, #tpu.memory_space<vmem>>, vector<32x128xf32>
    %c384_97 = arith.constant 384 : index
    %c0_98 = arith.constant 0 : index
    %367 = vector.load %arg2[%c384_97, %c0_98] : memref<672x32xf32, #tpu.memory_space<vmem>>, vector<64x32xf32>
    %368 = arith.mulf %364, %364 : vector<16x32xf32>
    %cst_99 = arith.constant dense<0.000000e+00> : vector<16xf32>
    %369 = vector.multi_reduction <add>, %368, %cst_99 [1] : vector<16x32xf32> to vector<16xf32>
    %370 = vector.shape_cast %369 : vector<16xf32> to vector<16x1xf32>
    %cst_100 = arith.constant 3.200000e+01 : f32
    %371 = vector.broadcast %cst_100 : f32 to vector<16x1xf32>
    %372 = arith.divf %370, %371 : vector<16x1xf32>
    %cst_101 = arith.constant 9.99999997E-7 : f32
    %373 = vector.broadcast %cst_101 : f32 to vector<16x1xf32>
    %374 = arith.addf %372, %373 : vector<16x1xf32>
    %375 = math.rsqrt %374 : vector<16x1xf32>
    %376 = vector.broadcast %375 : vector<16x1xf32> to vector<16x32xf32>
    %377 = arith.mulf %364, %376 : vector<16x32xf32>
    %378 = vector.broadcast %365 : vector<1x32xf32> to vector<16x32xf32>
    %379 = arith.mulf %377, %378 : vector<16x32xf32>
    %380 = arith.truncf %379 : vector<16x32xf32> to vector<16x32xbf16>
    %381 = arith.truncf %366 : vector<32x128xf32> to vector<32x128xbf16>
    %cst_102 = arith.constant dense<0.000000e+00> : vector<16x128xf32>
    %382 = tpu.matmul %380, %381, %cst_102 {dimension_numbers = #tpu.dot_dimension_numbers<[1], [0], [0], [1], [0, 0, 1, 1], [], []>} : vector<16x32xbf16>, vector<32x128xbf16>, vector<16x128xf32> -> vector<16x128xf32>
    %383 = vector.extract_strided_slice %382 {offsets = [0, 0], sizes = [16, 64], strides = [1, 1]} : vector<16x128xf32> to vector<16x64xf32>
    %384 = arith.mulf %383, %383 : vector<16x64xf32>
    %385 = arith.mulf %383, %384 : vector<16x64xf32>
    %cst_103 = arith.constant 4.471500e-02 : f32
    %386 = vector.broadcast %cst_103 : f32 to vector<16x64xf32>
    %387 = arith.mulf %386, %385 : vector<16x64xf32>
    %388 = arith.addf %383, %387 : vector<16x64xf32>
    %cst_104 = arith.constant 0.797884583 : f32
    %389 = vector.broadcast %cst_104 : f32 to vector<16x64xf32>
    %390 = arith.mulf %389, %388 : vector<16x64xf32>
    %391 = math.tanh %390 : vector<16x64xf32>
    %cst_105 = arith.constant 1.000000e+00 : f32
    %392 = vector.broadcast %cst_105 : f32 to vector<16x64xf32>
    %393 = arith.addf %392, %391 : vector<16x64xf32>
    %cst_106 = arith.constant 5.000000e-01 : f32
    %394 = vector.broadcast %cst_106 : f32 to vector<16x64xf32>
    %395 = arith.mulf %394, %393 : vector<16x64xf32>
    %396 = arith.mulf %383, %395 : vector<16x64xf32>
    %397 = vector.extract_strided_slice %382 {offsets = [0, 64], sizes = [16, 64], strides = [1, 1]} : vector<16x128xf32> to vector<16x64xf32>
    %398 = arith.mulf %396, %397 : vector<16x64xf32>
    %399 = arith.truncf %398 : vector<16x64xf32> to vector<16x64xbf16>
    %400 = arith.truncf %367 : vector<64x32xf32> to vector<64x32xbf16>
    %cst_107 = arith.constant dense<0.000000e+00> : vector<16x32xf32>
    %401 = tpu.matmul %399, %400, %cst_107 {dimension_numbers = #tpu.dot_dimension_numbers<[1], [0], [0], [1], [0, 0, 1, 1], [], []>} : vector<16x64xbf16>, vector<64x32xbf16>, vector<16x32xf32> -> vector<16x32xf32>
    %402 = arith.addf %364, %401 : vector<16x32xf32>
    %c200 = arith.constant 200 : index
    %c0_108 = arith.constant 0 : index
    %403 = vector.load %arg2[%c200, %c0_108] : memref<672x32xf32, #tpu.memory_space<vmem>>, vector<1x32xf32>
    %c0_109 = arith.constant 0 : index
    %c1152 = arith.constant 1152 : index
    %404 = vector.load %arg3[%c0_109, %c1152] : memref<32x1664xf32, #tpu.memory_space<vmem>>, vector<32x96xf32>
    %c544 = arith.constant 544 : index
    %c0_110 = arith.constant 0 : index
    %405 = vector.load %arg2[%c544, %c0_110] : memref<672x32xf32, #tpu.memory_space<vmem>>, vector<32x32xf32>
    %406 = arith.mulf %402, %402 : vector<16x32xf32>
    %cst_111 = arith.constant dense<0.000000e+00> : vector<16xf32>
    %407 = vector.multi_reduction <add>, %406, %cst_111 [1] : vector<16x32xf32> to vector<16xf32>
    %408 = vector.shape_cast %407 : vector<16xf32> to vector<16x1xf32>
    %cst_112 = arith.constant 3.200000e+01 : f32
    %409 = vector.broadcast %cst_112 : f32 to vector<16x1xf32>
    %410 = arith.divf %408, %409 : vector<16x1xf32>
    %cst_113 = arith.constant 9.99999997E-7 : f32
    %411 = vector.broadcast %cst_113 : f32 to vector<16x1xf32>
    %412 = arith.addf %410, %411 : vector<16x1xf32>
    %413 = math.rsqrt %412 : vector<16x1xf32>
    %414 = vector.broadcast %413 : vector<16x1xf32> to vector<16x32xf32>
    %415 = arith.mulf %402, %414 : vector<16x32xf32>
    %416 = vector.broadcast %403 : vector<1x32xf32> to vector<16x32xf32>
    %417 = arith.mulf %415, %416 : vector<16x32xf32>
    %418 = arith.truncf %417 : vector<16x32xf32> to vector<16x32xbf16>
    %419 = arith.truncf %404 : vector<32x96xf32> to vector<32x96xbf16>
    %cst_114 = arith.constant dense<0.000000e+00> : vector<16x96xf32>
    %420 = tpu.matmul %418, %419, %cst_114 {dimension_numbers = #tpu.dot_dimension_numbers<[1], [0], [0], [1], [0, 0, 1, 1], [], []>} : vector<16x32xbf16>, vector<32x96xbf16>, vector<16x96xf32> -> vector<16x96xf32>
    %421 = vector.extract_strided_slice %420 {offsets = [0, 0], sizes = [16, 32], strides = [1, 1]} : vector<16x96xf32> to vector<16x32xf32>
    %422 = vector.extract_strided_slice %420 {offsets = [0, 32], sizes = [16, 32], strides = [1, 1]} : vector<16x96xf32> to vector<16x32xf32>
    %423 = vector.extract_strided_slice %420 {offsets = [0, 64], sizes = [16, 32], strides = [1, 1]} : vector<16x96xf32> to vector<16x32xf32>
    %424 = vector.extract_strided_slice %421 {offsets = [0, 0], sizes = [16, 8], strides = [1, 1]} : vector<16x32xf32> to vector<16x8xf32>
    %425 = vector.extract_strided_slice %421 {offsets = [0, 8], sizes = [16, 8], strides = [1, 1]} : vector<16x32xf32> to vector<16x8xf32>
    %426 = vector.extract_strided_slice %421 {offsets = [0, 16], sizes = [16, 8], strides = [1, 1]} : vector<16x32xf32> to vector<16x8xf32>
    %427 = vector.extract_strided_slice %421 {offsets = [0, 24], sizes = [16, 8], strides = [1, 1]} : vector<16x32xf32> to vector<16x8xf32>
    %428 = tpu.concatenate %424, %425, %426, %427 in 0 : vector<16x8xf32>, vector<16x8xf32>, vector<16x8xf32>, vector<16x8xf32> -> vector<64x8xf32>
    %429 = vector.extract_strided_slice %422 {offsets = [0, 0], sizes = [16, 8], strides = [1, 1]} : vector<16x32xf32> to vector<16x8xf32>
    %430 = vector.extract_strided_slice %422 {offsets = [0, 8], sizes = [16, 8], strides = [1, 1]} : vector<16x32xf32> to vector<16x8xf32>
    %431 = vector.extract_strided_slice %422 {offsets = [0, 16], sizes = [16, 8], strides = [1, 1]} : vector<16x32xf32> to vector<16x8xf32>
    %432 = vector.extract_strided_slice %422 {offsets = [0, 24], sizes = [16, 8], strides = [1, 1]} : vector<16x32xf32> to vector<16x8xf32>
    %433 = tpu.concatenate %429, %430, %431, %432 in 0 : vector<16x8xf32>, vector<16x8xf32>, vector<16x8xf32>, vector<16x8xf32> -> vector<64x8xf32>
    %434 = vector.extract_strided_slice %423 {offsets = [0, 0], sizes = [16, 8], strides = [1, 1]} : vector<16x32xf32> to vector<16x8xf32>
    %435 = vector.extract_strided_slice %423 {offsets = [0, 8], sizes = [16, 8], strides = [1, 1]} : vector<16x32xf32> to vector<16x8xf32>
    %436 = vector.extract_strided_slice %423 {offsets = [0, 16], sizes = [16, 8], strides = [1, 1]} : vector<16x32xf32> to vector<16x8xf32>
    %437 = vector.extract_strided_slice %423 {offsets = [0, 24], sizes = [16, 8], strides = [1, 1]} : vector<16x32xf32> to vector<16x8xf32>
    %438 = tpu.concatenate %434, %435, %436, %437 in 0 : vector<16x8xf32>, vector<16x8xf32>, vector<16x8xf32>, vector<16x8xf32> -> vector<64x8xf32>
    %439 = arith.truncf %428 : vector<64x8xf32> to vector<64x8xbf16>
    %440 = arith.truncf %433 : vector<64x8xf32> to vector<64x8xbf16>
    %cst_115 = arith.constant dense<0.000000e+00> : vector<64x64xf32>
    %441 = tpu.matmul %439, %440, %cst_115 {dimension_numbers = #tpu.dot_dimension_numbers<[1], [1], [0], [0], [0, 0, 1, 0], [], []>} : vector<64x8xbf16>, vector<64x8xbf16>, vector<64x64xf32> -> vector<64x64xf32>
    %442 = arith.addf %441, %6 : vector<64x64xf32>
    %cst_116 = arith.constant dense<0xFF800000> : vector<64xf32>
    %443 = vector.multi_reduction <maximumf>, %442, %cst_116 [1] : vector<64x64xf32> to vector<64xf32>
    %444 = vector.shape_cast %443 : vector<64xf32> to vector<64x1xf32>
    %445 = vector.broadcast %444 : vector<64x1xf32> to vector<64x64xf32>
    %446 = arith.subf %442, %445 : vector<64x64xf32>
    %447 = math.exp %446 : vector<64x64xf32>
    %cst_117 = arith.constant dense<0.000000e+00> : vector<64xf32>
    %448 = vector.multi_reduction <add>, %447, %cst_117 [1] : vector<64x64xf32> to vector<64xf32>
    %449 = vector.shape_cast %448 : vector<64xf32> to vector<64x1xf32>
    %450 = tpu.reciprocal %449 {approx = true} : vector<64x1xf32> -> vector<64x1xf32>
    %451 = vector.broadcast %450 : vector<64x1xf32> to vector<64x64xf32>
    %452 = arith.mulf %447, %451 : vector<64x64xf32>
    %453 = arith.truncf %452 : vector<64x64xf32> to vector<64x64xbf16>
    %454 = arith.truncf %438 : vector<64x8xf32> to vector<64x8xbf16>
    %cst_118 = arith.constant dense<0.000000e+00> : vector<64x8xf32>
    %455 = tpu.matmul %453, %454, %cst_118 {dimension_numbers = #tpu.dot_dimension_numbers<[1], [0], [0], [1], [0, 0, 1, 1], [], []>} : vector<64x64xbf16>, vector<64x8xbf16>, vector<64x8xf32> -> vector<64x8xf32>
    %456 = vector.extract_strided_slice %455 {offsets = [0, 0], sizes = [16, 8], strides = [1, 1]} : vector<64x8xf32> to vector<16x8xf32>
    %457 = vector.extract_strided_slice %455 {offsets = [16, 0], sizes = [16, 8], strides = [1, 1]} : vector<64x8xf32> to vector<16x8xf32>
    %458 = vector.extract_strided_slice %455 {offsets = [32, 0], sizes = [16, 8], strides = [1, 1]} : vector<64x8xf32> to vector<16x8xf32>
    %459 = vector.extract_strided_slice %455 {offsets = [48, 0], sizes = [16, 8], strides = [1, 1]} : vector<64x8xf32> to vector<16x8xf32>
    %460 = tpu.concatenate %456, %457, %458, %459 in 1 : vector<16x8xf32>, vector<16x8xf32>, vector<16x8xf32>, vector<16x8xf32> -> vector<16x32xf32>
    %461 = arith.truncf %460 : vector<16x32xf32> to vector<16x32xbf16>
    %462 = arith.truncf %405 : vector<32x32xf32> to vector<32x32xbf16>
    %cst_119 = arith.constant dense<0.000000e+00> : vector<16x32xf32>
    %463 = tpu.matmul %461, %462, %cst_119 {dimension_numbers = #tpu.dot_dimension_numbers<[1], [0], [0], [1], [0, 0, 1, 1], [], []>} : vector<16x32xbf16>, vector<32x32xbf16>, vector<16x32xf32> -> vector<16x32xf32>
    %464 = arith.addf %402, %463 : vector<16x32xf32>
    %c208 = arith.constant 208 : index
    %c0_120 = arith.constant 0 : index
    %465 = vector.load %arg2[%c208, %c0_120] : memref<672x32xf32, #tpu.memory_space<vmem>>, vector<1x32xf32>
    %c0_121 = arith.constant 0 : index
    %c1280 = arith.constant 1280 : index
    %466 = vector.load %arg3[%c0_121, %c1280] : memref<32x1664xf32, #tpu.memory_space<vmem>>, vector<32x32xf32>
    %c0_122 = arith.constant 0 : index
    %c1408 = arith.constant 1408 : index
    %467 = vector.load %arg3[%c0_122, %c1408] : memref<32x1664xf32, #tpu.memory_space<vmem>>, vector<32x64xf32>
    %c576 = arith.constant 576 : index
    %c0_123 = arith.constant 0 : index
    %468 = vector.load %arg2[%c576, %c0_123] : memref<672x32xf32, #tpu.memory_space<vmem>>, vector<32x32xf32>
    %469 = arith.mulf %464, %464 : vector<16x32xf32>
    %cst_124 = arith.constant dense<0.000000e+00> : vector<16xf32>
    %470 = vector.multi_reduction <add>, %469, %cst_124 [1] : vector<16x32xf32> to vector<16xf32>
    %471 = vector.shape_cast %470 : vector<16xf32> to vector<16x1xf32>
    %cst_125 = arith.constant 3.200000e+01 : f32
    %472 = vector.broadcast %cst_125 : f32 to vector<16x1xf32>
    %473 = arith.divf %471, %472 : vector<16x1xf32>
    %cst_126 = arith.constant 9.99999997E-7 : f32
    %474 = vector.broadcast %cst_126 : f32 to vector<16x1xf32>
    %475 = arith.addf %473, %474 : vector<16x1xf32>
    %476 = math.rsqrt %475 : vector<16x1xf32>
    %477 = vector.broadcast %476 : vector<16x1xf32> to vector<16x32xf32>
    %478 = arith.mulf %464, %477 : vector<16x32xf32>
    %479 = vector.broadcast %465 : vector<1x32xf32> to vector<16x32xf32>
    %480 = arith.mulf %478, %479 : vector<16x32xf32>
    %481 = arith.truncf %480 : vector<16x32xf32> to vector<16x32xbf16>
    %482 = arith.truncf %466 : vector<32x32xf32> to vector<32x32xbf16>
    %cst_127 = arith.constant dense<0.000000e+00> : vector<16x32xf32>
    %483 = tpu.matmul %481, %482, %cst_127 {dimension_numbers = #tpu.dot_dimension_numbers<[1], [0], [0], [1], [0, 0, 1, 1], [], []>} : vector<16x32xbf16>, vector<32x32xbf16>, vector<16x32xf32> -> vector<16x32xf32>
    %484 = arith.truncf %229 : vector<16x32xf32> to vector<16x32xbf16>
    %485 = arith.truncf %467 : vector<32x64xf32> to vector<32x64xbf16>
    %cst_128 = arith.constant dense<0.000000e+00> : vector<16x64xf32>
    %486 = tpu.matmul %484, %485, %cst_128 {dimension_numbers = #tpu.dot_dimension_numbers<[1], [0], [0], [1], [0, 0, 1, 1], [], []>} : vector<16x32xbf16>, vector<32x64xbf16>, vector<16x64xf32> -> vector<16x64xf32>
    %487 = vector.extract_strided_slice %486 {offsets = [0, 0], sizes = [16, 32], strides = [1, 1]} : vector<16x64xf32> to vector<16x32xf32>
    %488 = vector.extract_strided_slice %486 {offsets = [0, 32], sizes = [16, 32], strides = [1, 1]} : vector<16x64xf32> to vector<16x32xf32>
    %489 = vector.extract_strided_slice %483 {offsets = [0, 0], sizes = [16, 8], strides = [1, 1]} : vector<16x32xf32> to vector<16x8xf32>
    %490 = vector.extract_strided_slice %483 {offsets = [0, 8], sizes = [16, 8], strides = [1, 1]} : vector<16x32xf32> to vector<16x8xf32>
    %491 = vector.extract_strided_slice %483 {offsets = [0, 16], sizes = [16, 8], strides = [1, 1]} : vector<16x32xf32> to vector<16x8xf32>
    %492 = vector.extract_strided_slice %483 {offsets = [0, 24], sizes = [16, 8], strides = [1, 1]} : vector<16x32xf32> to vector<16x8xf32>
    %493 = tpu.concatenate %489, %490, %491, %492 in 0 : vector<16x8xf32>, vector<16x8xf32>, vector<16x8xf32>, vector<16x8xf32> -> vector<64x8xf32>
    %494 = vector.extract_strided_slice %487 {offsets = [0, 0], sizes = [16, 8], strides = [1, 1]} : vector<16x32xf32> to vector<16x8xf32>
    %495 = vector.extract_strided_slice %487 {offsets = [0, 8], sizes = [16, 8], strides = [1, 1]} : vector<16x32xf32> to vector<16x8xf32>
    %496 = vector.extract_strided_slice %487 {offsets = [0, 16], sizes = [16, 8], strides = [1, 1]} : vector<16x32xf32> to vector<16x8xf32>
    %497 = vector.extract_strided_slice %487 {offsets = [0, 24], sizes = [16, 8], strides = [1, 1]} : vector<16x32xf32> to vector<16x8xf32>
    %498 = tpu.concatenate %494, %495, %496, %497 in 0 : vector<16x8xf32>, vector<16x8xf32>, vector<16x8xf32>, vector<16x8xf32> -> vector<64x8xf32>
    %499 = vector.extract_strided_slice %488 {offsets = [0, 0], sizes = [16, 8], strides = [1, 1]} : vector<16x32xf32> to vector<16x8xf32>
    %500 = vector.extract_strided_slice %488 {offsets = [0, 8], sizes = [16, 8], strides = [1, 1]} : vector<16x32xf32> to vector<16x8xf32>
    %501 = vector.extract_strided_slice %488 {offsets = [0, 16], sizes = [16, 8], strides = [1, 1]} : vector<16x32xf32> to vector<16x8xf32>
    %502 = vector.extract_strided_slice %488 {offsets = [0, 24], sizes = [16, 8], strides = [1, 1]} : vector<16x32xf32> to vector<16x8xf32>
    %503 = tpu.concatenate %499, %500, %501, %502 in 0 : vector<16x8xf32>, vector<16x8xf32>, vector<16x8xf32>, vector<16x8xf32> -> vector<64x8xf32>
    %504 = arith.truncf %493 : vector<64x8xf32> to vector<64x8xbf16>
    %505 = arith.truncf %498 : vector<64x8xf32> to vector<64x8xbf16>
    %cst_129 = arith.constant dense<0.000000e+00> : vector<64x64xf32>
    %506 = tpu.matmul %504, %505, %cst_129 {dimension_numbers = #tpu.dot_dimension_numbers<[1], [1], [0], [0], [0, 0, 1, 0], [], []>} : vector<64x8xbf16>, vector<64x8xbf16>, vector<64x64xf32> -> vector<64x64xf32>
    %507 = arith.addf %506, %8 : vector<64x64xf32>
    %cst_130 = arith.constant dense<0xFF800000> : vector<64xf32>
    %508 = vector.multi_reduction <maximumf>, %507, %cst_130 [1] : vector<64x64xf32> to vector<64xf32>
    %509 = vector.shape_cast %508 : vector<64xf32> to vector<64x1xf32>
    %510 = vector.broadcast %509 : vector<64x1xf32> to vector<64x64xf32>
    %511 = arith.subf %507, %510 : vector<64x64xf32>
    %512 = math.exp %511 : vector<64x64xf32>
    %cst_131 = arith.constant dense<0.000000e+00> : vector<64xf32>
    %513 = vector.multi_reduction <add>, %512, %cst_131 [1] : vector<64x64xf32> to vector<64xf32>
    %514 = vector.shape_cast %513 : vector<64xf32> to vector<64x1xf32>
    %515 = tpu.reciprocal %514 {approx = true} : vector<64x1xf32> -> vector<64x1xf32>
    %516 = vector.broadcast %515 : vector<64x1xf32> to vector<64x64xf32>
    %517 = arith.mulf %512, %516 : vector<64x64xf32>
    %518 = arith.truncf %517 : vector<64x64xf32> to vector<64x64xbf16>
    %519 = arith.truncf %503 : vector<64x8xf32> to vector<64x8xbf16>
    %cst_132 = arith.constant dense<0.000000e+00> : vector<64x8xf32>
    %520 = tpu.matmul %518, %519, %cst_132 {dimension_numbers = #tpu.dot_dimension_numbers<[1], [0], [0], [1], [0, 0, 1, 1], [], []>} : vector<64x64xbf16>, vector<64x8xbf16>, vector<64x8xf32> -> vector<64x8xf32>
    %521 = vector.extract_strided_slice %520 {offsets = [0, 0], sizes = [16, 8], strides = [1, 1]} : vector<64x8xf32> to vector<16x8xf32>
    %522 = vector.extract_strided_slice %520 {offsets = [16, 0], sizes = [16, 8], strides = [1, 1]} : vector<64x8xf32> to vector<16x8xf32>
    %523 = vector.extract_strided_slice %520 {offsets = [32, 0], sizes = [16, 8], strides = [1, 1]} : vector<64x8xf32> to vector<16x8xf32>
    %524 = vector.extract_strided_slice %520 {offsets = [48, 0], sizes = [16, 8], strides = [1, 1]} : vector<64x8xf32> to vector<16x8xf32>
    %525 = tpu.concatenate %521, %522, %523, %524 in 1 : vector<16x8xf32>, vector<16x8xf32>, vector<16x8xf32>, vector<16x8xf32> -> vector<16x32xf32>
    %526 = arith.truncf %525 : vector<16x32xf32> to vector<16x32xbf16>
    %527 = arith.truncf %468 : vector<32x32xf32> to vector<32x32xbf16>
    %cst_133 = arith.constant dense<0.000000e+00> : vector<16x32xf32>
    %528 = tpu.matmul %526, %527, %cst_133 {dimension_numbers = #tpu.dot_dimension_numbers<[1], [0], [0], [1], [0, 0, 1, 1], [], []>} : vector<16x32xbf16>, vector<32x32xbf16>, vector<16x32xf32> -> vector<16x32xf32>
    %529 = arith.addf %464, %528 : vector<16x32xf32>
    %c216 = arith.constant 216 : index
    %c0_134 = arith.constant 0 : index
    %530 = vector.load %arg2[%c216, %c0_134] : memref<672x32xf32, #tpu.memory_space<vmem>>, vector<1x32xf32>
    %c0_135 = arith.constant 0 : index
    %c1536 = arith.constant 1536 : index
    %531 = vector.load %arg3[%c0_135, %c1536] : memref<32x1664xf32, #tpu.memory_space<vmem>>, vector<32x128xf32>
    %c608 = arith.constant 608 : index
    %c0_136 = arith.constant 0 : index
    %532 = vector.load %arg2[%c608, %c0_136] : memref<672x32xf32, #tpu.memory_space<vmem>>, vector<64x32xf32>
    %533 = arith.mulf %529, %529 : vector<16x32xf32>
    %cst_137 = arith.constant dense<0.000000e+00> : vector<16xf32>
    %534 = vector.multi_reduction <add>, %533, %cst_137 [1] : vector<16x32xf32> to vector<16xf32>
    %535 = vector.shape_cast %534 : vector<16xf32> to vector<16x1xf32>
    %cst_138 = arith.constant 3.200000e+01 : f32
    %536 = vector.broadcast %cst_138 : f32 to vector<16x1xf32>
    %537 = arith.divf %535, %536 : vector<16x1xf32>
    %cst_139 = arith.constant 9.99999997E-7 : f32
    %538 = vector.broadcast %cst_139 : f32 to vector<16x1xf32>
    %539 = arith.addf %537, %538 : vector<16x1xf32>
    %540 = math.rsqrt %539 : vector<16x1xf32>
    %541 = vector.broadcast %540 : vector<16x1xf32> to vector<16x32xf32>
    %542 = arith.mulf %529, %541 : vector<16x32xf32>
    %543 = vector.broadcast %530 : vector<1x32xf32> to vector<16x32xf32>
    %544 = arith.mulf %542, %543 : vector<16x32xf32>
    %545 = arith.truncf %544 : vector<16x32xf32> to vector<16x32xbf16>
    %546 = arith.truncf %531 : vector<32x128xf32> to vector<32x128xbf16>
    %cst_140 = arith.constant dense<0.000000e+00> : vector<16x128xf32>
    %547 = tpu.matmul %545, %546, %cst_140 {dimension_numbers = #tpu.dot_dimension_numbers<[1], [0], [0], [1], [0, 0, 1, 1], [], []>} : vector<16x32xbf16>, vector<32x128xbf16>, vector<16x128xf32> -> vector<16x128xf32>
    %548 = vector.extract_strided_slice %547 {offsets = [0, 0], sizes = [16, 64], strides = [1, 1]} : vector<16x128xf32> to vector<16x64xf32>
    %549 = arith.mulf %548, %548 : vector<16x64xf32>
    %550 = arith.mulf %548, %549 : vector<16x64xf32>
    %cst_141 = arith.constant 4.471500e-02 : f32
    %551 = vector.broadcast %cst_141 : f32 to vector<16x64xf32>
    %552 = arith.mulf %551, %550 : vector<16x64xf32>
    %553 = arith.addf %548, %552 : vector<16x64xf32>
    %cst_142 = arith.constant 0.797884583 : f32
    %554 = vector.broadcast %cst_142 : f32 to vector<16x64xf32>
    %555 = arith.mulf %554, %553 : vector<16x64xf32>
    %556 = math.tanh %555 : vector<16x64xf32>
    %cst_143 = arith.constant 1.000000e+00 : f32
    %557 = vector.broadcast %cst_143 : f32 to vector<16x64xf32>
    %558 = arith.addf %557, %556 : vector<16x64xf32>
    %cst_144 = arith.constant 5.000000e-01 : f32
    %559 = vector.broadcast %cst_144 : f32 to vector<16x64xf32>
    %560 = arith.mulf %559, %558 : vector<16x64xf32>
    %561 = arith.mulf %548, %560 : vector<16x64xf32>
    %562 = vector.extract_strided_slice %547 {offsets = [0, 64], sizes = [16, 64], strides = [1, 1]} : vector<16x128xf32> to vector<16x64xf32>
    %563 = arith.mulf %561, %562 : vector<16x64xf32>
    %564 = arith.truncf %563 : vector<16x64xf32> to vector<16x64xbf16>
    %565 = arith.truncf %532 : vector<64x32xf32> to vector<64x32xbf16>
    %cst_145 = arith.constant dense<0.000000e+00> : vector<16x32xf32>
    %566 = tpu.matmul %564, %565, %cst_145 {dimension_numbers = #tpu.dot_dimension_numbers<[1], [0], [0], [1], [0, 0, 1, 1], [], []>} : vector<16x64xbf16>, vector<64x32xbf16>, vector<16x32xf32> -> vector<16x32xf32>
    %567 = arith.addf %529, %566 : vector<16x32xf32>
    %c136 = arith.constant 136 : index
    %c0_146 = arith.constant 0 : index
    %568 = vector.load %arg2[%c136, %c0_146] : memref<672x32xf32, #tpu.memory_space<vmem>>, vector<1x32xf32>
    %569 = arith.mulf %567, %567 : vector<16x32xf32>
    %cst_147 = arith.constant dense<0.000000e+00> : vector<16xf32>
    %570 = vector.multi_reduction <add>, %569, %cst_147 [1] : vector<16x32xf32> to vector<16xf32>
    %571 = vector.shape_cast %570 : vector<16xf32> to vector<16x1xf32>
    %cst_148 = arith.constant 3.200000e+01 : f32
    %572 = vector.broadcast %cst_148 : f32 to vector<16x1xf32>
    %573 = arith.divf %571, %572 : vector<16x1xf32>
    %cst_149 = arith.constant 9.99999997E-7 : f32
    %574 = vector.broadcast %cst_149 : f32 to vector<16x1xf32>
    %575 = arith.addf %573, %574 : vector<16x1xf32>
    %576 = math.rsqrt %575 : vector<16x1xf32>
    %577 = vector.broadcast %576 : vector<16x1xf32> to vector<16x32xf32>
    %578 = arith.mulf %567, %577 : vector<16x32xf32>
    %579 = vector.broadcast %568 : vector<1x32xf32> to vector<16x32xf32>
    %580 = arith.mulf %578, %579 : vector<16x32xf32>
    %c0_150 = arith.constant 0 : index
    %c0_151 = arith.constant 0 : index
    %581 = vector.load %arg3[%c0_150, %c0_151] : memref<32x1664xf32, #tpu.memory_space<vmem>>, vector<32x128xf32>
    %582 = arith.truncf %580 : vector<16x32xf32> to vector<16x32xbf16>
    %583 = arith.truncf %581 : vector<32x128xf32> to vector<32x128xbf16>
    %cst_152 = arith.constant dense<0.000000e+00> : vector<16x128xf32>
    %584 = tpu.matmul %582, %583, %cst_152 {dimension_numbers = #tpu.dot_dimension_numbers<[1], [0], [0], [1], [0, 0, 1, 1], [], []>} : vector<16x32xbf16>, vector<32x128xbf16>, vector<16x128xf32> -> vector<16x128xf32>
    %c2_153 = arith.constant 2 : index
    %c0_154 = arith.constant 0 : index
    %c0_155 = arith.constant 0 : index
    %585 = vector.load %arg0[%c2_153, %c0_154, %c0_155] : memref<3x16x1xi32, #tpu.memory_space<vmem>>, vector<1x16x1xi32>
    %586 = vector.shape_cast %585 : vector<1x16x1xi32> to vector<16x1xi32>
    %cst_156 = arith.constant dense<0xFF800000> : vector<16xf32>
    %587 = vector.multi_reduction <maximumf>, %584, %cst_156 [1] : vector<16x128xf32> to vector<16xf32>
    %588 = vector.shape_cast %587 : vector<16xf32> to vector<16x1xf32>
    %589 = vector.broadcast %588 : vector<16x1xf32> to vector<16x128xf32>
    %590 = arith.subf %584, %589 : vector<16x128xf32>
    %591 = math.exp %590 : vector<16x128xf32>
    %cst_157 = arith.constant dense<0.000000e+00> : vector<16xf32>
    %592 = vector.multi_reduction <add>, %591, %cst_157 [1] : vector<16x128xf32> to vector<16xf32>
    %593 = vector.shape_cast %592 : vector<16xf32> to vector<16x1xf32>
    %594 = math.log %593 : vector<16x1xf32>
    %595 = arith.addf %594, %588 : vector<16x1xf32>
    %596 = vector.broadcast %586 : vector<16x1xi32> to vector<16x128xi32>
    %597 = arith.cmpi eq, %0, %596 : vector<16x128xi32>
    %cst_158 = arith.constant 0.000000e+00 : f32
    %598 = vector.broadcast %cst_158 : f32 to vector<16x128xf32>
    %599 = arith.select %597, %584, %598 : vector<16x128xi1>, vector<16x128xf32>
    %cst_159 = arith.constant dense<0.000000e+00> : vector<16xf32>
    %600 = vector.multi_reduction <add>, %599, %cst_159 [1] : vector<16x128xf32> to vector<16xf32>
    %601 = vector.shape_cast %600 : vector<16xf32> to vector<16x1xf32>
    %c-100_i32 = arith.constant -100 : i32
    %602 = vector.broadcast %c-100_i32 : i32 to vector<16x1xi32>
    %603 = arith.cmpi ne, %586, %602 : vector<16x1xi32>
    %604 = arith.extui %603 : vector<16x1xi1> to vector<16x1xi32>
    %605 = arith.sitofp %604 : vector<16x1xi32> to vector<16x1xf32>
    %606 = arith.subf %595, %601 : vector<16x1xf32>
    %607 = arith.mulf %606, %605 : vector<16x1xf32>
    %608 = vector.shape_cast %607 : vector<16x1xf32> to vector<1x16x1xf32>
    %cst_160 = arith.constant dense<0.000000e+00> : vector<1xf32>
    %609 = vector.multi_reduction <add>, %608, %cst_160 [1, 2] : vector<1x16x1xf32> to vector<1xf32>
    %610 = vector.shape_cast %609 : vector<1xf32> to vector<1x1x1xf32>
    %611 = vector.extract %610[0, 0, 0] : f32 from vector<1x1x1xf32>
    %612 = vector.shape_cast %605 : vector<16x1xf32> to vector<1x16x1xf32>
    %cst_161 = arith.constant dense<0.000000e+00> : vector<1xf32>
    %613 = vector.multi_reduction <add>, %612, %cst_161 [1, 2] : vector<1x16x1xf32> to vector<1xf32>
    %614 = vector.shape_cast %613 : vector<1xf32> to vector<1x1x1xf32>
    %615 = vector.extract %614[0, 0, 0] : f32 from vector<1x1x1xf32>
    %cst_162 = arith.constant 1.000000e+00 : f32
    %616 = arith.maximumf %615, %cst_162 : f32
    %617 = arith.divf %611, %616 : f32
    %618 = tpu.iota {dimensions = array<i32: 1>} : vector<1x128xi32>
    %c0_i32 = arith.constant 0 : i32
    %619 = vector.broadcast %c0_i32 : i32 to vector<1x128xi32>
    %620 = arith.cmpi eq, %618, %619 : vector<1x128xi32>
    %cst_163 = arith.constant 0.000000e+00 : f32
    %621 = vector.broadcast %617 : f32 to vector<1x128xf32>
    %622 = vector.broadcast %cst_163 : f32 to vector<1x128xf32>
    %623 = arith.select %620, %621, %622 : vector<1x128xi1>, vector<1x128xf32>
    %c0_164 = arith.constant 0 : index
    %c0_165 = arith.constant 0 : index
    %624 = vector.load %arg4[%c0_164, %c0_165] : memref<1x128xf32, #tpu.memory_space<vmem>>, vector<1x128xf32>
    tpu.vector_store %arg4[%c0_164, %c0_165], %623 {strides = array<i32>} : memref<1x128xf32, #tpu.memory_space<vmem>>, vector<1x128xf32>,
    return
  }
}

</mosaic_0001>

<bundles_post_ra>
// kernel: mt5_loss.1
= control target key start
LH: loop header
LB: loop body
LE: loop exit
PB: predicated region body
PF: predicated region fallthrough
CT: control target
= control target key end

     0   :  { %9 = vsyncpa [#allocation3], 0  ;;  %s6235_s0 = inlined_call_operand.vmem [shape: s32[3,16,1], index: 0, kind: input, shape index: {}]   ;;  %s6236_s1 = inlined_call_operand.hbm [shape: f32[3,64,64], index: 1, kind: input, shape index: {}]   ;;  %s6237_s2 = inlined_call_operand.hbm [shape: f32[672,32], index: 2, kind: input, shape index: {}]   ;;  %s6238_s3 = inlined_call_operand.hbm [shape: f32[32,1664], index: 3, kind: input, shape index: {}]   ;;  %s6239_s4 = inlined_call_operand.hbm [shape: f32[1,128], index: 4, kind: output, shape index: {}]  }
   0x1   :  { %10 = vsyncpa [#allocation6], 0 }
   0x2   :  { %11 = vsyncpa [#allocation4], 0  ;;  %s5326_s15 = smov [#allocation5]   ;;  %s5327_s17 = smov [#allocation2]  }
   0x3   :  { %s31_s16 = sshll.u32 %s5326_s15, 4  ;;  %s19_s18 = sshll.u32 %s5327_s17, 4  ;;  %s32_s16 = int_to_ptr.vmem [resolvable:$true] %s31_s16  ;;  %s20_s18 = int_to_ptr.vmem [resolvable:$true] %s19_s18 }
   0x4   :  { %s5248_s19 = scalar_lea.vmem %s32_s16, 10752  ;;  %p5253_p1 = scmp.lt.s32.totalorder %s32_s16, %s32_s16 }
   0x5   :  { %p5249_p0 = scmp.ne.s32.totalorder %s32_s16, %s5248_s19  ;;  %p5254_p2 = scmp.lt.s32.totalorder %s5248_s19, %s5248_s19 }
   0x7   :  { %p5255_p3 = por %p5254_p2, %p5253_p1 }
   0x9   :  { %p5256_p4 = pnand %p5255_p3, %p5249_p0 }
   0xb   :  { %5259 = shalt.err (!%p5256_p4)
}
   0xc   :  { %s5328_s20 = smov 128   ;;  %s5329_s21 = smov 8  }
   0xd   :  { %37 = dma.hbm_to_vmem [thread:$0]  %s6237_s2, 10752, %s32_s16, [#allocation6], %s5328_s20, %s5328_s20, %s5329_s21  }
   0xe   :  { %s5268_s24 = scalar_lea.vmem %s20_s18, 3072  ;;  %p5273_p6 = scmp.lt.s32.totalorder %s20_s18, %s20_s18 }
   0xf   :  { %p5269_p5 = scmp.ne.s32.totalorder %s20_s18, %s5268_s24  ;;  %p5274_p7 = scmp.lt.s32.totalorder %s5268_s24, %s5268_s24 }
  0x11   :  { %p5275_p8 = por %p5274_p7, %p5273_p6 }
  0x13   :  { %p5276_p9 = pnand %p5275_p8, %p5269_p5 }
  0x15   :  { %5279 = shalt.err (!%p5276_p9)
}
  0x16   :  { %25 = dma.hbm_to_vmem [thread:$0]  %s6236_s1, 3072, %s20_s18, [#allocation3], %s5328_s20, %s5328_s20, %s5329_s21  }
  0x17   :  { %s5330_s27 = smov [#allocation7]  }
  0x18   :  { %s43_s28 = sshll.u32 %s5330_s27, 4  ;;  %s44_s28 = int_to_ptr.vmem [resolvable:$true] %s43_s28 }
  0x19   :  { %s5288_s29 = scalar_lea.vmem %s44_s28, 6656  ;;  %p5293_p11 = scmp.lt.s32.totalorder %s44_s28, %s44_s28 }
  0x1a   :  { %p5289_p10 = scmp.ne.s32.totalorder %s44_s28, %s5288_s29  ;;  %p5294_p12 = scmp.lt.s32.totalorder %s5288_s29, %s5288_s29 }
  0x1c   :  { %p5295_p13 = por %p5294_p12, %p5293_p11 }
  0x1e   :  { %p5296_p0 = pnand %p5295_p13, %p5289_p10 }
  0x20   :  { %5299 = shalt.err (!%p5296_p0)
}
  0x21   :  { %s5331_s2 = smov 1664   ;;  %s5332_s30 = smov 104  }
  0x22   :  { %49 = dma.hbm_to_vmem [thread:$0]  %s6238_s3, 6656, %s44_s28, [#allocation6], %s5331_s2, %s5331_s2, %s5332_s30  }
  0x23   :  { %5320 = dma.done.wait [#allocation3], 3072  }
  0x24   :  { %5321 = vsyncadd [#allocation3], 4294964224 }
  0x25   :  { %5322 = dma.done.wait [#allocation6], 17408  }
  0x26   :  { %5323 = vsyncadd [#allocation6], 4294949888  ;;  %v5333_v0 = vmov 0   ;;  %v5334_v1 = vmov 0.0   ;;  %v112_v2 = vld [vmem:[%s6235_s0] sm:$0xff]  ;;  %v76_v3 = vld [vmem:[#allocation5 + $0x70] sm:$0xff]  ;;  %v60_v28 = vlaneseq }
  0x27   :  { %4746 = vset.pattern.permute.xlu0 %v5333_v0  ;;  %4265 = vmatprep.subr.bf16.mxu0 %v5334_v1  ;;  %v77_v4 = vld [vmem:[#allocation5 + $0x78] sm:$0xff]  ;;  %v74_v5 = vld [vmem:[#allocation5 + $0x60] sm:$0xff]  ;;  %v75_v6 = vld [vmem:[#allocation5 + $0x68] sm:$0xff]  ;;  %vm5335_vm0 = vmmov 0   ;;  %v5336_v32 = vmov 1.0|1.0  }
  0x28   :  { %4285 = vmatprep.subr.bf16.mxu1 %v5334_v1  ;;  %4807 = vset.pattern.permute.xlu1 %v5333_v0  ;;  %v113_v7 = vld [vmem:[%s6235_s0 + $0x8] sm:$0xff]  ;;  %v5390_v8 = vpack.c.bf16 %v77_v4, %v76_v3  ;;  %v5397_v9 = vpack.c.bf16 %v75_v6, %v74_v5  ;;  %v72_v10 = vld [vmem:[#allocation5 + $0x50] sm:$0xff]  ;;  %v73_v11 = vld [vmem:[#allocation5 + $0x58] sm:$0xff]  ;;  %v5425_v30 = vand.u32 127, %v60_v28  ;;  %vm179_vm4 = vcmask 261120   ;;  %s5337_s9 = smov 112  }
  0x29   :  { %115 = vperm.xlu0 %4746, %v112_v2   ;;  %4281 = vmatprep.mubr.msk.bf16.mxu0 %vm5335_vm0, %v5334_v1  ;;  %v5401_v12 = vpack.c.bf16 %v73_v11, %v72_v10  ;;  %v70_v13 = vld [vmem:[#allocation5 + $0x40] sm:$0xff]  ;;  %v71_v14 = vld [vmem:[#allocation5 + $0x48] sm:$0xff]  ;;  %v68_v16 = vld [vmem:[#allocation5 + $0x30] sm:$0xff]  ;;  %vm284_vm5 = vcmask 64512   ;;  %s5338_s10 = smov 120   ;;  %s5339_s11 = smov 96  }
  0x2a   :  { %4289 = vmatprep.mubr.msk.bf16.mxu1 %vm5335_vm0, %v5334_v1  ;;  %4266 = vmatpush3.bf16.msra.mxu0 %v5390_v8  ;;  %v5405_v15 = vpack.c.bf16 %v71_v14, %v70_v13  ;;  %v69_v17 = vld [vmem:[#allocation5 + $0x38] sm:$0xff]  ;;  %v66_v19 = vld [vmem:[#allocation5 + $0x20] sm:$0xff]  ;;  %v67_v20 = vld [vmem:[#allocation5 + $0x28] sm:$0xff]  ;;  %vm374_vm6 = vcmask 523264   ;;  %s5340_s12 = smov 64   ;;  %s5341_s13 = smov 24  }
  0x2b   :  { %4267 = vmatprep.subr.bf16.mxu0 %v5334_v1  ;;  %v5409_v18 = vpack.c.bf16 %v69_v17, %v68_v16  ;;  %v5413_v21 = vpack.c.bf16 %v67_v20, %v66_v19  ;;  %v64_v22 = vld [vmem:[#allocation5 + $0x10] sm:$0xff]  ;;  %v65_v23 = vld [vmem:[#allocation5 + $0x18] sm:$0xff]  ;;  %v62_v25 = vld [vmem:[#allocation5] sm:$0xff]  ;;  %s5342_s14 = smov 16   ;;  %vm582_vm7 = vcmask 130048   ;;  %vm585_vm8 = vcmask 195584  }
  0x2c   :  { %v5417_v24 = vpack.c.bf16 %v65_v23, %v64_v22  ;;  %v63_v26 = vld [vmem:[#allocation5 + $0x8] sm:$0xff]  ;;  %v171_v41 = vld [vmem:[#allocation7 + $0xd8] sm:$0xff]  ;;  %v172_v42 = vld [vmem:[#allocation7 + $0x140] sm:$0xff]  ;;  %s5343_s24 = smov 1.0   ;;  %s5344_s27 = smov [#allocation8]  }
  0x2d   :  { %118 = vperm.xlu0 %4746, %v113_v7   ;;  %v5421_v27 = vpack.c.bf16 %v63_v26, %v62_v25  ;;  %v169_v43 = vld [vmem:[#allocation7 + $0x8] sm:$0xff]  ;;  %v203_v44 = vpack.c.bf16 %v172_v42, %v171_v41  ;;  %v170_v45 = vld [vmem:[#allocation7 + $0x70] sm:$0xff]  ;;  %s3967_s28 = sshll.u32 %s5344_s27, 4  ;;  %s3968_s28 = int_to_ptr.vmem [resolvable:$true] %s3967_s28 }
  0x2e   :  { %4268 = vmatpush3.bf16.msra.mxu0 %v5397_v9  ;;  %v202_v46 = vpack.c.bf16 %v170_v45, %v169_v43  ;;  %v3981_v56 = vld [vmem:[#allocation5 + $0x90] ss:$0 sm:$0xff]  ;;  %v5487_v42 = vld [vmem:[#allocation2 + $0x8] sm:$0xff]  ;;  %v5491_v45 = vld [vmem:[#allocation2 + $0x18] sm:$0xff]  ;;  %s5300_s2 = scalar_lea.vmem %s3968_s28, 16  ;;  %p5305_p2 = scmp.lt.s32.totalorder %s3968_s28, %s3968_s28 }
  0x2f   :  { %4269 = vmatprep.subr.bf16.mxu0 %v5334_v1  ;;  %4286 = vmatpush3.bf16.msra.mxu1 %v203_v44  ;;  %p5301_p1 = scmp.ne.s32.totalorder %s3968_s28, %s5300_s2 }
  0x30   :  { %4287 = vmatprep.subr.bf16.mxu1 %v5334_v1 }
  0x32   :  { %4270 = vmatpush3.bf16.msra.mxu0 %v5401_v12 }
  0x33   :  { %4271 = vmatprep.subr.bf16.mxu0 %v5334_v1  ;;  %4288 = vmatpush3.bf16.msra.mxu1 %v202_v46 }
  0x36   :  { %4272 = vmatpush3.bf16.msra.mxu0 %v5405_v15 }
  0x37   :  { %4273 = vmatprep.subr.bf16.mxu0 %v5334_v1 }
  0x3a   :  { %4274 = vmatpush3.bf16.msra.mxu0 %v5409_v18 }
  0x3b   :  { %4275 = vmatprep.subr.bf16.mxu0 %v5334_v1 }
  0x3e   :  { %4276 = vmatpush3.bf16.msra.mxu0 %v5413_v21 }
  0x3f   :  { %4277 = vmatprep.subr.bf16.mxu0 %v5334_v1 }
  0x42   :  { %4278 = vmatpush3.bf16.msra.mxu0 %v5417_v24 }
  0x43   :  { %4279 = vmatprep.subr.bf16.mxu0 %v5334_v1 }
  0x46   :  { %4280 = vmatpush3.bf16.msra.mxu0 %v5421_v27 }
  0xa4   :  { %v116_v29 = vpop.permute.xlu0 %115 }
  0xa5   :  { %vm120_vm1 = vcmp.eq.s32.totalorder %v5425_v30, %v116_v29 }
  0xa8   :  { %v119_v31 = vpop.permute.xlu0 %118 }
  0xa9   :  { %vm121_vm2 = vcmp.eq.s32.totalorder %v5425_v30, %v119_v31 }
  0xaa   :  { %vm3979_vm3 = vmpackc.low %vm121_vm2, %vm120_vm1  ;;  %vm3957_vm1 = vcmp.eq.s32.totalorder %v5425_v30, 0 }
  0xab   :  { %4282 = vmatmul.mubr.msk.bf16.vlgmr.msra.gmra.mxu0 %vm3979_vm3, %v5336_v32 }
 0x16b   :  { %v5430_v33 = vpop.f32.mrf.mxu0 }
 0x16c   :  { %v177_v34 = vmul.f32 %v5430_v33, %v5430_v33 }
 0x16d   :  { %v4283_v35 = vpop.f32.mrf.mxu0 }
 0x16e   :  { %v180_v36 = vsel %vm179_vm4, %v177_v34, 0.0 }
 0x16f   :  { %181 = vadd.xlane.f32.xlu1 %v180_v36  ;;  %v5435_v37 = vpop.f32.mrf.mxu0  ;;  %v5482_v36 = vld [vmem:[#allocation2] sm:$0xff] }
 0x170   :  { %v178_v38 = vmul.f32 %v5435_v37, %v5435_v37 }
 0x171   :  { %v4284_v39 = vpop.f32.mrf.mxu0 }
 0x172   :  { %v183_v40 = vsel %vm179_vm4, %v178_v38, 0.0  ;;  %v5484_v38 = vld [vmem:[#allocation2 + $0x10] sm:$0xff] }
 0x173   :  { %184 = vadd.xlane.f32.xlu1 %v183_v40 }
 0x1f8   :  { %v182_v47 = vpop.xlane.xlu1 %181 }
 0x1f9   :  { %v187_v48 = vmul.f32 0.03125, %v182_v47 }
 0x1fb   :  { %v189_v49 = vadd.f32 1e-06, %v187_v48 }
 0x1fc   :  { %v185_v50 = vpop.xlane.xlu1 %184 }
 0x1fd   :  { %4958 = vrsqrt.f32 %v189_v49  ;;  %v188_v51 = vmul.f32 0.03125, %v185_v50  ;;  %v5494_v49 = vld [vmem:[#allocation2 + $0x20] sm:$0xff] }
 0x1ff   :  { %v190_v52 = vadd.f32 1e-06, %v188_v51 }
 0x201   :  { %4960 = vrsqrt.f32 %v190_v52 }
 0x20a   :  { %v4959_v53 = vpop.eup %4958 }
 0x20b   :  { %v193_v54 = vmul.f32 %v4959_v53, %v5430_v33  ;;  %v5499_v53 = vld [vmem:[#allocation2 + $0x30] sm:$0xff] }
 0x20d   :  { %v199_v58 = vmul.f32 %v3981_v56, %v193_v54 }
 0x20e   :  { %v4961_v55 = vpop.eup %4960 }
 0x20f   :  { %v194_v57 = vmul.f32 %v4961_v55, %v5435_v37 }
 0x211   :  { %v200_v59 = vmul.f32 %v3981_v56, %v194_v57  ;;  %v5502_v57 = vld [vmem:[#allocation2 + $0x28] sm:$0xff] }
 0x213   :  { %v201_v60 = vpack.c.bf16 %v200_v59, %v199_v58 }
 0x215   :  { %4290 = vmatmul.mubr.msk.bf16.vlgmr.msra.gmra.mxu1 %vm179_vm4, %v201_v60 }
 0x2d5   :  { %v241_v61 = vpop.f32.mrf.mxu1 }
 0x2d7   :  { %v4291_v62 = vpop.f32.mrf.mxu1 }
 0x2d9   :  { %v244_v63 = vpop.f32.mrf.mxu1 }
 0x2da   :  { %v5444_v0 = vpack.c.bf16 %v244_v63, %v241_v61  ;;  %v4752_v2 = vpack.i.bf16 %v244_v63, %v241_v61  ;;  %v5507_v61 = vld [vmem:[#allocation2 + $0x38] sm:$0xff] }
 0x2db   :  { %v4292_v3 = vpop.f32.mrf.mxu1 }
 0x2dc   :  { %4753 = vrot.lane.b32.xlu1 %v4752_v2, %s5337_s9  ;;  %4748 = vrot.lane.b32.xlu0 %v4752_v2, %s5332_s30 }
 0x2dd   :  { %4301 = vmatprep.mubr.msk.bf16.mxu1 %vm284_vm5, %v5444_v0 }
 0x2e0   :  { %4758 = vrot.lane.b32.xlu0 %v4752_v2, %s5338_s10  ;;  %276 = vrot.lane.b32.xlu1 %v5444_v0, %s5339_s11 }
 0x34e   :  { %v4754_v4 = vpop.permute.xlu1 %4753  ;;  %v4749_v5 = vpop.permute.xlu0 %4748 }
 0x34f   :  { %v4751_v6 = vunpack.i.h.bf16 %v4749_v5  ;;  %v4750_v7 = vunpack.i.l.bf16 %v4749_v5  ;;  %v4756_v10 = vunpack.i.h.bf16 %v4754_v4  ;;  %v4755_v11 = vunpack.i.l.bf16 %v4754_v4 }
 0x351   :  { %v5453_v13 = vpack.c.bf16 %v4751_v6, %v4750_v7  ;;  %v5457_v19 = vpack.c.bf16 %v4756_v10, %v4755_v11 }
 0x352   :  { %v4759_v14 = vpop.permute.xlu0 %4758  ;;  %v277_v31 = vpop.permute.xlu1 %276 }
 0x353   :  { %282 = vrot.lane.b32.xlu0 %v5453_v13, %s5339_s11  ;;  %v4761_v16 = vunpack.i.h.bf16 %v4759_v14  ;;  %v4760_v17 = vunpack.i.l.bf16 %v4759_v14  ;;  %v298_v34 = vsel %vm284_vm5, %v277_v31, 0 }
 0x355   :  { %v5461_v20 = vpack.c.bf16 %v4761_v16, %v4760_v17 }
 0x357   :  { %280 = vrot.lane.b32.xlu0 %v5457_v19, %s5339_s11 }
 0x35b   :  { %278 = vrot.lane.b32.xlu0 %v5461_v20, %s5339_s11 }
 0x3c5   :  { %v283_v22 = vpop.permute.xlu0 %282 }
 0x3c6   :  { %4697 = vmatprep.subr.msk.bf16.mxu1 %vm284_vm5, %v283_v22  ;;  %v307_v23 = vsel %vm284_vm5, %v283_v22, 0 }
 0x3c7   :  { %4294 = vmatpush3.bf16.xpose.msra.mxu1 %v307_v23 }
 0x3c9   :  { %v281_v25 = vpop.permute.xlu0 %280 }
 0x3ca   :  { %4698 = vmatprep.subr.msk.bf16.mxu1 %vm284_vm5, %v281_v25  ;;  %v304_v26 = vsel %vm284_vm5, %v281_v25, 0 }
 0x3cd   :  { %v279_v28 = vpop.permute.xlu0 %278 }
 0x3ce   :  { %v301_v29 = vsel %vm284_vm5, %v279_v28, 0 }
 0x3cf   :  { %4296 = vmatpush3.bf16.xpose.msra.mxu1 %v304_v26 }
 0x3d0   :  { %4699 = vmatprep.subr.msk.bf16.mxu1 %vm284_vm5, %v279_v28 }
 0x3d7   :  { %4298 = vmatpush3.bf16.xpose.msra.mxu1 %v301_v29 }
 0x3d8   :  { %4700 = vmatprep.subr.msk.bf16.mxu1 %vm284_vm5, %v277_v31 }
 0x3df   :  { %4300 = vmatpush3.bf16.xpose.msra.mxu1 %v298_v34 }
 0x3e0   :  { %4325 = vmatprep.subr.bf16.mxu1 %v5334_v1 }
 0x3e6   :  { %4302 = vmatmul.mubr.msk.bf16.vlgmr.msra.gmra.mxu1 %vm284_vm5, %v5461_v20 }
 0x3e7   :  { %4305 = vmatprep.mubr.msk.bf16.mxu1 %vm284_vm5, %v5457_v19 }
 0x3ee   :  { %4306 = vmatmul.mubr.msk.bf16.gmra.mxu1 %vm284_vm5, %v5453_v13 }
 0x3ef   :  { %4329 = vmatprep.mubr.msk.bf16.mxu1 %vm5335_vm0, %v5334_v1 }
 0x4a6   :  { %v4303_v35 = vpop.f32.mrf.mxu1 }
 0x4a7   :  { %v352_v43 = vadd.f32 %v4303_v35, %v5484_v38 }
 0x4a8   :  { %v343_v39 = vpop.f32.mrf.mxu1 }
 0x4a9   :  { %v344_v40 = vadd.f32 %v343_v39, %v5482_v36  ;;  %v381_v52 = vsel %vm374_vm6, %v352_v43, -inf }
 0x4aa   :  { %v4304_v41 = vpop.f32.mrf.mxu1 }
 0x4ab   :  { %v375_v44 = vsel %vm374_vm6, %v344_v40, -inf  ;;  %v355_v50 = vadd.f32 %v4304_v41, %v5491_v45 }
 0x4ac   :  { %v346_v46 = vpop.f32.mrf.mxu1  ;;  %376 = vmax.xlane.f32.xlu0 %v375_v44 }
 0x4ad   :  { %v347_v47 = vadd.f32 %v346_v46, %v5487_v42  ;;  %v384_v60 = vsel %vm374_vm6, %v355_v50, -inf }
 0x4ae   :  { %v4307_v48 = vpop.f32.mrf.mxu1 }
 0x4af   :  { %v378_v51 = vsel %vm374_vm6, %v347_v47, -inf  ;;  %v368_v58 = vadd.f32 %v4307_v48, %v5499_v53 }
 0x4b0   :  { %v359_v54 = vpop.f32.mrf.mxu1  ;;  %379 = vmax.xlane.f32.xlu1 %v378_v51  ;;  %382 = vmax.xlane.f32.xlu0 %v381_v52 }
 0x4b1   :  { %v360_v55 = vadd.f32 %v359_v54, %v5494_v49  ;;  %v393_v3 = vsel %vm374_vm6, %v368_v58, -inf }
 0x4b2   :  { %v4308_v56 = vpop.f32.mrf.mxu1 }
 0x4b3   :  { %v387_v59 = vsel %vm374_vm6, %v360_v55, -inf  ;;  %v371_v2 = vadd.f32 %v4308_v56, %v5507_v61 }
 0x4b4   :  { %v362_v62 = vpop.f32.mrf.mxu1  ;;  %388 = vmax.xlane.f32.xlu1 %v387_v59  ;;  %385 = vmax.xlane.f32.xlu0 %v384_v60 }
 0x4b5   :  { %v363_v63 = vadd.f32 %v362_v62, %v5502_v57  ;;  %v396_v5 = vsel %vm374_vm6, %v371_v2, -inf }
 0x4b7   :  { %v390_v4 = vsel %vm374_vm6, %v363_v63, -inf }
 0x4b8   :  { %394 = vmax.xlane.f32.xlu1 %v393_v3  ;;  %391 = vmax.xlane.f32.xlu0 %v390_v4 }
 0x4bc   :  { %397 = vmax.xlane.f32.xlu0 %v396_v5 }
 0x4c9   :  { %473 = vrot.lane.b32.xlu1 %v5453_v13, %s5340_s12 }
 0x535   :  { %v377_v6 = vpop.xlane.xlu0 %376 }
 0x536   :  { %v399_v7 = vsub.f32 %v344_v40, %v377_v6 }
 0x538   :  { %v407_v17 = vmul.f32 1.442695, %v399_v7 }
 0x539   :  { %v380_v10 = vpop.xlane.xlu1 %379  ;;  %v383_v11 = vpop.xlane.xlu0 %382 }
 0x53a   :  { %v401_v14 = vsub.f32 %v352_v43, %v383_v11  ;;  %v400_v22 = vsub.f32 %v347_v47, %v380_v10 }
 0x53c   :  { %v411_v16 = vmul.f32 1.442695, %v401_v14  ;;  %v409_v29 = vmul.f32 1.442695, %v400_v22 }
 0x53d   :  { %v389_v23 = vpop.xlane.xlu1 %388  ;;  %v386_v25 = vpop.xlane.xlu0 %385 }
 0x53e   :  { %v402_v26 = vsub.f32 %v355_v50, %v386_v25  ;;  %4962 = vpow2.f32 %v411_v16  ;;  %v403_v31 = vsub.f32 %v360_v55, %v389_v23 }
 0x53f   :  { %4964 = vpow2.f32 %v407_v17 }
 0x540   :  { %v413_v28 = vmul.f32 1.442695, %v402_v26  ;;  %v415_v40 = vmul.f32 1.442695, %v403_v31 }
 0x541   :  { %v395_v34 = vpop.xlane.xlu1 %394  ;;  %v392_v35 = vpop.xlane.xlu0 %391 }
 0x542   :  { %v405_v39 = vsub.f32 %v368_v58, %v395_v34  ;;  %4966 = vpow2.f32 %v413_v28  ;;  %v404_v41 = vsub.f32 %v363_v63, %v392_v35 }
 0x543   :  { %4968 = vpow2.f32 %v409_v29 }
 0x544   :  { %v419_v13 = vmul.f32 1.442695, %v405_v39  ;;  %v417_v48 = vmul.f32 1.442695, %v404_v41 }
 0x545   :  { %v474_v43 = vpop.permute.xlu1 %473  ;;  %v398_v44 = vpop.xlane.xlu0 %397 }
 0x546   :  { %4970 = vpow2.f32 %v419_v13  ;;  %v406_v46 = vsub.f32 %v371_v2, %v398_v44  ;;  %4309 = vmatprep.subr.bf16.mxu0 %v474_v43 }
 0x547   :  { %4310 = vmatpush3.bf16.msra.mxu0 %v474_v43  ;;  %4972 = vpow2.f32 %v415_v40 }
 0x548   :  { %v421_v47 = vmul.f32 1.442695, %v406_v46 }
 0x54a   :  { %4974 = vpow2.f32 %v421_v47 }
 0x54b   :  { %v4963_v50 = vpop.eup %4962  ;;  %4976 = vpow2.f32 %v417_v48 }
 0x54c   :  { %v429_v51 = vsel %vm374_vm6, %v4963_v50, 0.0  ;;  %v4965_v52 = vpop.eup %4964 }
 0x54d   :  { %430 = vadd.xlane.f32.xlu1 %v429_v51  ;;  %v423_v55 = vsel %vm374_vm6, %v4965_v52, 0.0 }
 0x54f   :  { %v4967_v54 = vpop.eup %4966 }
 0x550   :  { %v432_v56 = vsel %vm374_vm6, %v4967_v54, 0.0  ;;  %v4969_v58 = vpop.eup %4968 }
 0x551   :  { %424 = vadd.xlane.f32.xlu1 %v423_v55  ;;  %433 = vadd.xlane.f32.xlu0 %v432_v56  ;;  %v426_v62 = vsel %vm374_vm6, %v4969_v58, 0.0  ;;  %v176_v56 = vld [vmem:[#allocation5 + $0xf8] sm:$0xff] }
 0x553   :  { %v5519_v59 = vpop.eup %4970 }
 0x554   :  { %v441_v60 = vsel %vm374_vm6, %v5519_v59, 0.0  ;;  %v4973_v63 = vpop.eup %4972 }
 0x555   :  { %442 = vadd.xlane.f32.xlu1 %v441_v60  ;;  %427 = vadd.xlane.f32.xlu0 %v426_v62  ;;  %v435_v4 = vsel %vm374_vm6, %v4973_v63, 0.0 }
 0x557   :  { %v4975_v2 = vpop.eup %4974 }
 0x558   :  { %v444_v3 = vsel %vm374_vm6, %v4975_v2, 0.0  ;;  %v4977_v5 = vpop.eup %4976 }
 0x559   :  { %436 = vadd.xlane.f32.xlu1 %v435_v4  ;;  %445 = vadd.xlane.f32.xlu0 %v444_v3  ;;  %v438_v6 = vsel %vm374_vm6, %v4977_v5, 0.0  ;;  %v174_v3 = vld [vmem:[#allocation5 + $0xe8] sm:$0xff] }
 0x55d   :  { %439 = vadd.xlane.f32.xlu0 %v438_v6 }
 0x56a   :  { %469 = vrot.lane.b32.xlu1 %v5461_v20, %s5340_s12 }
 0x56e   :  { %467 = vrot.lane.b32.xlu1 %v5444_v0, %s5340_s12 }
 0x573   :  { %471 = vrot.lane.b32.xlu0 %v5457_v19, %s5340_s12 }
 0x5d6   :  { %v431_v7 = vpop.xlane.xlu1 %430 }
 0x5da   :  { %v425_v10 = vpop.xlane.xlu1 %424  ;;  %v434_v11 = vpop.xlane.xlu0 %433 }
 0x5db   :  { %4978 = vrcp.f32 %v425_v10 }
 0x5de   :  { %v443_v14 = vpop.xlane.xlu1 %442  ;;  %v428_v16 = vpop.xlane.xlu0 %427 }
 0x5df   :  { %4980 = vrcp.f32 %v428_v16 }
 0x5e0   :  { %4982 = vrcp.f32 %v434_v11 }
 0x5e1   :  { %4984 = vrcp.f32 %v431_v7 }
 0x5e2   :  { %v437_v17 = vpop.xlane.xlu1 %436  ;;  %v446_v22 = vpop.xlane.xlu0 %445 }
 0x5e3   :  { %4986 = vrcp.f32 %v437_v17 }
 0x5e6   :  { %v440_v23 = vpop.xlane.xlu0 %439  ;;  %v470_v20 = vpop.permute.xlu1 %469 }
 0x5e7   :  { %4988 = vrcp.f32 %v440_v23 }
 0x5e8   :  { %4990 = vrcp.f32 %v446_v22  ;;  %v4979_v25 = vpop.eup %4978 }
 0x5e9   :  { %4992 = vrcp.f32 %v443_v14  ;;  %v455_v28 = vmul.f32 %v4979_v25, %v4965_v52 }
 0x5ea   :  { %v472_v0 = vpop.permute.xlu0 %471  ;;  %v468_v34 = vpop.permute.xlu1 %467 }
 0x5eb   :  { %4311 = vmatprep.subr.bf16.mxu0 %v472_v0 }
 0x5ec   :  { %4312 = vmatpush3.bf16.msra.mxu0 %v472_v0  ;;  %v4981_v19 = vpop.eup %4980 }
 0x5ed   :  { %4313 = vmatprep.subr.bf16.mxu0 %v470_v20  ;;  %v4983_v26 = vpop.eup %4982  ;;  %v456_v29 = vmul.f32 %v4981_v19, %v4969_v58 }
 0x5ee   :  { %v4985_v31 = vpop.eup %4984  ;;  %v458_v39 = vmul.f32 %v4983_v26, %v4967_v54 }
 0x5ef   :  { %v463_v35 = vpack.c.bf16 %v456_v29, %v455_v28  ;;  %v457_v40 = vmul.f32 %v4985_v31, %v4963_v50  ;;  %v175_v50 = vld [vmem:[#allocation5 + $0xf0] sm:$0xff] }
 0x5f0   :  { %4314 = vmatpush3.bf16.msra.mxu0 %v470_v20  ;;  %v4987_v13 = vpop.eup %4986  ;;  %v590_v58 = vpack.c.bf16 %v176_v56, %v175_v50  ;;  %v641_v50 = vld [vmem:[#allocation7 + $0x148] sm:$0xff] }
 0x5f1   :  { %4315 = vmatprep.subr.bf16.mxu0 %v468_v34  ;;  %4317 = vmatprep.mubr.msk.bf16.mxu0 %vm374_vm6, %v463_v35  ;;  %v464_v43 = vpack.c.bf16 %v458_v39, %v457_v40  ;;  %v459_v44 = vmul.f32 %v4987_v13, %v4973_v63  ;;  %v173_v63 = vld [vmem:[#allocation5 + $0xe0] sm:$0xff] }
 0x5f2   :  { %4326 = vmatpush3.bf16.msra.mxu1 %v590_v58  ;;  %v589_v4 = vpack.c.bf16 %v174_v3, %v173_v63  ;;  %v638_v58 = vld [vmem:[#allocation7 + $0x10] sm:$0xff] }
 0x5f3   :  { %4327 = vmatprep.subr.bf16.mxu1 %v5334_v1 }
 0x5f4   :  { %v4989_v41 = vpop.eup %4988  ;;  %4316 = vmatpush3.bf16.msra.mxu0 %v468_v34 }
 0x5f5   :  { %v460_v46 = vmul.f32 %v4989_v41, %v4977_v5  ;;  %4333 = vmatprep.subr.bf16.mxu0 %v5334_v1  ;;  %v4991_v47 = vpop.eup %4990 }
 0x5f6   :  { %v4993_v51 = vpop.eup %4992  ;;  %v462_v52 = vmul.f32 %v4991_v47, %v4975_v2  ;;  %4328 = vmatpush3.bf16.msra.mxu1 %v589_v4 }
 0x5f7   :  { %4318 = vmatmul.mubr.msk.bf16.vlgmr.msra.gmra.mxu0 %vm374_vm6, %v464_v43  ;;  %v465_v48 = vpack.c.bf16 %v460_v46, %v459_v44  ;;  %v461_v54 = vmul.f32 %v4993_v51, %v5519_v59  ;;  %4341 = vmatprep.subr.bf16.mxu1 %v5334_v1 }
 0x5f9   :  { %4321 = vmatprep.mubr.msk.bf16.mxu0 %vm374_vm6, %v465_v48  ;;  %v466_v55 = vpack.c.bf16 %v462_v52, %v461_v54 }
 0x5ff   :  { %4322 = vmatmul.mubr.msk.bf16.gmra.mxu0 %vm374_vm6, %v466_v55 }
 0x600   :  { %4337 = vmatprep.mubr.msk.bf16.mxu0 %vm5335_vm0, %v5334_v1 }
 0x6b7   :  { %v4319_v60 = vpop.f32.mrf.mxu0 }
 0x6b9   :  { %v525_v62 = vpop.f32.mrf.mxu0 }
 0x6bb   :  { %v4320_v2 = vpop.f32.mrf.mxu0 }
 0x6bc   :  { %v4762_v5 = vpack.i.bf16 %v4320_v2, %v4319_v60  ;;  %v639_v60 = vld [vmem:[#allocation7 + $0x78] sm:$0xff] }
 0x6bd   :  { %v528_v59 = vpop.f32.mrf.mxu0 }
 0x6be   :  { %4763 = vrot.lane.b32.xlu0 %v4762_v5, %s5329_s21 }
 0x6bf   :  { %v4323_v6 = vpop.f32.mrf.mxu0 }
 0x6c1   :  { %v541_v7 = vpop.f32.mrf.mxu0 }
 0x6c3   :  { %v4324_v10 = vpop.f32.mrf.mxu0 }
 0x6c4   :  { %v4772_v11 = vpack.i.bf16 %v4324_v10, %v4323_v6  ;;  %v3992_v10 = vld [vmem:[#allocation5 + $0x98] ss:$0 sm:$0xff] }
 0x6c5   :  { %v544_v14 = vpop.f32.mrf.mxu0 }
 0x6c6   :  { %v4767_v16 = vpack.i.bf16 %v544_v14, %v541_v7  ;;  %4773 = vrot.lane.b32.xlu0 %v4772_v11, %s5341_s13 }
 0x6c8   :  { %4768 = vrot.lane.b32.xlu1 %v4767_v16, %s5342_s14 }
 0x730   :  { %v4764_v17 = vpop.permute.xlu0 %4763 }
 0x731   :  { %v4766_v22 = vunpack.i.h.bf16 %v4764_v17  ;;  %v4765_v23 = vunpack.i.l.bf16 %v4764_v17 }
 0x733   :  { %v580_v26 = vsel %vm284_vm5, %v525_v62, %v4765_v23  ;;  %v581_v28 = vsel %vm284_vm5, %v528_v59, %v4766_v22  ;;  %v648_v22 = vld [vmem:[#allocation5 + $0x130] sm:$0xff]  ;;  %v649_v23 = vld [vmem:[#allocation5 + $0x138] sm:$0xff] }
 0x738   :  { %v4774_v20 = vpop.permute.xlu0 %4773 }
 0x739   :  { %v4776_v29 = vunpack.i.h.bf16 %v4774_v20  ;;  %v4775_v31 = vunpack.i.l.bf16 %v4774_v20  ;;  %v646_v20 = vld [vmem:[#allocation5 + $0x120] sm:$0xff] }
 0x73a   :  { %v4769_v0 = vpop.permute.xlu1 %4768 }
 0x73b   :  { %v4771_v25 = vunpack.i.h.bf16 %v4769_v0  ;;  %v4770_v19 = vunpack.i.l.bf16 %v4769_v0  ;;  %v751_v0 = vpack.c.bf16 %v649_v23, %v648_v22 }
 0x73d   :  { %v584_v34 = vsel %vm582_vm7, %v581_v28, %v4771_v25  ;;  %v583_v35 = vsel %vm582_vm7, %v580_v26, %v4770_v19  ;;  %v647_v25 = vld [vmem:[#allocation5 + $0x128] sm:$0xff]  ;;  %v644_v26 = vld [vmem:[#allocation5 + $0x110] sm:$0xff]  ;;  %v645_v28 = vld [vmem:[#allocation5 + $0x118] sm:$0xff] }
 0x73e   :  { %v587_v39 = vsel %vm585_vm8, %v584_v34, %v4776_v29  ;;  %v586_v13 = vsel %vm585_vm8, %v583_v35, %v4775_v31  ;;  %v750_v19 = vpack.c.bf16 %v647_v25, %v646_v20  ;;  %v749_v29 = vpack.c.bf16 %v645_v28, %v644_v26  ;;  %v642_v31 = vld [vmem:[#allocation5 + $0x100] sm:$0xff]  ;;  %v643_v34 = vld [vmem:[#allocation5 + $0x108] sm:$0xff]  ;;  %v802_v26 = vld [vmem:[#allocation7 + $0x170] sm:$0xff] }
 0x73f   :  { %v588_v40 = vpack.c.bf16 %v587_v39, %v586_v13  ;;  %v748_v35 = vpack.c.bf16 %v643_v34, %v642_v31  ;;  %v799_v28 = vld [vmem:[#allocation7 + $0x38] sm:$0xff]  ;;  %v800_v31 = vld [vmem:[#allocation7 + $0xa0] sm:$0xff] }
 0x740   :  { %v830_v34 = vpack.c.bf16 %v800_v31, %v799_v28 }
 0x741   :  { %4330 = vmatmul.mubr.msk.bf16.vlgmr.msra.gmra.mxu1 %vm179_vm4, %v588_v40 }
 0x742   :  { %4349 = vmatprep.mubr.msk.bf16.mxu1 %vm5335_vm0, %v5334_v1  ;;  %4342 = vmatpush3.bf16.msra.mxu1 %v751_v0 }
 0x743   :  { %4343 = vmatprep.subr.bf16.mxu1 %v5334_v1 }
 0x746   :  { %4344 = vmatpush3.bf16.msra.mxu1 %v750_v19 }
 0x747   :  { %4345 = vmatprep.subr.bf16.mxu1 %v5334_v1 }
 0x74a   :  { %4346 = vmatpush3.bf16.msra.mxu1 %v749_v29 }
 0x74b   :  { %4347 = vmatprep.subr.bf16.mxu1 %v5334_v1 }
 0x74e   :  { %4348 = vmatpush3.bf16.msra.mxu1 %v748_v35 }
 0x801   :  { %v628_v41 = vpop.f32.mrf.mxu1 }
 0x802   :  { %v5556_v43 = vadd.f32 %v628_v41, %v5430_v33  ;;  %v640_v33 = vld [vmem:[#allocation7 + $0xe0] sm:$0xff] }
 0x803   :  { %v4331_v44 = vpop.f32.mrf.mxu1  ;;  %v674_v56 = vpack.c.bf16 %v641_v50, %v640_v33 }
 0x804   :  { %v650_v46 = vmul.f32 %v5556_v43, %v5556_v43 }
 0x805   :  { %v631_v47 = vpop.f32.mrf.mxu1  ;;  %4334 = vmatpush3.bf16.msra.mxu0 %v674_v56 }
 0x806   :  { %v5561_v48 = vadd.f32 %v631_v47, %v5435_v37  ;;  %v652_v51 = vsel %vm179_vm4, %v650_v46, 0.0  ;;  %4335 = vmatprep.subr.bf16.mxu0 %v5334_v1  ;;  %v673_v37 = vpack.c.bf16 %v639_v60, %v638_v58 }
 0x807   :  { %653 = vadd.xlane.f32.xlu1 %v652_v51  ;;  %v4332_v52 = vpop.f32.mrf.mxu1 }
 0x808   :  { %v651_v54 = vmul.f32 %v5561_v48, %v5561_v48 }
 0x809   :  { %4336 = vmatpush3.bf16.msra.mxu0 %v673_v37 }
 0x80a   :  { %v655_v55 = vsel %vm179_vm4, %v651_v54, 0.0  ;;  %4353 = vmatprep.subr.bf16.mxu0 %v5334_v1 }
 0x80b   :  { %656 = vadd.xlane.f32.xlu0 %v655_v55 }
 0x890   :  { %v654_v62 = vpop.xlane.xlu1 %653 }
 0x891   :  { %v658_v63 = vmul.f32 0.03125, %v654_v62 }
 0x893   :  { %v660_v3 = vadd.f32 1e-06, %v658_v63 }
 0x894   :  { %v657_v4 = vpop.xlane.xlu0 %656 }
 0x895   :  { %4994 = vrsqrt.f32 %v660_v3  ;;  %v659_v2 = vmul.f32 0.03125, %v657_v4 }
 0x897   :  { %v661_v5 = vadd.f32 1e-06, %v659_v2 }
 0x899   :  { %4996 = vrsqrt.f32 %v661_v5 }
 0x8a2   :  { %v4995_v59 = vpop.eup %4994 }
 0x8a3   :  { %v664_v6 = vmul.f32 %v4995_v59, %v5556_v43 }
 0x8a5   :  { %v670_v14 = vmul.f32 %v3992_v10, %v664_v6 }
 0x8a6   :  { %v4997_v7 = vpop.eup %4996 }
 0x8a7   :  { %v665_v11 = vmul.f32 %v4997_v7, %v5561_v48 }
 0x8a9   :  { %v671_v16 = vmul.f32 %v3992_v10, %v665_v11 }
 0x8ab   :  { %v672_v17 = vpack.c.bf16 %v671_v16, %v670_v14 }
 0x8ad   :  { %4338 = vmatmul.mubr.msk.bf16.vlgmr.msra.gmra.mxu0 %vm179_vm4, %v672_v17 }
 0x8ae   :  { %4357 = vmatprep.mubr.msk.bf16.mxu0 %vm5335_vm0, %v5334_v1 }
 0x96d   :  { %v712_v39 = vpop.f32.mrf.mxu0 }
 0x96e   :  { %739 = vrot.lane.b32.xlu0 %v712_v39, %s5340_s12  ;;  %v719_v44 = vmul.f32 %v712_v39, %v712_v39 }
 0x96f   :  { %v4339_v13 = vpop.f32.mrf.mxu0 }
 0x970   :  { %v721_v47 = vmul.f32 %v719_v44, %v712_v39 }
 0x971   :  { %v715_v40 = vpop.f32.mrf.mxu0 }
 0x972   :  { %741 = vrot.lane.b32.xlu1 %v715_v40, %s5340_s12  ;;  %v720_v46 = vmul.f32 %v715_v40, %v715_v40  ;;  %v723_v52 = vmul.f32 0.044715, %v721_v47 }
 0x973   :  { %v4340_v41 = vpop.f32.mrf.mxu0 }
 0x974   :  { %v722_v51 = vmul.f32 %v720_v46, %v715_v40  ;;  %v725_v55 = vadd.f32 %v723_v52, %v712_v39 }
 0x976   :  { %v724_v54 = vmul.f32 0.044715, %v722_v51  ;;  %v727_v50 = vmul.f32 0.7978846, %v725_v55  ;;  %v3995_v51 = vld [vmem:[#allocation5 + $0xb8] ss:$0 sm:$0xff] }
 0x978   :  { %v726_v33 = vadd.f32 %v724_v54, %v715_v40  ;;  %4998 = vtanh.f32 %v727_v50 }
 0x97a   :  { %v728_v56 = vmul.f32 0.7978846, %v726_v33 }
 0x97c   :  { %5000 = vtanh.f32 %v728_v56 }
 0x985   :  { %v4999_v58 = vpop.eup %4998 }
 0x986   :  { %v731_v37 = vadd.f32 1.0, %v4999_v58 }
 0x988   :  { %v733_v63 = vmul.f32 0.5, %v731_v37 }
 0x989   :  { %v5001_v60 = vpop.eup %5000 }
 0x98a   :  { %v732_v62 = vadd.f32 1.0, %v5001_v60  ;;  %v735_v2 = vmul.f32 %v733_v63, %v712_v39 }
 0x98c   :  { %v734_v3 = vmul.f32 0.5, %v732_v62 }
 0x98e   :  { %v736_v5 = vmul.f32 %v734_v3, %v715_v40 }
 0x9e0   :  { %v740_v4 = vpop.permute.xlu0 %739 }
 0x9e1   :  { %v745_v6 = vmul.f32 %v740_v4, %v735_v2 }
 0x9e4   :  { %v742_v59 = vpop.permute.xlu1 %741 }
 0x9e5   :  { %v746_v7 = vmul.f32 %v742_v59, %v736_v5 }
 0x9e7   :  { %v747_v10 = vpack.c.bf16 %v746_v7, %v745_v6 }
 0x9e9   :  { %4350 = vmatmul.mubr.msk.bf16.vlgmr.msra.gmra.mxu1 %vm374_vm6, %v747_v10 }
 0xaa9   :  { %v789_v11 = vpop.f32.mrf.mxu1 }
 0xaaa   :  { %v5581_v14 = vadd.f32 %v789_v11, %v5556_v43  ;;  %v801_v43 = vld [vmem:[#allocation7 + $0x108] sm:$0xff] }
 0xaab   :  { %v4351_v16 = vpop.f32.mrf.mxu1  ;;  %v831_v29 = vpack.c.bf16 %v802_v26, %v801_v43 }
 0xaac   :  { %v807_v17 = vmul.f32 %v5581_v14, %v5581_v14 }
 0xaad   :  { %v792_v22 = vpop.f32.mrf.mxu1  ;;  %4354 = vmatpush3.bf16.msra.mxu0 %v831_v29 }
 0xaae   :  { %v5586_v23 = vadd.f32 %v792_v22, %v5561_v48  ;;  %v809_v20 = vsel %vm179_vm4, %v807_v17, 0.0  ;;  %4355 = vmatprep.subr.bf16.mxu0 %v5334_v1 }
 0xaaf   :  { %810 = vadd.xlane.f32.xlu1 %v809_v20  ;;  %v4352_v0 = vpop.f32.mrf.mxu1 }
 0xab0   :  { %v808_v25 = vmul.f32 %v5586_v23, %v5586_v23 }
 0xab1   :  { %4356 = vmatpush3.bf16.msra.mxu0 %v830_v34 }
 0xab2   :  { %v812_v19 = vsel %vm179_vm4, %v808_v25, 0.0 }
 0xab3   :  { %813 = vadd.xlane.f32.xlu0 %v812_v19 }
 0xb38   :  { %v811_v48 = vpop.xlane.xlu1 %810 }
 0xb39   :  { %v815_v35 = vmul.f32 0.03125, %v811_v48 }
 0xb3b   :  { %v817_v39 = vadd.f32 1e-06, %v815_v35 }
 0xb3c   :  { %v814_v13 = vpop.xlane.xlu0 %813 }
 0xb3d   :  { %5002 = vrsqrt.f32 %v817_v39  ;;  %v816_v40 = vmul.f32 0.03125, %v814_v13 }
 0xb3f   :  { %v818_v41 = vadd.f32 1e-06, %v816_v40 }
 0xb41   :  { %5004 = vrsqrt.f32 %v818_v41 }
 0xb4a   :  { %v5003_v44 = vpop.eup %5002 }
 0xb4b   :  { %v821_v46 = vmul.f32 %v5003_v44, %v5581_v14 }
 0xb4d   :  { %v827_v54 = vmul.f32 %v3995_v51, %v821_v46 }
 0xb4e   :  { %v5005_v47 = vpop.eup %5004 }
 0xb4f   :  { %v822_v52 = vmul.f32 %v5005_v47, %v5586_v23 }
 0xb51   :  { %v828_v55 = vmul.f32 %v3995_v51, %v822_v52 }
 0xb53   :  { %v829_v33 = vpack.c.bf16 %v828_v55, %v827_v54 }
 0xb55   :  { %4358 = vmatmul.mubr.msk.bf16.vlgmr.msra.gmra.mxu0 %vm179_vm4, %v829_v33 }
 0xc15   :  { %v869_v50 = vpop.f32.mrf.mxu0 }
 0xc17   :  { %v4359_v56 = vpop.f32.mrf.mxu0 }
 0xc19   :  { %v872_v58 = vpop.f32.mrf.mxu0 }
 0xc1a   :  { %v5596_v60 = vpack.c.bf16 %v872_v58, %v869_v50  ;;  %v4782_v37 = vpack.i.bf16 %v872_v58, %v869_v50 }
 0xc1b   :  { %v4360_v62 = vpop.f32.mrf.mxu0 }
 0xc1c   :  { %4783 = vrot.lane.b32.xlu1 %v4782_v37, %s5337_s9  ;;  %4778 = vrot.lane.b32.xlu0 %v4782_v37, %s5332_s30 }
 0xc1d   :  { %4369 = vmatprep.mubr.msk.bf16.mxu0 %vm284_vm5, %v5596_v60 }
 0xc20   :  { %4788 = vrot.lane.b32.xlu1 %v4782_v37, %s5338_s10 }
 0xc8e   :  { %v4784_v63 = vpop.permute.xlu1 %4783  ;;  %v4779_v3 = vpop.permute.xlu0 %4778 }
 0xc8f   :  { %v4786_v4 = vunpack.i.h.bf16 %v4784_v63  ;;  %v4785_v2 = vunpack.i.l.bf16 %v4784_v63  ;;  %v4781_v5 = vunpack.i.h.bf16 %v4779_v3  ;;  %v4780_v59 = vunpack.i.l.bf16 %v4779_v3 }
 0xc91   :  { %v5603_v6 = vpack.c.bf16 %v4786_v4, %v4785_v2  ;;  %v899_v7 = vpack.c.bf16 %v4781_v5, %v4780_v59 }
 0xc92   :  { %v4789_v10 = vpop.permute.xlu1 %4788 }
 0xc93   :  { %v4791_v11 = vunpack.i.h.bf16 %v4789_v10  ;;  %v4790_v16 = vunpack.i.l.bf16 %v4789_v10  ;;  %908 = vrot.lane.b32.xlu1 %v5603_v6, %s5339_s11  ;;  %910 = vrot.lane.b32.xlu0 %v899_v7, %s5339_s11 }
 0xc95   :  { %v5608_v17 = vpack.c.bf16 %v4791_v11, %v4790_v16 }
 0xc97   :  { %906 = vrot.lane.b32.xlu0 %v5608_v17, %s5339_s11  ;;  %904 = vrot.lane.b32.xlu1 %v5596_v60, %s5339_s11 }
 0xd05   :  { %v911_v22 = vpop.permute.xlu0 %910  ;;  %v909_v0 = vpop.permute.xlu1 %908 }
 0xd06   :  { %4701 = vmatprep.subr.msk.bf16.mxu0 %vm284_vm5, %v911_v22  ;;  %v934_v20 = vsel %vm284_vm5, %v911_v22, 0  ;;  %v931_v25 = vsel %vm284_vm5, %v909_v0, 0 }
 0xd07   :  { %4362 = vmatpush3.bf16.xpose.msra.mxu0 %v934_v20 }
 0xd08   :  { %4702 = vmatprep.subr.msk.bf16.mxu0 %vm284_vm5, %v909_v0 }
 0xd09   :  { %v907_v19 = vpop.permute.xlu0 %906  ;;  %v905_v26 = vpop.permute.xlu1 %904 }
 0xd0a   :  { %v928_v43 = vsel %vm284_vm5, %v907_v19, 0  ;;  %v925_v28 = vsel %vm284_vm5, %v905_v26, 0 }
 0xd0f   :  { %4364 = vmatpush3.bf16.xpose.msra.mxu0 %v931_v25 }
 0xd10   :  { %4703 = vmatprep.subr.msk.bf16.mxu0 %vm284_vm5, %v907_v19 }
 0xd17   :  { %4366 = vmatpush3.bf16.xpose.msra.mxu0 %v928_v43 }
 0xd18   :  { %4704 = vmatprep.subr.msk.bf16.mxu0 %vm284_vm5, %v905_v26 }
 0xd1f   :  { %4368 = vmatpush3.bf16.xpose.msra.mxu0 %v925_v28 }
 0xd20   :  { %4409 = vmatprep.subr.bf16.mxu0 %v5334_v1 }
 0xd26   :  { %4370 = vmatmul.mubr.msk.bf16.vlgmr.msra.gmra.mxu0 %vm284_vm5, %v5608_v17 }
 0xd27   :  { %4373 = vmatprep.mubr.msk.bf16.mxu0 %vm284_vm5, %v5603_v6 }
 0xd2e   :  { %4374 = vmatmul.mubr.msk.bf16.gmra.mxu0 %vm284_vm5, %v899_v7 }
 0xd2f   :  { %4417 = vmatprep.mubr.msk.bf16.mxu0 %vm5335_vm0, %v5334_v1 }
 0xde6   :  { %v4371_v29 = vpop.f32.mrf.mxu0 }
 0xde7   :  { %v979_v35 = vadd.f32 %v4371_v29, %v5484_v38 }
 0xde8   :  { %v970_v31 = vpop.f32.mrf.mxu0 }
 0xde9   :  { %v971_v34 = vadd.f32 %v970_v31, %v5482_v36  ;;  %v1007_v47 = vsel %vm374_vm6, %v979_v35, -inf }
 0xdea   :  { %v4372_v48 = vpop.f32.mrf.mxu0 }
 0xdeb   :  { %v1001_v39 = vsel %vm374_vm6, %v971_v34, -inf  ;;  %v982_v44 = vadd.f32 %v4372_v48, %v5491_v45 }
 0xdec   :  { %v973_v13 = vpop.f32.mrf.mxu0  ;;  %1002 = vmax.xlane.f32.xlu0 %v1001_v39 }
 0xded   :  { %v974_v40 = vadd.f32 %v973_v13, %v5487_v42  ;;  %v1010_v55 = vsel %vm374_vm6, %v982_v44, -inf }
 0xdee   :  { %v4375_v41 = vpop.f32.mrf.mxu0 }
 0xdef   :  { %v1004_v46 = vsel %vm374_vm6, %v974_v40, -inf  ;;  %v995_v38 = vadd.f32 %v4375_v41, %v5499_v53 }
 0xdf0   :  { %v986_v51 = vpop.f32.mrf.mxu0  ;;  %1005 = vmax.xlane.f32.xlu1 %v1004_v46  ;;  %1008 = vmax.xlane.f32.xlu0 %v1007_v47 }
 0xdf1   :  { %v987_v36 = vadd.f32 %v986_v51, %v5494_v49  ;;  %v1019_v50 = vsel %vm374_vm6, %v995_v38, -inf }
 0xdf2   :  { %v4376_v52 = vpop.f32.mrf.mxu0 }
 0xdf3   :  { %v1013_v54 = vsel %vm374_vm6, %v987_v36, -inf  ;;  %v998_v33 = vadd.f32 %v4376_v52, %v5507_v61 }
 0xdf4   :  { %v989_v42 = vpop.f32.mrf.mxu0  ;;  %1014 = vmax.xlane.f32.xlu1 %v1013_v54  ;;  %1011 = vmax.xlane.f32.xlu0 %v1010_v55 }
 0xdf5   :  { %v990_v45 = vadd.f32 %v989_v42, %v5502_v57  ;;  %v1022_v49 = vsel %vm374_vm6, %v998_v33, -inf }
 0xdf7   :  { %v1016_v56 = vsel %vm374_vm6, %v990_v45, -inf }
 0xdf8   :  { %1020 = vmax.xlane.f32.xlu1 %v1019_v50  ;;  %1017 = vmax.xlane.f32.xlu0 %v1016_v56 }
 0xdfc   :  { %1023 = vmax.xlane.f32.xlu0 %v1022_v49 }
 0xe09   :  { %1099 = vrot.lane.b32.xlu1 %v899_v7, %s5340_s12 }
 0xe75   :  { %v1003_v53 = vpop.xlane.xlu0 %1002 }
 0xe76   :  { %v1025_v58 = vsub.f32 %v971_v34, %v1003_v53 }
 0xe78   :  { %v1033_v57 = vmul.f32 1.442695, %v1025_v58 }
 0xe79   :  { %v1006_v37 = vpop.xlane.xlu1 %1005  ;;  %v1009_v62 = vpop.xlane.xlu0 %1008 }
 0xe7a   :  { %v1027_v63 = vsub.f32 %v979_v35, %v1009_v62  ;;  %v1026_v4 = vsub.f32 %v974_v40, %v1006_v37 }
 0xe7c   :  { %v1037_v3 = vmul.f32 1.442695, %v1027_v63  ;;  %v1035_v10 = vmul.f32 1.442695, %v1026_v4 }
 0xe7d   :  { %v1015_v61 = vpop.xlane.xlu1 %1014  ;;  %v1012_v2 = vpop.xlane.xlu0 %1011 }
 0xe7e   :  { %v1028_v5 = vsub.f32 %v982_v44, %v1012_v2  ;;  %5006 = vpow2.f32 %v1037_v3  ;;  %v1029_v11 = vsub.f32 %v987_v36, %v1015_v61 }
 0xe7f   :  { %5008 = vpow2.f32 %v1033_v57 }
 0xe80   :  { %v1039_v59 = vmul.f32 1.442695, %v1028_v5  ;;  %v1041_v0 = vmul.f32 1.442695, %v1029_v11 }
 0xe81   :  { %v1021_v16 = vpop.xlane.xlu1 %1020  ;;  %v1018_v22 = vpop.xlane.xlu0 %1017 }
 0xe82   :  { %v1031_v20 = vsub.f32 %v995_v38, %v1021_v16  ;;  %5010 = vpow2.f32 %v1039_v59  ;;  %v1030_v25 = vsub.f32 %v990_v45, %v1018_v22 }
 0xe83   :  { %5012 = vpow2.f32 %v1035_v10 }
 0xe84   :  { %v1045_v7 = vmul.f32 1.442695, %v1031_v20  ;;  %v1043_v29 = vmul.f32 1.442695, %v1030_v25 }
 0xe85   :  { %v1100_v19 = vpop.permute.xlu1 %1099  ;;  %v1024_v43 = vpop.xlane.xlu0 %1023 }
 0xe86   :  { %5014 = vpow2.f32 %v1045_v7  ;;  %v1032_v26 = vsub.f32 %v998_v33, %v1024_v43  ;;  %4377 = vmatprep.subr.bf16.mxu1 %v1100_v19  ;;  %v805_v43 = vld [vmem:[#allocation5 + $0x1d0] sm:$0xff] }
 0xe87   :  { %4378 = vmatpush3.bf16.msra.mxu1 %v1100_v19  ;;  %5016 = vpow2.f32 %v1041_v0 }
 0xe88   :  { %v1047_v28 = vmul.f32 1.442695, %v1032_v26  ;;  %v806_v26 = vld [vmem:[#allocation5 + $0x1d8] sm:$0xff] }
 0xe8a   :  { %5018 = vpow2.f32 %v1047_v28  ;;  %v1214_v28 = vpack.c.bf16 %v806_v26, %v805_v43 }
 0xe8b   :  { %v5007_v31 = vpop.eup %5006  ;;  %5020 = vpow2.f32 %v1043_v29 }
 0xe8c   :  { %v1055_v34 = vsel %vm374_vm6, %v5007_v31, 0.0  ;;  %v5009_v48 = vpop.eup %5008 }
 0xe8d   :  { %1056 = vadd.xlane.f32.xlu1 %v1055_v34  ;;  %v1049_v39 = vsel %vm374_vm6, %v5009_v48, 0.0  ;;  %v803_v34 = vld [vmem:[#allocation5 + $0x1c0] sm:$0xff] }
 0xe8f   :  { %v5011_v35 = vpop.eup %5010 }
 0xe90   :  { %v1058_v13 = vsel %vm374_vm6, %v5011_v35, 0.0  ;;  %v5013_v40 = vpop.eup %5012 }
 0xe91   :  { %1050 = vadd.xlane.f32.xlu1 %v1049_v39  ;;  %1059 = vadd.xlane.f32.xlu0 %v1058_v13  ;;  %v1052_v46 = vsel %vm374_vm6, %v5013_v40, 0.0 }
 0xe93   :  { %v5650_v41 = vpop.eup %5014 }
 0xe94   :  { %v1067_v44 = vsel %vm374_vm6, %v5650_v41, 0.0  ;;  %v5017_v47 = vpop.eup %5016 }
 0xe95   :  { %1068 = vadd.xlane.f32.xlu1 %v1067_v44  ;;  %1053 = vadd.xlane.f32.xlu0 %v1052_v46  ;;  %v1061_v52 = vsel %vm374_vm6, %v5017_v47, 0.0 }
 0xe97   :  { %v5019_v51 = vpop.eup %5018 }
 0xe98   :  { %v1070_v36 = vsel %vm374_vm6, %v5019_v51, 0.0  ;;  %v5021_v38 = vpop.eup %5020 }
 0xe99   :  { %1062 = vadd.xlane.f32.xlu1 %v1061_v52  ;;  %1071 = vadd.xlane.f32.xlu0 %v1070_v36  ;;  %v1064_v54 = vsel %vm374_vm6, %v5021_v38, 0.0 }
 0xe9d   :  { %1065 = vadd.xlane.f32.xlu0 %v1064_v54 }
 0xeaa   :  { %1095 = vrot.lane.b32.xlu1 %v5608_v17, %s5340_s12 }
 0xeae   :  { %1093 = vrot.lane.b32.xlu1 %v5596_v60, %s5340_s12 }
 0xeb3   :  { %1097 = vrot.lane.b32.xlu0 %v5603_v6, %s5340_s12 }
 0xf16   :  { %v1057_v55 = vpop.xlane.xlu1 %1056 }
 0xf1a   :  { %v1051_v42 = vpop.xlane.xlu1 %1050  ;;  %v1060_v45 = vpop.xlane.xlu0 %1059 }
 0xf1b   :  { %5022 = vrcp.f32 %v1051_v42 }
 0xf1e   :  { %v1069_v33 = vpop.xlane.xlu1 %1068  ;;  %v1054_v50 = vpop.xlane.xlu0 %1053 }
 0xf1f   :  { %5024 = vrcp.f32 %v1054_v50 }
 0xf20   :  { %5026 = vrcp.f32 %v1060_v45 }
 0xf21   :  { %5028 = vrcp.f32 %v1057_v55 }
 0xf22   :  { %v1063_v56 = vpop.xlane.xlu1 %1062  ;;  %v1072_v49 = vpop.xlane.xlu0 %1071 }
 0xf23   :  { %5030 = vrcp.f32 %v1063_v56 }
 0xf26   :  { %v1066_v53 = vpop.xlane.xlu0 %1065  ;;  %v1096_v17 = vpop.permute.xlu1 %1095 }
 0xf27   :  { %5032 = vrcp.f32 %v1066_v53 }
 0xf28   :  { %5034 = vrcp.f32 %v1072_v49  ;;  %v5023_v58 = vpop.eup %5022 }
 0xf29   :  { %5036 = vrcp.f32 %v1069_v33  ;;  %v1081_v62 = vmul.f32 %v5023_v58, %v5009_v48  ;;  %v804_v48 = vld [vmem:[#allocation5 + $0x1c8] sm:$0xff] }
 0xf2a   :  { %v1098_v60 = vpop.permute.xlu0 %1097  ;;  %v1094_v57 = vpop.permute.xlu1 %1093 }
 0xf2b   :  { %4379 = vmatprep.subr.bf16.mxu1 %v1098_v60 }
 0xf2c   :  { %4380 = vmatpush3.bf16.msra.mxu1 %v1098_v60  ;;  %v5025_v6 = vpop.eup %5024 }
 0xf2d   :  { %4381 = vmatprep.subr.bf16.mxu1 %v1096_v17  ;;  %v5027_v37 = vpop.eup %5026  ;;  %v1082_v63 = vmul.f32 %v5025_v6, %v5013_v40 }
 0xf2e   :  { %v5029_v3 = vpop.eup %5028  ;;  %v1084_v61 = vmul.f32 %v5027_v37, %v5011_v35  ;;  %v1213_v35 = vpack.c.bf16 %v804_v48, %v803_v34 }
 0xf2f   :  { %v1089_v4 = vpack.c.bf16 %v1082_v63, %v1081_v62  ;;  %v1083_v5 = vmul.f32 %v5029_v3, %v5007_v31 }
 0xf30   :  { %4382 = vmatpush3.bf16.msra.mxu1 %v1096_v17  ;;  %v5031_v2 = vpop.eup %5030 }
 0xf31   :  { %4383 = vmatprep.subr.bf16.mxu1 %v1094_v57  ;;  %4385 = vmatprep.mubr.msk.bf16.mxu1 %vm374_vm6, %v1089_v4  ;;  %v1090_v10 = vpack.c.bf16 %v1084_v61, %v1083_v5  ;;  %v1085_v11 = vmul.f32 %v5031_v2, %v5017_v47 }
 0xf34   :  { %v5033_v59 = vpop.eup %5032  ;;  %4384 = vmatpush3.bf16.msra.mxu1 %v1094_v57 }
 0xf35   :  { %v1086_v16 = vmul.f32 %v5033_v59, %v5021_v38  ;;  %4393 = vmatprep.subr.bf16.mxu1 %v5334_v1  ;;  %v5035_v22 = vpop.eup %5034 }
 0xf36   :  { %v5037_v7 = vpop.eup %5036  ;;  %v1088_v0 = vmul.f32 %v5035_v22, %v5019_v51  ;;  %v1262_v22 = vld [vmem:[#allocation7 + $0x40] sm:$0xff] }
 0xf37   :  { %4386 = vmatmul.mubr.msk.bf16.vlgmr.msra.gmra.mxu1 %vm374_vm6, %v1090_v10  ;;  %v1091_v20 = vpack.c.bf16 %v1086_v16, %v1085_v11  ;;  %v1087_v25 = vmul.f32 %v5037_v7, %v5650_v41  ;;  %v1264_v11 = vld [vmem:[#allocation7 + $0x110] sm:$0xff]  ;;  %v1265_v16 = vld [vmem:[#allocation7 + $0x178] sm:$0xff]  ;;  %v1263_v7 = vld [vmem:[#allocation7 + $0xa8] sm:$0xff] }
 0xf38   :  { %4394 = vmatpush3.bf16.msra.mxu1 %v1214_v28 }
 0xf39   :  { %4389 = vmatprep.mubr.msk.bf16.mxu1 %vm374_vm6, %v1091_v20  ;;  %v1092_v19 = vpack.c.bf16 %v1088_v0, %v1087_v25  ;;  %4395 = vmatprep.subr.bf16.mxu1 %v5334_v1  ;;  %v1298_v20 = vpack.c.bf16 %v1265_v16, %v1264_v11  ;;  %v1297_v0 = vpack.c.bf16 %v1263_v7, %v1262_v22 }
 0xf3c   :  { %4396 = vmatpush3.bf16.msra.mxu1 %v1213_v35  ;;  %v4006_v35 = vld [vmem:[#allocation5 + $0xc0] ss:$0 sm:$0xff] }
 0xf3d   :  { %4401 = vmatprep.subr.bf16.mxu1 %v5334_v1 }
 0xf3f   :  { %4390 = vmatmul.mubr.msk.bf16.gmra.mxu1 %vm374_vm6, %v1092_v19 }
 0xf40   :  { %4397 = vmatprep.mubr.msk.bf16.mxu1 %vm5335_vm0, %v5334_v1 }
 0xff7   :  { %v4387_v29 = vpop.f32.mrf.mxu1 }
 0xff9   :  { %v1151_v31 = vpop.f32.mrf.mxu1 }
 0xffb   :  { %v4388_v39 = vpop.f32.mrf.mxu1 }
 0xffc   :  { %v4792_v13 = vpack.i.bf16 %v4388_v39, %v4387_v29 }
 0xffd   :  { %v1154_v40 = vpop.f32.mrf.mxu1 }
 0xffe   :  { %4793 = vrot.lane.b32.xlu0 %v4792_v13, %s5329_s21 }
 0xfff   :  { %v4391_v41 = vpop.f32.mrf.mxu1 }
0x1001   :  { %v1167_v44 = vpop.f32.mrf.mxu1 }
0x1003   :  { %v4392_v46 = vpop.f32.mrf.mxu1 }
0x1004   :  { %v4802_v47 = vpack.i.bf16 %v4392_v46, %v4391_v41 }
0x1005   :  { %v1170_v51 = vpop.f32.mrf.mxu1 }
0x1006   :  { %v4797_v36 = vpack.i.bf16 %v1170_v51, %v1167_v44  ;;  %4803 = vrot.lane.b32.xlu0 %v4802_v47, %s5341_s13 }
0x1008   :  { %4798 = vrot.lane.b32.xlu1 %v4797_v36, %s5342_s14 }
0x1070   :  { %v4794_v52 = vpop.permute.xlu0 %4793 }
0x1071   :  { %v4796_v38 = vunpack.i.h.bf16 %v4794_v52  ;;  %v4795_v54 = vunpack.i.l.bf16 %v4794_v52 }
0x1073   :  { %v1206_v50 = vsel %vm284_vm5, %v1151_v31, %v4795_v54  ;;  %v1207_v56 = vsel %vm284_vm5, %v1154_v40, %v4796_v38 }
0x1078   :  { %v4804_v55 = vpop.permute.xlu0 %4803 }
0x1079   :  { %v4806_v49 = vunpack.i.h.bf16 %v4804_v55  ;;  %v4805_v53 = vunpack.i.l.bf16 %v4804_v55  ;;  %v1270_v55 = vld [vmem:[#allocation5 + $0x200] sm:$0xff] }
0x107a   :  { %v4799_v42 = vpop.permute.xlu1 %4798 }
0x107b   :  { %v4801_v45 = vunpack.i.h.bf16 %v4799_v42  ;;  %v4800_v33 = vunpack.i.l.bf16 %v4799_v42  ;;  %v1271_v42 = vld [vmem:[#allocation5 + $0x208] sm:$0xff] }
0x107d   :  { %v1209_v17 = vsel %vm582_vm7, %v1207_v56, %v4801_v45  ;;  %v1208_v60 = vsel %vm582_vm7, %v1206_v50, %v4800_v33  ;;  %v1374_v45 = vpack.c.bf16 %v1271_v42, %v1270_v55  ;;  %v1268_v33 = vld [vmem:[#allocation5 + $0x1f0] sm:$0xff]  ;;  %v1269_v50 = vld [vmem:[#allocation5 + $0x1f8] sm:$0xff] }
0x107e   :  { %v1211_v58 = vsel %vm585_vm8, %v1209_v17, %v4806_v49  ;;  %v1210_v6 = vsel %vm585_vm8, %v1208_v60, %v4805_v53  ;;  %v1373_v56 = vpack.c.bf16 %v1269_v50, %v1268_v33  ;;  %v1266_v49 = vld [vmem:[#allocation5 + $0x1e0] sm:$0xff]  ;;  %v1267_v53 = vld [vmem:[#allocation5 + $0x1e8] sm:$0xff] }
0x107f   :  { %v1212_v37 = vpack.c.bf16 %v1211_v58, %v1210_v6  ;;  %v1372_v17 = vpack.c.bf16 %v1267_v53, %v1266_v49 }
0x1081   :  { %4398 = vmatmul.mubr.msk.bf16.vlgmr.msra.gmra.mxu1 %vm179_vm4, %v1212_v37 }
0x1082   :  { %4405 = vmatprep.mubr.msk.bf16.mxu1 %vm5335_vm0, %v5334_v1  ;;  %4402 = vmatpush3.bf16.msra.mxu1 %v1298_v20 }
0x1083   :  { %4403 = vmatprep.subr.bf16.mxu1 %v5334_v1 }
0x1086   :  { %4404 = vmatpush3.bf16.msra.mxu1 %v1297_v0 }
0x1087   :  { %4421 = vmatprep.subr.bf16.mxu1 %v5334_v1 }
0x1141   :  { %v1252_v62 = vpop.f32.mrf.mxu1 }
0x1142   :  { %v5687_v63 = vadd.f32 %v1252_v62, %v5581_v14  ;;  %v4011_v14 = vld [vmem:[%s6235_s0 + $0x18] sm:$0xff] }
0x1143   :  { %v4399_v3 = vpop.f32.mrf.mxu1 }
0x1144   :  { %v1274_v57 = vmul.f32 %v5687_v63, %v5687_v63 }
0x1145   :  { %v1255_v4 = vpop.f32.mrf.mxu1 }
0x1146   :  { %v5692_v61 = vadd.f32 %v1255_v4, %v5586_v23  ;;  %v1276_v2 = vsel %vm179_vm4, %v1274_v57, 0.0  ;;  %v4010_v23 = vld [vmem:[%s6235_s0 + $0x10] sm:$0xff] }
0x1147   :  { %1277 = vadd.xlane.f32.xlu1 %v1276_v2  ;;  %v4400_v5 = vpop.f32.mrf.mxu1 }
0x1148   :  { %v1275_v59 = vmul.f32 %v5692_v61, %v5692_v61 }
0x114a   :  { %v1279_v10 = vsel %vm179_vm4, %v1275_v59, 0.0 }
0x114b   :  { %1280 = vadd.xlane.f32.xlu0 %v1279_v10 }
0x1158   :  { %1452 = vperm.xlu1 %4807, %v4011_v14  }
0x1161   :  { %1449 = vperm.xlu0 %4746, %v4010_v23  }
0x11d0   :  { %v1278_v25 = vpop.xlane.xlu1 %1277 }
0x11d1   :  { %v1282_v19 = vmul.f32 0.03125, %v1278_v25 }
0x11d3   :  { %v1284_v43 = vadd.f32 1e-06, %v1282_v19 }
0x11d4   :  { %v1281_v26 = vpop.xlane.xlu0 %1280 }
0x11d5   :  { %5038 = vrsqrt.f32 %v1284_v43  ;;  %v1283_v28 = vmul.f32 0.03125, %v1281_v26 }
0x11d7   :  { %v1285_v29 = vadd.f32 1e-06, %v1283_v28 }
0x11d9   :  { %5040 = vrsqrt.f32 %v1285_v29  ;;  %v1505_v29 = vld [vmem:[#allocation7 + $0xe8] sm:$0xff] }
0x11e2   :  { %v5039_v31 = vpop.eup %5038 }
0x11e3   :  { %v1288_v34 = vmul.f32 %v5039_v31, %v5687_v63  ;;  %v1506_v31 = vld [vmem:[#allocation7 + $0x150] sm:$0xff] }
0x11e5   :  { %v1294_v13 = vmul.f32 %v4006_v35, %v1288_v34 }
0x11e6   :  { %v5041_v48 = vpop.eup %5040 }
0x11e7   :  { %v1289_v39 = vmul.f32 %v5041_v48, %v5692_v61 }
0x11e9   :  { %v1295_v40 = vmul.f32 %v4006_v35, %v1289_v39  ;;  %v1535_v39 = vpack.c.bf16 %v1506_v31, %v1505_v29 }
0x11eb   :  { %v1296_v41 = vpack.c.bf16 %v1295_v40, %v1294_v13  ;;  %v1503_v40 = vld [vmem:[#allocation7 + $0x18] sm:$0xff] }
0x11ed   :  { %4406 = vmatmul.mubr.msk.bf16.vlgmr.msra.gmra.mxu1 %vm179_vm4, %v1296_v41  ;;  %v1504_v41 = vld [vmem:[#allocation7 + $0x80] sm:$0xff] }
0x11ee   :  { %4422 = vmatpush3.bf16.msra.mxu1 %v5390_v8  ;;  %4437 = vmatprep.mubr.msk.bf16.mxu1 %vm5335_vm0, %v5334_v1  ;;  %v1453_v8 = vpop.permute.xlu1 %1452 }
0x11ef   :  { %4423 = vmatprep.subr.bf16.mxu1 %v5334_v1  ;;  %vm1455_vm9 = vcmp.eq.s32.totalorder %v5425_v30, %v1453_v8  ;;  %v1534_v8 = vpack.c.bf16 %v1504_v41, %v1503_v40  ;;  %v101_v40 = vld [vmem:[#allocation2 + $0x70] sm:$0xff] }
0x11f2   :  { %4424 = vmatpush3.bf16.msra.mxu1 %v5397_v9  ;;  %v1450_v9 = vpop.permute.xlu0 %1449 }
0x11f3   :  { %4425 = vmatprep.subr.bf16.mxu1 %v5334_v1  ;;  %vm1454_vm10 = vcmp.eq.s32.totalorder %v5425_v30, %v1450_v9 }
0x11f4   :  { %vm4014_vm11 = vmpackc.low %vm1455_vm9, %vm1454_vm10 }
0x11f6   :  { %4426 = vmatpush3.bf16.msra.mxu1 %v5401_v12  ;;  %v1272_v12 = vld [vmem:[#allocation5 + $0x210] sm:$0xff] }
0x11f7   :  { %4427 = vmatprep.subr.bf16.mxu1 %v5334_v1 }
0x11fa   :  { %4428 = vmatpush3.bf16.msra.mxu1 %v5405_v15  ;;  %v1273_v15 = vld [vmem:[#allocation5 + $0x218] sm:$0xff] }
0x11fb   :  { %4429 = vmatprep.subr.bf16.mxu1 %v5334_v1 }
0x11fe   :  { %4430 = vmatpush3.bf16.msra.mxu1 %v5409_v18  ;;  %v1375_v18 = vpack.c.bf16 %v1273_v15, %v1272_v12 }
0x11ff   :  { %4431 = vmatprep.subr.bf16.mxu1 %v5334_v1 }
0x1200   :  { %4410 = vmatpush3.bf16.msra.mxu0 %v1375_v18  ;;  %v4016_v18 = vld [vmem:[#allocation5 + $0xa0] ss:$0 sm:$0xff] }
0x1201   :  { %4411 = vmatprep.subr.bf16.mxu0 %v5334_v1 }
0x1202   :  { %4432 = vmatpush3.bf16.msra.mxu1 %v5413_v21 }
0x1203   :  { %4433 = vmatprep.subr.bf16.mxu1 %v5334_v1 }
0x1204   :  { %4412 = vmatpush3.bf16.msra.mxu0 %v1374_v45 }
0x1205   :  { %4413 = vmatprep.subr.bf16.mxu0 %v5334_v1 }
0x1206   :  { %4434 = vmatpush3.bf16.msra.mxu1 %v5417_v24 }
0x1207   :  { %4435 = vmatprep.subr.bf16.mxu1 %v5334_v1 }
0x1208   :  { %4414 = vmatpush3.bf16.msra.mxu0 %v1373_v56 }
0x1209   :  { %4415 = vmatprep.subr.bf16.mxu0 %v5334_v1 }
0x120a   :  { %4436 = vmatpush3.bf16.msra.mxu1 %v5421_v27 }
0x120c   :  { %4416 = vmatpush3.bf16.msra.mxu0 %v1372_v17 }
0x120d   :  { %4438 = vmatmul.mubr.msk.bf16.vlgmr.msra.gmra.mxu1 %vm4014_vm11, %v5336_v32  ;;  %4441 = vmatprep.subr.bf16.mxu0 %v5334_v1 }
0x12ad   :  { %v1336_v21 = vpop.f32.mrf.mxu1 }
0x12ae   :  { %v1343_v60 = vmul.f32 %v1336_v21, %v1336_v21 }
0x12af   :  { %v4407_v44 = vpop.f32.mrf.mxu1 }
0x12b0   :  { %v1345_v6 = vmul.f32 %v1343_v60, %v1336_v21 }
0x12b1   :  { %v1339_v24 = vpop.f32.mrf.mxu1 }
0x12b2   :  { %v1344_v58 = vmul.f32 %v1339_v24, %v1339_v24  ;;  %v1347_v62 = vmul.f32 0.044715, %v1345_v6 }
0x12b3   :  { %v4408_v46 = vpop.f32.mrf.mxu1 }
0x12b4   :  { %v1346_v37 = vmul.f32 %v1344_v58, %v1339_v24  ;;  %v1349_v57 = vadd.f32 %v1347_v62, %v1336_v21 }
0x12b6   :  { %v1348_v3 = vmul.f32 0.044715, %v1346_v37  ;;  %v1351_v2 = vmul.f32 0.7978846, %v1349_v57 }
0x12b8   :  { %v1350_v4 = vadd.f32 %v1348_v3, %v1339_v24  ;;  %5042 = vtanh.f32 %v1351_v2 }
0x12ba   :  { %v1352_v5 = vmul.f32 0.7978846, %v1350_v4 }
0x12bc   :  { %5044 = vtanh.f32 %v1352_v5 }
0x12c5   :  { %v5043_v59 = vpop.eup %5042 }
0x12c6   :  { %v1355_v23 = vadd.f32 1.0, %v5043_v59 }
0x12c8   :  { %v1357_v7 = vmul.f32 0.5, %v1355_v23 }
0x12c9   :  { %v5045_v10 = vpop.eup %5044 }
0x12ca   :  { %v1356_v14 = vadd.f32 1.0, %v5045_v10  ;;  %v1359_v28 = vmul.f32 %v1357_v7, %v1336_v21 }
0x12cc   :  { %v1358_v20 = vmul.f32 0.5, %v1356_v14 }
0x12cd   :  { %v5730_v47 = vpop.f32.mrf.mxu1 }
0x12ce   :  { %v1511_v51 = vmul.f32 %v5730_v47, %v5730_v47  ;;  %v1360_v43 = vmul.f32 %v1358_v20, %v1339_v24  ;;  %v97_v20 = vld [vmem:[#allocation2 + $0x50] sm:$0xff] }
0x12cf   :  { %v4439_v36 = vpop.f32.mrf.mxu1 }
0x12d0   :  { %v1513_v27 = vsel %vm179_vm4, %v1511_v51, 0.0 }
0x12d1   :  { %1514 = vadd.xlane.f32.xlu1 %v1513_v27  ;;  %v5735_v32 = vpop.f32.mrf.mxu1 }
0x12d2   :  { %v1512_v52 = vmul.f32 %v5735_v32, %v5735_v32 }
0x12d3   :  { %v4440_v38 = vpop.f32.mrf.mxu1 }
0x12d4   :  { %v1516_v54 = vsel %vm179_vm4, %v1512_v52, 0.0 }
0x12d5   :  { %1517 = vadd.xlane.f32.xlu0 %v1516_v54 }
0x12e2   :  { %1365 = vrot.lane.b32.xlu1 %v1339_v24, %s5340_s12 }
0x12eb   :  { %1363 = vrot.lane.b32.xlu0 %v1336_v21, %s5340_s12 }
0x135a   :  { %v1515_v11 = vpop.xlane.xlu1 %1514 }
0x135b   :  { %v1519_v16 = vmul.f32 0.03125, %v1515_v11 }
0x135d   :  { %v1521_v22 = vadd.f32 1e-06, %v1519_v16 }
0x135e   :  { %v1518_v0 = vpop.xlane.xlu0 %1517  ;;  %v1366_v19 = vpop.permute.xlu1 %1365 }
0x135f   :  { %5046 = vrsqrt.f32 %v1521_v22  ;;  %v1520_v25 = vmul.f32 0.03125, %v1518_v0  ;;  %v1370_v48 = vmul.f32 %v1366_v19, %v1360_v43  ;;  %v95_v22 = vld [vmem:[#allocation2 + $0x40] sm:$0xff]  ;;  %v96_v19 = vld [vmem:[#allocation2 + $0x48] sm:$0xff] }
0x1361   :  { %v1522_v26 = vadd.f32 1e-06, %v1520_v25 }
0x1362   :  { %v1364_v34 = vpop.permute.xlu0 %1363 }
0x1363   :  { %5048 = vrsqrt.f32 %v1522_v26  ;;  %v1369_v35 = vmul.f32 %v1364_v34, %v1359_v28  ;;  %v98_v28 = vld [vmem:[#allocation2 + $0x58] sm:$0xff] }
0x1365   :  { %v1371_v13 = vpack.c.bf16 %v1370_v48, %v1369_v35  ;;  %v99_v48 = vld [vmem:[#allocation2 + $0x60] sm:$0xff] }
0x1367   :  { %4418 = vmatmul.mubr.msk.bf16.vlgmr.msra.gmra.mxu0 %vm374_vm6, %v1371_v13 }
0x1368   :  { %4442 = vmatpush3.bf16.msra.mxu0 %v1535_v39  ;;  %4445 = vmatprep.mubr.msk.bf16.mxu0 %vm5335_vm0, %v5334_v1 }
0x1369   :  { %4443 = vmatprep.subr.bf16.mxu0 %v5334_v1 }
0x136c   :  { %v5047_v9 = vpop.eup %5046  ;;  %4444 = vmatpush3.bf16.msra.mxu0 %v1534_v8 }
0x136d   :  { %v1525_v12 = vmul.f32 %v5047_v9, %v5730_v47 }
0x136f   :  { %v1531_v44 = vmul.f32 %v4016_v18, %v1525_v12  ;;  %v100_v12 = vld [vmem:[#allocation2 + $0x68] sm:$0xff] }
0x1370   :  { %v5049_v15 = vpop.eup %5048 }
0x1371   :  { %v1526_v21 = vmul.f32 %v5049_v15, %v5735_v32 }
0x1373   :  { %v1532_v24 = vmul.f32 %v4016_v18, %v1526_v21 }
0x1375   :  { %v1533_v46 = vpack.c.bf16 %v1532_v24, %v1531_v44  ;;  %v102_v44 = vld [vmem:[#allocation2 + $0x78] sm:$0xff] }
0x1377   :  { %4446 = vmatmul.mubr.msk.bf16.vlgmr.msra.gmra.mxu0 %vm179_vm4, %v1533_v46 }
0x1427   :  { %v5752_v51 = vpop.f32.mrf.mxu0 }
0x1429   :  { %v4419_v36 = vpop.f32.mrf.mxu0 }
0x142b   :  { %v5754_v27 = vpop.f32.mrf.mxu0 }
0x142d   :  { %v4420_v52 = vpop.f32.mrf.mxu0 }
0x1437   :  { %v1573_v38 = vpop.f32.mrf.mxu0 }
0x1439   :  { %v4447_v54 = vpop.f32.mrf.mxu0 }
0x143b   :  { %v1576_v55 = vpop.f32.mrf.mxu0 }
0x143c   :  { %v5756_v42 = vpack.c.bf16 %v1576_v55, %v1573_v38  ;;  %v4813_v45 = vpack.i.bf16 %v1576_v55, %v1573_v38 }
0x143d   :  { %v4448_v33 = vpop.f32.mrf.mxu0 }
0x143e   :  { %4814 = vrot.lane.b32.xlu0 %v4813_v45, %s5337_s9  ;;  %4809 = vrot.lane.b32.xlu1 %v4813_v45, %s5332_s30 }
0x143f   :  { %4457 = vmatprep.mubr.msk.bf16.mxu0 %vm284_vm5, %v5756_v42 }
0x1442   :  { %4819 = vrot.lane.b32.xlu1 %v4813_v45, %s5338_s10 }
0x14b0   :  { %v4815_v50 = vpop.permute.xlu0 %4814  ;;  %v4810_v56 = vpop.permute.xlu1 %4809 }
0x14b1   :  { %v4817_v49 = vunpack.i.h.bf16 %v4815_v50  ;;  %v4816_v53 = vunpack.i.l.bf16 %v4815_v50  ;;  %v4812_v17 = vunpack.i.h.bf16 %v4810_v56  ;;  %v4811_v60 = vunpack.i.l.bf16 %v4810_v56 }
0x14b3   :  { %v5763_v58 = vpack.c.bf16 %v4817_v49, %v4816_v53  ;;  %v5765_v6 = vpack.c.bf16 %v4812_v17, %v4811_v60 }
0x14b4   :  { %v4820_v37 = vpop.permute.xlu1 %4819 }
0x14b5   :  { %v4822_v62 = vunpack.i.h.bf16 %v4820_v37  ;;  %v4821_v3 = vunpack.i.l.bf16 %v4820_v37  ;;  %1612 = vrot.lane.b32.xlu1 %v5763_v58, %s5339_s11  ;;  %1614 = vrot.lane.b32.xlu0 %v5765_v6, %s5339_s11 }
0x14b7   :  { %v5771_v57 = vpack.c.bf16 %v4822_v62, %v4821_v3 }
0x14b9   :  { %1610 = vrot.lane.b32.xlu0 %v5771_v57, %s5339_s11  ;;  %1608 = vrot.lane.b32.xlu1 %v5756_v42, %s5339_s11 }
0x1527   :  { %v1615_v4 = vpop.permute.xlu0 %1614  ;;  %v1613_v5 = vpop.permute.xlu1 %1612 }
0x1528   :  { %4705 = vmatprep.subr.msk.bf16.mxu0 %vm284_vm5, %v1615_v4  ;;  %v1638_v2 = vsel %vm284_vm5, %v1615_v4, 0  ;;  %v1635_v59 = vsel %vm284_vm5, %v1613_v5, 0 }
0x1529   :  { %4450 = vmatpush3.bf16.xpose.msra.mxu0 %v1638_v2 }
0x152a   :  { %4706 = vmatprep.subr.msk.bf16.mxu0 %vm284_vm5, %v1613_v5 }
0x152b   :  { %v1611_v10 = vpop.permute.xlu0 %1610  ;;  %v1609_v23 = vpop.permute.xlu1 %1608 }
0x152c   :  { %v1632_v14 = vsel %vm284_vm5, %v1611_v10, 0  ;;  %v1629_v11 = vsel %vm284_vm5, %v1609_v23, 0 }
0x1531   :  { %4452 = vmatpush3.bf16.xpose.msra.mxu0 %v1635_v59 }
0x1532   :  { %4707 = vmatprep.subr.msk.bf16.mxu0 %vm284_vm5, %v1611_v10 }
0x1539   :  { %4454 = vmatpush3.bf16.xpose.msra.mxu0 %v1632_v14 }
0x153a   :  { %4708 = vmatprep.subr.msk.bf16.mxu0 %vm284_vm5, %v1609_v23 }
0x1541   :  { %4456 = vmatpush3.bf16.xpose.msra.mxu0 %v1629_v11 }
0x1542   :  { %4481 = vmatprep.subr.bf16.mxu0 %v5334_v1 }
0x1548   :  { %4458 = vmatmul.mubr.msk.bf16.vlgmr.msra.gmra.mxu0 %vm284_vm5, %v5771_v57 }
0x1549   :  { %4461 = vmatprep.mubr.msk.bf16.mxu0 %vm284_vm5, %v5763_v58 }
0x1550   :  { %4462 = vmatmul.mubr.msk.bf16.gmra.mxu0 %vm284_vm5, %v5765_v6 }
0x1551   :  { %4485 = vmatprep.mubr.msk.bf16.mxu0 %vm5335_vm0, %v5334_v1 }
0x1608   :  { %v4459_v16 = vpop.f32.mrf.mxu0 }
0x1609   :  { %v1683_v43 = vadd.f32 %v4459_v16, %v97_v20 }
0x160a   :  { %v1674_v7 = vpop.f32.mrf.mxu0 }
0x160b   :  { %v1675_v0 = vadd.f32 %v1674_v7, %v95_v22  ;;  %v1711_v13 = vsel %vm374_vm6, %v1683_v43, -inf }
0x160c   :  { %v4460_v25 = vpop.f32.mrf.mxu0 }
0x160d   :  { %v1705_v26 = vsel %vm374_vm6, %v1675_v0, -inf  ;;  %v1686_v35 = vadd.f32 %v4460_v25, %v98_v28 }
0x160e   :  { %v1677_v29 = vpop.f32.mrf.mxu0  ;;  %1706 = vmax.xlane.f32.xlu0 %v1705_v26 }
0x160f   :  { %v1678_v31 = vadd.f32 %v1677_v29, %v96_v19  ;;  %v1714_v21 = vsel %vm374_vm6, %v1686_v35, -inf }
0x1610   :  { %v4463_v34 = vpop.f32.mrf.mxu0 }
0x1611   :  { %v1708_v39 = vsel %vm374_vm6, %v1678_v31, -inf  ;;  %v1699_v15 = vadd.f32 %v4463_v34, %v101_v40 }
0x1612   :  { %v1690_v41 = vpop.f32.mrf.mxu0  ;;  %1709 = vmax.xlane.f32.xlu1 %v1708_v39  ;;  %1712 = vmax.xlane.f32.xlu0 %v1711_v13 }
0x1613   :  { %v1691_v8 = vadd.f32 %v1690_v41, %v99_v48  ;;  %v1723_v52 = vsel %vm374_vm6, %v1699_v15, -inf }
0x1614   :  { %v4464_v9 = vpop.f32.mrf.mxu0 }
0x1615   :  { %v1717_v18 = vsel %vm374_vm6, %v1691_v8, -inf  ;;  %v1702_v36 = vadd.f32 %v4464_v9, %v102_v44 }
0x1616   :  { %v1693_v24 = vpop.f32.mrf.mxu0  ;;  %1718 = vmax.xlane.f32.xlu1 %v1717_v18  ;;  %1715 = vmax.xlane.f32.xlu0 %v1714_v21 }
0x1617   :  { %v1694_v46 = vadd.f32 %v1693_v24, %v100_v12  ;;  %v1726_v54 = vsel %vm374_vm6, %v1702_v36, -inf }
0x1619   :  { %v1720_v38 = vsel %vm374_vm6, %v1694_v46, -inf }
0x161a   :  { %1724 = vmax.xlane.f32.xlu1 %v1723_v52  ;;  %1721 = vmax.xlane.f32.xlu0 %v1720_v38 }
0x161e   :  { %1727 = vmax.xlane.f32.xlu0 %v1726_v54 }
0x162b   :  { %1803 = vrot.lane.b32.xlu1 %v5765_v6, %s5340_s12 }
0x1697   :  { %v1707_v55 = vpop.xlane.xlu0 %1706 }
0x1698   :  { %v1729_v45 = vsub.f32 %v1675_v0, %v1707_v55 }
0x169a   :  { %v1737_v53 = vmul.f32 1.442695, %v1729_v45 }
0x169b   :  { %v1710_v33 = vpop.xlane.xlu1 %1709  ;;  %v1713_v50 = vpop.xlane.xlu0 %1712 }
0x169c   :  { %v1731_v56 = vsub.f32 %v1683_v43, %v1713_v50  ;;  %v1730_v17 = vsub.f32 %v1678_v31, %v1710_v33 }
0x169e   :  { %v1741_v49 = vmul.f32 1.442695, %v1731_v56  ;;  %v1739_v4 = vmul.f32 1.442695, %v1730_v17 }
0x169f   :  { %v1719_v60 = vpop.xlane.xlu1 %1718  ;;  %v1716_v37 = vpop.xlane.xlu0 %1715 }
0x16a0   :  { %v1732_v62 = vsub.f32 %v1686_v35, %v1716_v37  ;;  %5050 = vpow2.f32 %v1741_v49  ;;  %v1733_v2 = vsub.f32 %v1691_v8, %v1719_v60 }
0x16a1   :  { %5052 = vpow2.f32 %v1737_v53 }
0x16a2   :  { %v1743_v3 = vmul.f32 1.442695, %v1732_v62  ;;  %v1745_v14 = vmul.f32 1.442695, %v1733_v2 }
0x16a3   :  { %v1725_v5 = vpop.xlane.xlu1 %1724  ;;  %v1722_v59 = vpop.xlane.xlu0 %1721 }
0x16a4   :  { %v1735_v10 = vsub.f32 %v1699_v15, %v1725_v5  ;;  %5054 = vpow2.f32 %v1743_v3  ;;  %v1734_v23 = vsub.f32 %v1694_v46, %v1722_v59 }
0x16a5   :  { %5056 = vpow2.f32 %v1739_v4 }
0x16a6   :  { %v1749_v6 = vmul.f32 1.442695, %v1735_v10  ;;  %v1747_v7 = vmul.f32 1.442695, %v1734_v23  ;;  %v1509_v10 = vld [vmem:[#allocation5 + $0x150] sm:$0xff] }
0x16a7   :  { %v1804_v11 = vpop.permute.xlu1 %1803  ;;  %v1728_v16 = vpop.xlane.xlu0 %1727 }
0x16a8   :  { %5058 = vpow2.f32 %v1749_v6  ;;  %v1736_v22 = vsub.f32 %v1702_v36, %v1728_v16  ;;  %4465 = vmatprep.subr.bf16.mxu1 %v1804_v11  ;;  %v1510_v6 = vld [vmem:[#allocation5 + $0x158] sm:$0xff]  ;;  %v1507_v16 = vld [vmem:[#allocation5 + $0x140] sm:$0xff] }
0x16a9   :  { %4466 = vmatpush3.bf16.msra.mxu1 %v1804_v11  ;;  %5060 = vpow2.f32 %v1745_v14  ;;  %v1918_v14 = vpack.c.bf16 %v1510_v6, %v1509_v10 }
0x16aa   :  { %v1751_v20 = vmul.f32 1.442695, %v1736_v22  ;;  %v1508_v22 = vld [vmem:[#allocation5 + $0x148] sm:$0xff] }
0x16ab   :  { %4482 = vmatpush3.bf16.msra.mxu0 %v1918_v14 }
0x16ac   :  { %5062 = vpow2.f32 %v1751_v20  ;;  %4483 = vmatprep.subr.bf16.mxu0 %v5334_v1  ;;  %v1917_v20 = vpack.c.bf16 %v1508_v22, %v1507_v16 }
0x16ad   :  { %v5051_v0 = vpop.eup %5050  ;;  %5064 = vpow2.f32 %v1747_v7 }
0x16ae   :  { %v1759_v25 = vsel %vm374_vm6, %v5051_v0, 0.0  ;;  %v5053_v19 = vpop.eup %5052 }
0x16af   :  { %1760 = vadd.xlane.f32.xlu1 %v1759_v25  ;;  %v1753_v26 = vsel %vm374_vm6, %v5053_v19, 0.0  ;;  %4484 = vmatpush3.bf16.msra.mxu0 %v1917_v20 }
0x16b0   :  { %4497 = vmatprep.subr.bf16.mxu0 %v5334_v1 }
0x16b1   :  { %v5055_v43 = vpop.eup %5054 }
0x16b2   :  { %v1762_v28 = vsel %vm374_vm6, %v5055_v43, 0.0  ;;  %v5057_v29 = vpop.eup %5056 }
0x16b3   :  { %1754 = vadd.xlane.f32.xlu1 %v1753_v26  ;;  %1763 = vadd.xlane.f32.xlu0 %v1762_v28  ;;  %v1756_v48 = vsel %vm374_vm6, %v5057_v29, 0.0 }
0x16b5   :  { %v5807_v31 = vpop.eup %5058 }
0x16b6   :  { %v1771_v34 = vsel %vm374_vm6, %v5807_v31, 0.0  ;;  %v5061_v35 = vpop.eup %5060 }
0x16b7   :  { %1772 = vadd.xlane.f32.xlu1 %v1771_v34  ;;  %1757 = vadd.xlane.f32.xlu0 %v1756_v48  ;;  %v1765_v40 = vsel %vm374_vm6, %v5061_v35, 0.0  ;;  %v1421_v34 = vadd.f32 %v5754_v27, %v5692_v61  ;;  %v1973_v61 = vld [vmem:[#allocation7 + $0x160] sm:$0xff] }
0x16b9   :  { %v5063_v39 = vpop.eup %5062  ;;  %v1424_v48 = vmul.f32 %v1421_v34, %v1421_v34 }
0x16ba   :  { %v1774_v13 = vsel %vm374_vm6, %v5063_v39, 0.0  ;;  %v5065_v41 = vpop.eup %5064 }
0x16bb   :  { %1766 = vadd.xlane.f32.xlu1 %v1765_v40  ;;  %1775 = vadd.xlane.f32.xlu0 %v1774_v13  ;;  %v1768_v8 = vsel %vm374_vm6, %v5065_v41, 0.0 }
0x16bf   :  { %1769 = vadd.xlane.f32.xlu0 %v1768_v8 }
0x16cc   :  { %1799 = vrot.lane.b32.xlu1 %v5771_v57, %s5340_s12 }
0x16d0   :  { %1797 = vrot.lane.b32.xlu1 %v5756_v42, %s5340_s12 }
0x16d5   :  { %1801 = vrot.lane.b32.xlu0 %v5763_v58, %s5340_s12 }
0x1738   :  { %v1761_v9 = vpop.xlane.xlu1 %1760 }
0x173c   :  { %v1755_v12 = vpop.xlane.xlu1 %1754  ;;  %v1764_v15 = vpop.xlane.xlu0 %1763 }
0x173d   :  { %5066 = vrcp.f32 %v1755_v12 }
0x1740   :  { %v1773_v18 = vpop.xlane.xlu1 %1772  ;;  %v1758_v21 = vpop.xlane.xlu0 %1757 }
0x1741   :  { %5068 = vrcp.f32 %v1758_v21 }
0x1742   :  { %5070 = vrcp.f32 %v1764_v15 }
0x1743   :  { %5072 = vrcp.f32 %v1761_v9 }
0x1744   :  { %v1767_v44 = vpop.xlane.xlu1 %1766  ;;  %v1776_v24 = vpop.xlane.xlu0 %1775 }
0x1745   :  { %5074 = vrcp.f32 %v1767_v44  ;;  %v1972_v44 = vld [vmem:[#allocation7 + $0xf8] sm:$0xff] }
0x1748   :  { %v1770_v46 = vpop.xlane.xlu0 %1769  ;;  %v1800_v57 = vpop.permute.xlu1 %1799 }
0x1749   :  { %5076 = vrcp.f32 %v1770_v46 }
0x174a   :  { %5078 = vrcp.f32 %v1776_v24  ;;  %v5067_v36 = vpop.eup %5066 }
0x174b   :  { %5080 = vrcp.f32 %v1773_v18  ;;  %v1785_v38 = vmul.f32 %v5067_v36, %v5053_v19 }
0x174c   :  { %v1802_v42 = vpop.permute.xlu0 %1801  ;;  %v1798_v45 = vpop.permute.xlu1 %1797 }
0x174d   :  { %4467 = vmatprep.subr.bf16.mxu1 %v1802_v42 }
0x174e   :  { %4468 = vmatpush3.bf16.msra.mxu1 %v1802_v42  ;;  %v5069_v58 = vpop.eup %5068 }
0x174f   :  { %4469 = vmatprep.subr.bf16.mxu1 %v1800_v57  ;;  %v5071_v52 = vpop.eup %5070  ;;  %v1786_v54 = vmul.f32 %v5069_v58, %v5057_v29  ;;  %v2049_v58 = vpack.c.bf16 %v1973_v61, %v1972_v44 }
0x1750   :  { %v5073_v55 = vpop.eup %5072  ;;  %v1788_v50 = vmul.f32 %v5071_v52, %v5055_v43 }
0x1751   :  { %v1793_v33 = vpack.c.bf16 %v1786_v54, %v1785_v38  ;;  %v1787_v49 = vmul.f32 %v5073_v55, %v5051_v0  ;;  %v1970_v38 = vld [vmem:[#allocation7 + $0x28] sm:$0xff]  ;;  %v1971_v54 = vld [vmem:[#allocation7 + $0x90] sm:$0xff] }
0x1752   :  { %4470 = vmatpush3.bf16.msra.mxu1 %v1800_v57  ;;  %v5075_v56 = vpop.eup %5074  ;;  %v2048_v55 = vpack.c.bf16 %v1971_v54, %v1970_v38 }
0x1753   :  { %4471 = vmatprep.subr.bf16.mxu1 %v1798_v45  ;;  %4473 = vmatprep.mubr.msk.bf16.mxu1 %vm374_vm6, %v1793_v33  ;;  %v1794_v17 = vpack.c.bf16 %v1788_v50, %v1787_v49  ;;  %v1789_v60 = vmul.f32 %v5075_v56, %v5061_v35  ;;  %v1420_v35 = vadd.f32 %v5752_v51, %v5687_v63 }
0x1755   :  { %v1423_v13 = vmul.f32 %v1420_v35, %v1420_v35 }
0x1756   :  { %v5077_v53 = vpop.eup %5076  ;;  %4472 = vmatpush3.bf16.msra.mxu1 %v1798_v45 }
0x1757   :  { %v1790_v37 = vmul.f32 %v5077_v53, %v5065_v41  ;;  %4489 = vmatprep.subr.bf16.mxu1 %v5334_v1  ;;  %v5079_v62 = vpop.eup %5078  ;;  %v1425_v40 = vsel %vm179_vm4, %v1423_v13, 0.0 }
0x1758   :  { %v5081_v4 = vpop.eup %5080  ;;  %v1792_v2 = vmul.f32 %v5079_v62, %v5063_v39  ;;  %v1428_v39 = vsel %vm179_vm4, %v1424_v48, 0.0  ;;  %v4009_v62 = vld [vmem:[#allocation5 + $0x80] ss:$0 sm:$0xff] }
0x1759   :  { %4474 = vmatmul.mubr.msk.bf16.vlgmr.msra.gmra.mxu1 %vm374_vm6, %v1794_v17  ;;  %v1795_v3 = vpack.c.bf16 %v1790_v37, %v1789_v60  ;;  %v1791_v5 = vmul.f32 %v5081_v4, %v5807_v31 }
0x175b   :  { %4477 = vmatprep.mubr.msk.bf16.mxu1 %vm374_vm6, %v1795_v3  ;;  %v1796_v59 = vpack.c.bf16 %v1792_v2, %v1791_v5 }
0x1761   :  { %4478 = vmatmul.mubr.msk.bf16.gmra.mxu1 %vm374_vm6, %v1796_v59 }
0x1762   :  { %4493 = vmatprep.mubr.msk.bf16.mxu1 %vm5335_vm0, %v5334_v1 }
0x1819   :  { %v4475_v23 = vpop.f32.mrf.mxu1 }
0x181b   :  { %v1855_v11 = vpop.f32.mrf.mxu1 }
0x181d   :  { %v4476_v7 = vpop.f32.mrf.mxu1 }
0x181e   :  { %v4823_v0 = vpack.i.bf16 %v4476_v7, %v4475_v23 }
0x181f   :  { %v1858_v25 = vpop.f32.mrf.mxu1 }
0x1820   :  { %4824 = vrot.lane.b32.xlu0 %v4823_v0, %s5329_s21  ;;  %v1969_v0 = vld [vmem:[#allocation7 + $0x158] sm:$0xff] }
0x1821   :  { %v4479_v19 = vpop.f32.mrf.mxu1 }
0x1823   :  { %v1871_v43 = vpop.f32.mrf.mxu1 }
0x1825   :  { %v4480_v26 = vpop.f32.mrf.mxu1 }
0x1826   :  { %v4833_v28 = vpack.i.bf16 %v4480_v26, %v4479_v19  ;;  %v1966_v19 = vld [vmem:[#allocation7 + $0x20] sm:$0xff] }
0x1827   :  { %v1874_v29 = vpop.f32.mrf.mxu1 }
0x1828   :  { %v4828_v31 = vpack.i.bf16 %v1874_v29, %v1871_v43  ;;  %4834 = vrot.lane.b32.xlu0 %v4833_v28, %s5341_s13  ;;  %v1967_v43 = vld [vmem:[#allocation7 + $0x88] sm:$0xff] }
0x182a   :  { %4829 = vrot.lane.b32.xlu1 %v4828_v31, %s5342_s14 }
0x1847   :  { %1429 = vadd.xlane.f32.xlu0 %v1428_v39 }
0x184e   :  { %1426 = vadd.xlane.f32.xlu1 %v1425_v40 }
0x1892   :  { %v4825_v41 = vpop.permute.xlu0 %4824 }
0x1893   :  { %v4827_v8 = vunpack.i.h.bf16 %v4825_v41  ;;  %v4826_v9 = vunpack.i.l.bf16 %v4825_v41 }
0x1895   :  { %v1910_v27 = vsel %vm284_vm5, %v1855_v11, %v4826_v9  ;;  %v1911_v63 = vsel %vm284_vm5, %v1858_v25, %v4827_v8 }
0x189a   :  { %v4835_v12 = vpop.permute.xlu0 %4834 }
0x189b   :  { %v4837_v51 = vunpack.i.h.bf16 %v4835_v12  ;;  %v4836_v24 = vunpack.i.l.bf16 %v4835_v12 }
0x189c   :  { %v4830_v15 = vpop.permute.xlu1 %4829 }
0x189d   :  { %v4832_v18 = vunpack.i.h.bf16 %v4830_v15  ;;  %v4831_v21 = vunpack.i.l.bf16 %v4830_v15 }
0x189f   :  { %v1913_v46 = vsel %vm582_vm7, %v1911_v63, %v4832_v18  ;;  %v1912_v57 = vsel %vm582_vm7, %v1910_v27, %v4831_v21  ;;  %v4027_v18 = vld [vmem:[#allocation5 + $0xa8] ss:$0 sm:$0xff] }
0x18a0   :  { %v1915_v42 = vsel %vm585_vm8, %v1913_v46, %v4837_v51  ;;  %v1914_v36 = vsel %vm585_vm8, %v1912_v57, %v4836_v24 }
0x18a1   :  { %v1916_v52 = vpack.c.bf16 %v1915_v42, %v1914_v36 }
0x18a3   :  { %4486 = vmatmul.mubr.msk.bf16.vlgmr.msra.gmra.mxu0 %vm179_vm4, %v1916_v52 }
0x18a4   :  { %4498 = vmatpush3.bf16.msra.mxu0 %v2049_v58  ;;  %4501 = vmatprep.mubr.msk.bf16.mxu0 %vm5335_vm0, %v5334_v1 }
0x18a5   :  { %4499 = vmatprep.subr.bf16.mxu0 %v5334_v1 }
0x18a8   :  { %4500 = vmatpush3.bf16.msra.mxu0 %v2048_v55 }
0x18d0   :  { %v1430_v45 = vpop.xlane.xlu0 %1429 }
0x18d1   :  { %v1432_v33 = vmul.f32 0.03125, %v1430_v45 }
0x18d3   :  { %v1434_v50 = vadd.f32 1e-06, %v1432_v33 }
0x18d5   :  { %5082 = vrsqrt.f32 %v1434_v50 }
0x18d7   :  { %v1427_v56 = vpop.xlane.xlu1 %1426 }
0x18d8   :  { %v1431_v49 = vmul.f32 0.03125, %v1427_v56 }
0x18da   :  { %v1433_v53 = vadd.f32 1e-06, %v1431_v49 }
0x18dc   :  { %5084 = vrsqrt.f32 %v1433_v53 }
0x18e2   :  { %v5083_v17 = vpop.eup %5082 }
0x18e3   :  { %v1438_v60 = vmul.f32 %v5083_v17, %v1421_v34 }
0x18e5   :  { %v1444_v2 = vmul.f32 %v4009_v62, %v1438_v60 }
0x18e9   :  { %v5085_v37 = vpop.eup %5084 }
0x18ea   :  { %v1437_v3 = vmul.f32 %v5085_v37, %v1420_v35 }
0x18ec   :  { %v1443_v4 = vmul.f32 %v4009_v62, %v1437_v3 }
0x18ee   :  { %v5850_v5 = vpack.c.bf16 %v1444_v2, %v1443_v4 }
0x18f0   :  { %4502 = vmatmul.mubr.msk.bf16.vlgmr.msra.gmra.mxu0 %vm179_vm4, %v5850_v5 }
0x1963   :  { %v1956_v59 = vpop.f32.mrf.mxu0 }
0x1964   :  { %v5855_v10 = vadd.f32 %v1956_v59, %v5730_v47  ;;  %v1968_v47 = vld [vmem:[#allocation7 + $0xf0] sm:$0xff] }
0x1965   :  { %v4487_v6 = vpop.f32.mrf.mxu0  ;;  %v2002_v25 = vpack.c.bf16 %v1969_v0, %v1968_v47 }
0x1966   :  { %v1978_v14 = vmul.f32 %v5855_v10, %v5855_v10 }
0x1967   :  { %v1959_v23 = vpop.f32.mrf.mxu0  ;;  %4490 = vmatpush3.bf16.msra.mxu1 %v2002_v25  ;;  %v104_v25 = vld [vmem:[#allocation2 + $0x80] sm:$0xff] }
0x1968   :  { %v5860_v11 = vadd.f32 %v1959_v23, %v5735_v32  ;;  %v1980_v16 = vsel %vm179_vm4, %v1978_v14, 0.0  ;;  %4491 = vmatprep.subr.bf16.mxu1 %v5334_v1  ;;  %v2001_v32 = vpack.c.bf16 %v1967_v43, %v1966_v19  ;;  %v107_v43 = vld [vmem:[#allocation2 + $0x98] sm:$0xff] }
0x1969   :  { %1981 = vadd.xlane.f32.xlu0 %v1980_v16  ;;  %v4488_v22 = vpop.f32.mrf.mxu0 }
0x196a   :  { %v1979_v20 = vmul.f32 %v5860_v11, %v5860_v11 }
0x196b   :  { %4492 = vmatpush3.bf16.msra.mxu1 %v2001_v32 }
0x196c   :  { %v1983_v7 = vsel %vm179_vm4, %v1979_v20, 0.0 }
0x196d   :  { %1984 = vadd.xlane.f32.xlu1 %v1983_v7 }
0x19b0   :  { %v2087_v26 = vpop.f32.mrf.mxu0 }
0x19b2   :  { %v4503_v28 = vpop.f32.mrf.mxu0 }
0x19b3   :  { %v105_v28 = vld [vmem:[#allocation2 + $0x88] sm:$0xff] }
0x19b4   :  { %v2090_v29 = vpop.f32.mrf.mxu0 }
0x19b5   :  { %v4843_v31 = vpack.i.bf16 %v2090_v29, %v2087_v26  ;;  %v5867_v34 = vpack.c.bf16 %v2090_v29, %v2087_v26 }
0x19b6   :  { %v4504_v48 = vpop.f32.mrf.mxu0 }
0x19b7   :  { %4844 = vrot.lane.b32.xlu1 %v4843_v31, %s5337_s9  ;;  %4839 = vrot.lane.b32.xlu0 %v4843_v31, %s5332_s30  ;;  %v2155_v56 = vsel %vm284_vm5, %v5867_v34, 0  ;;  %v106_v48 = vld [vmem:[#allocation2 + $0x90] sm:$0xff] }
0x19bb   :  { %4849 = vrot.lane.b32.xlu1 %v4843_v31, %s5338_s10 }
0x19f2   :  { %v1982_v35 = vpop.xlane.xlu0 %1981 }
0x19f3   :  { %v1986_v39 = vmul.f32 0.03125, %v1982_v35 }
0x19f5   :  { %v1988_v13 = vadd.f32 1e-06, %v1986_v39 }
0x19f6   :  { %v1985_v40 = vpop.xlane.xlu1 %1984 }
0x19f7   :  { %5086 = vrsqrt.f32 %v1988_v13  ;;  %v1987_v41 = vmul.f32 0.03125, %v1985_v40 }
0x19f9   :  { %v1989_v8 = vadd.f32 1e-06, %v1987_v41 }
0x19fb   :  { %5088 = vrsqrt.f32 %v1989_v8 }
0x1a04   :  { %v5087_v9 = vpop.eup %5086 }
0x1a05   :  { %v1992_v12 = vmul.f32 %v5087_v9, %v5855_v10 }
0x1a07   :  { %v1998_v44 = vmul.f32 %v4027_v18, %v1992_v12  ;;  %v108_v12 = vld [vmem:[#allocation2 + $0xa0] sm:$0xff] }
0x1a08   :  { %v5089_v15 = vpop.eup %5088 }
0x1a09   :  { %v1993_v21 = vmul.f32 %v5089_v15, %v5860_v11 }
0x1a0b   :  { %v1999_v61 = vmul.f32 %v4027_v18, %v1993_v21  ;;  %v109_v18 = vld [vmem:[#allocation2 + $0xa8] sm:$0xff] }
0x1a0d   :  { %v2000_v27 = vpack.c.bf16 %v1999_v61, %v1998_v44  ;;  %v110_v61 = vld [vmem:[#allocation2 + $0xb0] sm:$0xff] }
0x1a0f   :  { %4494 = vmatmul.mubr.msk.bf16.vlgmr.msra.gmra.mxu1 %vm179_vm4, %v2000_v27  ;;  %v111_v27 = vld [vmem:[#allocation2 + $0xb8] sm:$0xff] }
0x1a29   :  { %v4845_v63 = vpop.permute.xlu1 %4844  ;;  %v4840_v51 = vpop.permute.xlu0 %4839 }
0x1a2a   :  { %v4847_v24 = vunpack.i.h.bf16 %v4845_v63  ;;  %v4846_v46 = vunpack.i.l.bf16 %v4845_v63  ;;  %v4842_v57 = vunpack.i.h.bf16 %v4840_v51  ;;  %v4841_v42 = vunpack.i.l.bf16 %v4840_v51 }
0x1a2c   :  { %v5875_v36 = vpack.c.bf16 %v4842_v57, %v4841_v42  ;;  %v5877_v58 = vpack.c.bf16 %v4847_v24, %v4846_v46 }
0x1a2d   :  { %v4850_v38 = vpop.permute.xlu1 %4849 }
0x1a2e   :  { %4709 = vmatprep.subr.msk.bf16.mxu1 %vm284_vm5, %v5875_v36  ;;  %v2164_v52 = vsel %vm284_vm5, %v5875_v36, 0  ;;  %v4852_v54 = vunpack.i.h.bf16 %v4850_v38  ;;  %v4851_v55 = vunpack.i.l.bf16 %v4850_v38  ;;  %v2161_v33 = vsel %vm284_vm5, %v5877_v58, 0 }
0x1a2f   :  { %4506 = vmatpush3.bf16.xpose.msra.mxu1 %v2164_v52 }
0x1a30   :  { %4710 = vmatprep.subr.msk.bf16.mxu1 %vm284_vm5, %v5877_v58  ;;  %v5885_v45 = vpack.c.bf16 %v4852_v54, %v4851_v55 }
0x1a32   :  { %v2158_v50 = vsel %vm284_vm5, %v5885_v45, 0 }
0x1a37   :  { %4508 = vmatpush3.bf16.xpose.msra.mxu1 %v2161_v33 }
0x1a38   :  { %4711 = vmatprep.subr.msk.bf16.mxu1 %vm284_vm5, %v5885_v45 }
0x1a3f   :  { %4510 = vmatpush3.bf16.xpose.msra.mxu1 %v2158_v50 }
0x1a40   :  { %4712 = vmatprep.subr.msk.bf16.mxu1 %vm284_vm5, %v5867_v34 }
0x1a47   :  { %4512 = vmatpush3.bf16.xpose.msra.mxu1 %v2155_v56 }
0x1a48   :  { %4553 = vmatprep.subr.bf16.mxu1 %v5334_v1 }
0x1acf   :  { %v2040_v49 = vpop.f32.mrf.mxu1 }
0x1ad1   :  { %v4495_v53 = vpop.f32.mrf.mxu1 }
0x1ad3   :  { %v2043_v17 = vpop.f32.mrf.mxu1 }
0x1ad4   :  { %v4858_v60 = vpack.i.bf16 %v2043_v17, %v2040_v49  ;;  %v2134_v37 = vpack.c.bf16 %v2043_v17, %v2040_v49 }
0x1ad5   :  { %v4496_v62 = vpop.f32.mrf.mxu1 }
0x1ad6   :  { %4513 = vmatprep.mubr.msk.bf16.mxu1 %vm284_vm5, %v2134_v37  ;;  %4859 = vrot.lane.b32.xlu1 %v4858_v60, %s5337_s9 }
0x1ad7   :  { %4854 = vrot.lane.b32.xlu0 %v4858_v60, %s5338_s10 }
0x1adb   :  { %4864 = vrot.lane.b32.xlu0 %v4858_v60, %s5332_s30 }
0x1b48   :  { %v4860_v3 = vpop.permute.xlu1 %4859 }
0x1b49   :  { %v4862_v4 = vunpack.i.h.bf16 %v4860_v3  ;;  %v4861_v2 = vunpack.i.l.bf16 %v4860_v3  ;;  %v4855_v59 = vpop.permute.xlu0 %4854 }
0x1b4a   :  { %v4857_v6 = vunpack.i.h.bf16 %v4855_v59  ;;  %v4856_v14 = vunpack.i.l.bf16 %v4855_v59 }
0x1b4b   :  { %v2136_v23 = vpack.c.bf16 %v4862_v4, %v4861_v2 }
0x1b4c   :  { %v2135_v16 = vpack.c.bf16 %v4857_v6, %v4856_v14 }
0x1b4d   :  { %v4865_v22 = vpop.permute.xlu0 %4864 }
0x1b4e   :  { %4514 = vmatmul.mubr.msk.bf16.vlgmr.msra.gmra.mxu1 %vm284_vm5, %v2135_v16  ;;  %v4867_v20 = vunpack.i.h.bf16 %v4865_v22  ;;  %v4866_v7 = vunpack.i.l.bf16 %v4865_v22 }
0x1b4f   :  { %4517 = vmatprep.mubr.msk.bf16.mxu1 %vm284_vm5, %v2136_v23 }
0x1b50   :  { %v2137_v47 = vpack.c.bf16 %v4867_v20, %v4866_v7 }
0x1b56   :  { %4518 = vmatmul.mubr.msk.bf16.gmra.mxu1 %vm284_vm5, %v2137_v47 }
0x1b57   :  { %4561 = vmatprep.mubr.msk.bf16.mxu1 %vm5335_vm0, %v5334_v1 }
0x1c0e   :  { %v4515_v0 = vpop.f32.mrf.mxu1 }
0x1c0f   :  { %v2209_v40 = vadd.f32 %v4515_v0, %v106_v48 }
0x1c10   :  { %v2200_v19 = vpop.f32.mrf.mxu1 }
0x1c11   :  { %v2201_v32 = vadd.f32 %v2200_v19, %v104_v25  ;;  %v2237_v44 = vsel %vm374_vm6, %v2209_v40, -inf }
0x1c12   :  { %v4516_v26 = vpop.f32.mrf.mxu1 }
0x1c13   :  { %v2212_v29 = vadd.f32 %v4516_v26, %v107_v43  ;;  %v2231_v31 = vsel %vm374_vm6, %v2201_v32, -inf }
0x1c14   :  { %v2203_v35 = vpop.f32.mrf.mxu1  ;;  %2232 = vmax.xlane.f32.xlu1 %v2231_v31 }
0x1c15   :  { %v2204_v39 = vadd.f32 %v2203_v35, %v105_v28  ;;  %v2240_v8 = vsel %vm374_vm6, %v2212_v29, -inf }
0x1c16   :  { %v4519_v13 = vpop.f32.mrf.mxu1 }
0x1c17   :  { %v2234_v41 = vsel %vm374_vm6, %v2204_v39, -inf  ;;  %v2225_v24 = vadd.f32 %v4519_v13, %v110_v61 }
0x1c18   :  { %v2216_v9 = vpop.f32.mrf.mxu1  ;;  %2235 = vmax.xlane.f32.xlu0 %v2234_v41  ;;  %2241 = vmax.xlane.f32.xlu1 %v2240_v8 }
0x1c19   :  { %v2217_v21 = vadd.f32 %v2216_v9, %v108_v12  ;;  %v2249_v52 = vsel %vm374_vm6, %v2225_v24, -inf }
0x1c1a   :  { %v4520_v15 = vpop.f32.mrf.mxu1 }
0x1c1b   :  { %v2228_v46 = vadd.f32 %v4520_v15, %v111_v27  ;;  %v2243_v57 = vsel %vm374_vm6, %v2217_v21, -inf }
0x1c1c   :  { %v2219_v63 = vpop.f32.mrf.mxu1  ;;  %2238 = vmax.xlane.f32.xlu0 %v2237_v44 }
0x1c1d   :  { %v2220_v51 = vadd.f32 %v2219_v63, %v109_v18  ;;  %v2252_v38 = vsel %vm374_vm6, %v2228_v46, -inf }
0x1c1f   :  { %v2246_v42 = vsel %vm374_vm6, %v2220_v51, -inf }
0x1c20   :  { %2244 = vmax.xlane.f32.xlu0 %v2243_v57  ;;  %2247 = vmax.xlane.f32.xlu1 %v2246_v42 }
0x1c24   :  { %2250 = vmax.xlane.f32.xlu0 %v2249_v52  ;;  %2253 = vmax.xlane.f32.xlu1 %v2252_v38 }
0x1c35   :  { %2331 = vrot.lane.b32.xlu1 %v5877_v58, %s5339_s11 }
0x1c3a   :  { %2333 = vrot.lane.b32.xlu0 %v5875_v36, %s5339_s11 }
0x1c9d   :  { %v2233_v54 = vpop.xlane.xlu1 %2232 }
0x1c9e   :  { %v2255_v49 = vsub.f32 %v2201_v32, %v2233_v54 }
0x1ca0   :  { %v2263_v62 = vmul.f32 1.442695, %v2255_v49 }
0x1ca1   :  { %v2236_v55 = vpop.xlane.xlu0 %2235  ;;  %v2242_v33 = vpop.xlane.xlu1 %2241 }
0x1ca2   :  { %v2256_v50 = vsub.f32 %v2204_v39, %v2236_v55  ;;  %v2258_v56 = vsub.f32 %v2212_v29, %v2242_v33 }
0x1ca4   :  { %v2269_v53 = vmul.f32 1.442695, %v2258_v56  ;;  %v2265_v17 = vmul.f32 1.442695, %v2256_v50 }
0x1ca5   :  { %v2239_v60 = vpop.xlane.xlu0 %2238 }
0x1ca6   :  { %v2257_v37 = vsub.f32 %v2209_v40, %v2239_v60  ;;  %5090 = vpow2.f32 %v2269_v53 }
0x1ca7   :  { %5092 = vpow2.f32 %v2265_v17 }
0x1ca8   :  { %v2267_v3 = vmul.f32 1.442695, %v2257_v37 }
0x1ca9   :  { %v2245_v4 = vpop.xlane.xlu0 %2244  ;;  %v2248_v2 = vpop.xlane.xlu1 %2247 }
0x1caa   :  { %5094 = vpow2.f32 %v2267_v3  ;;  %v2259_v58 = vsub.f32 %v2217_v21, %v2245_v4  ;;  %v2260_v36 = vsub.f32 %v2220_v51, %v2248_v2  ;;  %v1976_v2 = vld [vmem:[#allocation5 + $0x170] sm:$0xff] }
0x1cab   :  { %5096 = vpow2.f32 %v2263_v62 }
0x1cac   :  { %v2271_v16 = vmul.f32 1.442695, %v2259_v58  ;;  %v2273_v7 = vmul.f32 1.442695, %v2260_v36  ;;  %v1977_v58 = vld [vmem:[#allocation5 + $0x178] sm:$0xff] }
0x1cad   :  { %v2251_v59 = vpop.xlane.xlu0 %2250  ;;  %v2254_v6 = vpop.xlane.xlu1 %2253  ;;  %v2448_v36 = vpack.c.bf16 %v1977_v58, %v1976_v2 }
0x1cae   :  { %v2261_v14 = vsub.f32 %v2225_v24, %v2251_v59  ;;  %v2262_v23 = vsub.f32 %v2228_v46, %v2254_v6 }
0x1cb0   :  { %v2275_v22 = vmul.f32 1.442695, %v2261_v14  ;;  %v2277_v20 = vmul.f32 1.442695, %v2262_v23  ;;  %v1974_v14 = vld [vmem:[#allocation5 + $0x160] sm:$0xff]  ;;  %v1975_v23 = vld [vmem:[#allocation5 + $0x168] sm:$0xff] }
0x1cb1   :  { %v2334_v47 = vpop.permute.xlu0 %2333  ;;  %v2332_v0 = vpop.permute.xlu1 %2331 }
0x1cb2   :  { %5098 = vpow2.f32 %v2275_v22  ;;  %4521 = vmatprep.subr.bf16.mxu0 %v2334_v47 }
0x1cb3   :  { %5100 = vpow2.f32 %v2277_v20  ;;  %4522 = vmatpush3.bf16.msra.mxu0 %v2334_v47  ;;  %v5091_v25 = vpop.eup %5090 }
0x1cb4   :  { %5102 = vpow2.f32 %v2271_v16  ;;  %4523 = vmatprep.subr.bf16.mxu0 %v2332_v0  ;;  %v2288_v19 = vsel %vm374_vm6, %v5091_v25, 0.0  ;;  %v5093_v43 = vpop.eup %5092  ;;  %v2447_v16 = vpack.c.bf16 %v1975_v23, %v1974_v14  ;;  %v2505_v23 = vld [vmem:[#allocation5 + $0x1a8] sm:$0xff] }
0x1cb5   :  { %5104 = vpow2.f32 %v2273_v7  ;;  %2289 = vadd.xlane.f32.xlu1 %v2288_v19  ;;  %v2282_v29 = vsel %vm374_vm6, %v5093_v43, 0.0 }
0x1cb7   :  { %v5095_v32 = vpop.eup %5094  ;;  %4524 = vmatpush3.bf16.msra.mxu0 %v2332_v0 }
0x1cb8   :  { %v2285_v26 = vsel %vm374_vm6, %v5095_v32, 0.0  ;;  %v5097_v28 = vpop.eup %5096 }
0x1cb9   :  { %2286 = vadd.xlane.f32.xlu0 %v2285_v26  ;;  %2283 = vadd.xlane.f32.xlu1 %v2282_v29  ;;  %v2279_v31 = vsel %vm374_vm6, %v5097_v28, 0.0 }
0x1cbd   :  { %2280 = vadd.xlane.f32.xlu0 %v2279_v31 }
0x1cbf   :  { %v5099_v48 = vpop.eup %5098 }
0x1cc0   :  { %v5101_v35 = vpop.eup %5100  ;;  %v2297_v39 = vsel %vm374_vm6, %v5099_v48, 0.0 }
0x1cc1   :  { %v5103_v13 = vpop.eup %5102  ;;  %2298 = vadd.xlane.f32.xlu0 %v2297_v39  ;;  %v2300_v40 = vsel %vm374_vm6, %v5101_v35, 0.0 }
0x1cc2   :  { %v5105_v41 = vpop.eup %5104  ;;  %2301 = vadd.xlane.f32.xlu1 %v2300_v40  ;;  %v2291_v8 = vsel %vm374_vm6, %v5103_v13, 0.0 }
0x1cc3   :  { %v2294_v9 = vsel %vm374_vm6, %v5105_v41, 0.0 }
0x1cc5   :  { %2292 = vadd.xlane.f32.xlu0 %v2291_v8 }
0x1cc6   :  { %2295 = vadd.xlane.f32.xlu1 %v2294_v9 }
0x1cd7   :  { %2329 = vrot.lane.b32.xlu1 %v5885_v45, %s5339_s11 }
0x1cdb   :  { %2327 = vrot.lane.b32.xlu0 %v5867_v34, %s5339_s11 }
0x1d3e   :  { %v2290_v12 = vpop.xlane.xlu1 %2289 }
0x1d42   :  { %v2287_v15 = vpop.xlane.xlu0 %2286  ;;  %v2284_v18 = vpop.xlane.xlu1 %2283 }
0x1d43   :  { %5106 = vrcp.f32 %v2284_v18 }
0x1d44   :  { %5108 = vrcp.f32 %v2287_v15 }
0x1d46   :  { %v2281_v21 = vpop.xlane.xlu0 %2280 }
0x1d47   :  { %5110 = vrcp.f32 %v2281_v21 }
0x1d48   :  { %5112 = vrcp.f32 %v2290_v12 }
0x1d4a   :  { %v2299_v44 = vpop.xlane.xlu0 %2298 }
0x1d4b   :  { %v2302_v61 = vpop.xlane.xlu1 %2301  ;;  %5114 = vrcp.f32 %v2299_v44 }
0x1d4c   :  { %5116 = vrcp.f32 %v2302_v61 }
0x1d4e   :  { %v2293_v27 = vpop.xlane.xlu0 %2292 }
0x1d4f   :  { %5118 = vrcp.f32 %v2293_v27  ;;  %v2296_v63 = vpop.xlane.xlu1 %2295 }
0x1d50   :  { %5120 = vrcp.f32 %v2296_v63  ;;  %v5107_v45 = vpop.eup %5106 }
0x1d51   :  { %v5109_v51 = vpop.eup %5108  ;;  %v2312_v52 = vmul.f32 %v5107_v45, %v5093_v43 }
0x1d52   :  { %v2328_v57 = vpop.permute.xlu0 %2327  ;;  %v2313_v38 = vmul.f32 %v5109_v51, %v5095_v32 }
0x1d53   :  { %v2330_v24 = vpop.permute.xlu1 %2329 }
0x1d54   :  { %v5111_v34 = vpop.eup %5110  ;;  %4525 = vmatprep.subr.bf16.mxu0 %v2330_v24 }
0x1d55   :  { %v5113_v46 = vpop.eup %5112  ;;  %4526 = vmatpush3.bf16.msra.mxu0 %v2330_v24  ;;  %v2311_v42 = vmul.f32 %v5111_v34, %v5097_v28 }
0x1d56   :  { %4527 = vmatprep.subr.bf16.mxu0 %v2328_v57  ;;  %v2314_v55 = vmul.f32 %v5113_v46, %v5091_v25 }
0x1d57   :  { %v2319_v54 = vpack.c.bf16 %v2312_v52, %v2311_v42  ;;  %v2499_v42 = vld [vmem:[#allocation7 + $0x168] sm:$0xff] }
0x1d58   :  { %v5115_v33 = vpop.eup %5114  ;;  %v2320_v50 = vpack.c.bf16 %v2314_v55, %v2313_v38  ;;  %v2496_v38 = vld [vmem:[#allocation7 + $0x30] sm:$0xff] }
0x1d59   :  { %4528 = vmatpush3.bf16.msra.mxu0 %v2328_v57  ;;  %4529 = vmatprep.mubr.msk.bf16.mxu0 %vm374_vm6, %v2319_v54  ;;  %v5117_v56 = vpop.eup %5116  ;;  %v2317_v37 = vmul.f32 %v5115_v33, %v5099_v48  ;;  %v2497_v54 = vld [vmem:[#allocation7 + $0x98] sm:$0xff] }
0x1d5a   :  { %4537 = vmatprep.subr.bf16.mxu0 %v5334_v1  ;;  %v2318_v62 = vmul.f32 %v5117_v56, %v5101_v35 }
0x1d5c   :  { %v5119_v49 = vpop.eup %5118  ;;  %4530 = vmatmul.mubr.msk.bf16.vlgmr.msra.gmra.mxu0 %vm374_vm6, %v2320_v50  ;;  %v2322_v4 = vpack.c.bf16 %v2318_v62, %v2317_v37  ;;  %v4039_v62 = vld [vmem:[#allocation5 + $0xb0] ss:$0 sm:$0xff] }
0x1d5d   :  { %v5121_v53 = vpop.eup %5120  ;;  %v2315_v17 = vmul.f32 %v5119_v49, %v5103_v13  ;;  %4538 = vmatpush3.bf16.msra.mxu0 %v2448_v36  ;;  %v2506_v36 = vld [vmem:[#allocation5 + $0x1b0] sm:$0xff] }
0x1d5e   :  { %v2316_v60 = vmul.f32 %v5121_v53, %v5105_v41  ;;  %4539 = vmatprep.subr.bf16.mxu0 %v5334_v1 }
0x1d60   :  { %v2321_v3 = vpack.c.bf16 %v2316_v60, %v2315_v17 }
0x1d61   :  { %4540 = vmatpush3.bf16.msra.mxu0 %v2447_v16 }
0x1d62   :  { %4533 = vmatprep.mubr.msk.bf16.mxu0 %vm374_vm6, %v2321_v3  ;;  %4545 = vmatprep.subr.bf16.mxu0 %v5334_v1 }
0x1d64   :  { %4534 = vmatmul.mubr.msk.bf16.gmra.mxu0 %vm374_vm6, %v2322_v4 }
0x1d65   :  { %4541 = vmatprep.mubr.msk.bf16.mxu0 %vm5335_vm0, %v5334_v1 }
0x1e1c   :  { %v4531_v59 = vpop.f32.mrf.mxu0 }
0x1e1e   :  { %v2385_v6 = vpop.f32.mrf.mxu0 }
0x1e20   :  { %v4532_v22 = vpop.f32.mrf.mxu0 }
0x1e21   :  { %v4868_v20 = vpack.i.bf16 %v4532_v22, %v4531_v59  ;;  %v2507_v59 = vld [vmem:[#allocation5 + $0x1b8] sm:$0xff]  ;;  %v2502_v22 = vld [vmem:[#allocation5 + $0x190] sm:$0xff] }
0x1e22   :  { %v2388_v7 = vpop.f32.mrf.mxu0  ;;  %v2609_v14 = vpack.c.bf16 %v2507_v59, %v2506_v36 }
0x1e23   :  { %4869 = vrot.lane.b32.xlu1 %v4868_v20, %s5329_s21  ;;  %v2503_v20 = vld [vmem:[#allocation5 + $0x198] sm:$0xff] }
0x1e24   :  { %v4535_v47 = vpop.f32.mrf.mxu0  ;;  %4554 = vmatpush3.bf16.msra.mxu1 %v2609_v14  ;;  %v4042_v14 = vld [vmem:[#allocation5 + $0xc8] ss:$0 sm:$0xff] }
0x1e25   :  { %4555 = vmatprep.subr.bf16.mxu1 %v5334_v1 }
0x1e26   :  { %v2401_v0 = vpop.f32.mrf.mxu0 }
0x1e28   :  { %v4536_v25 = vpop.f32.mrf.mxu0 }
0x1e29   :  { %v4878_v19 = vpack.i.bf16 %v4536_v25, %v4535_v47  ;;  %v2500_v47 = vld [vmem:[#allocation5 + $0x180] sm:$0xff] }
0x1e2a   :  { %v2404_v43 = vpop.f32.mrf.mxu0 }
0x1e2b   :  { %v4873_v32 = vpack.i.bf16 %v2404_v43, %v2401_v0  ;;  %4879 = vrot.lane.b32.xlu1 %v4878_v19, %s5341_s13  ;;  %v2501_v0 = vld [vmem:[#allocation5 + $0x188] sm:$0xff] }
0x1e2c   :  { %v2606_v25 = vpack.c.bf16 %v2501_v0, %v2500_v47 }
0x1e2d   :  { %4874 = vrot.lane.b32.xlu0 %v4873_v32, %s5342_s14 }
0x1e95   :  { %v4870_v26 = vpop.permute.xlu1 %4869 }
0x1e96   :  { %v4872_v28 = vunpack.i.h.bf16 %v4870_v26  ;;  %v4871_v29 = vunpack.i.l.bf16 %v4870_v26 }
0x1e98   :  { %v2440_v13 = vsel %vm284_vm5, %v2385_v6, %v4871_v29  ;;  %v2441_v40 = vsel %vm284_vm5, %v2388_v7, %v4872_v28  ;;  %v2504_v6 = vld [vmem:[#allocation5 + $0x1a0] sm:$0xff]  ;;  %v2607_v7 = vpack.c.bf16 %v2503_v20, %v2502_v22 }
0x1e99   :  { %v2608_v16 = vpack.c.bf16 %v2505_v23, %v2504_v6 }
0x1e9b   :  { %4556 = vmatpush3.bf16.msra.mxu1 %v2608_v16 }
0x1e9c   :  { %4557 = vmatprep.subr.bf16.mxu1 %v5334_v1 }
0x1e9d   :  { %v4880_v31 = vpop.permute.xlu1 %4879 }
0x1e9e   :  { %v4882_v41 = vunpack.i.h.bf16 %v4880_v31  ;;  %v4881_v8 = vunpack.i.l.bf16 %v4880_v31 }
0x1e9f   :  { %v4875_v48 = vpop.permute.xlu0 %4874  ;;  %4558 = vmatpush3.bf16.msra.mxu1 %v2607_v7 }
0x1ea0   :  { %v4877_v35 = vunpack.i.h.bf16 %v4875_v48  ;;  %v4876_v39 = vunpack.i.l.bf16 %v4875_v48  ;;  %4559 = vmatprep.subr.bf16.mxu1 %v5334_v1 }
0x1ea2   :  { %v2443_v9 = vsel %vm582_vm7, %v2441_v40, %v4877_v35  ;;  %v2442_v12 = vsel %vm582_vm7, %v2440_v13, %v4876_v39 }
0x1ea3   :  { %v2445_v15 = vsel %vm585_vm8, %v2443_v9, %v4882_v41  ;;  %v2444_v18 = vsel %vm585_vm8, %v2442_v12, %v4881_v8  ;;  %4560 = vmatpush3.bf16.msra.mxu1 %v2606_v25 }
0x1ea4   :  { %v2446_v21 = vpack.c.bf16 %v2445_v15, %v2444_v18 }
0x1ea6   :  { %4542 = vmatmul.mubr.msk.bf16.vlgmr.msra.gmra.mxu0 %vm179_vm4, %v2446_v21 }
0x1ea7   :  { %4549 = vmatprep.mubr.msk.bf16.mxu0 %vm5335_vm0, %v5334_v1 }
0x1f66   :  { %v2486_v44 = vpop.f32.mrf.mxu0 }
0x1f67   :  { %v5953_v61 = vadd.f32 %v2486_v44, %v5855_v10  ;;  %v2498_v10 = vld [vmem:[#allocation7 + $0x100] sm:$0xff] }
0x1f68   :  { %v4543_v27 = vpop.f32.mrf.mxu0  ;;  %v2532_v52 = vpack.c.bf16 %v2499_v42, %v2498_v10 }
0x1f69   :  { %v2508_v63 = vmul.f32 %v5953_v61, %v5953_v61 }
0x1f6a   :  { %v2489_v45 = vpop.f32.mrf.mxu0  ;;  %4546 = vmatpush3.bf16.msra.mxu0 %v2532_v52 }
0x1f6b   :  { %v5958_v51 = vadd.f32 %v2489_v45, %v5860_v11  ;;  %v2510_v24 = vsel %vm179_vm4, %v2508_v63, 0.0  ;;  %4547 = vmatprep.subr.bf16.mxu0 %v5334_v1  ;;  %v2531_v11 = vpack.c.bf16 %v2497_v54, %v2496_v38 }
0x1f6c   :  { %2511 = vadd.xlane.f32.xlu0 %v2510_v24  ;;  %v4544_v34 = vpop.f32.mrf.mxu0 }
0x1f6d   :  { %v2509_v46 = vmul.f32 %v5958_v51, %v5958_v51 }
0x1f6e   :  { %4548 = vmatpush3.bf16.msra.mxu0 %v2531_v11 }
0x1f6f   :  { %v2513_v57 = vsel %vm179_vm4, %v2509_v46, 0.0  ;;  %4565 = vmatprep.subr.bf16.mxu0 %v5334_v1 }
0x1f70   :  { %2514 = vadd.xlane.f32.xlu1 %v2513_v57 }
0x1ff5   :  { %v2512_v55 = vpop.xlane.xlu0 %2511 }
0x1ff6   :  { %v2516_v33 = vmul.f32 0.03125, %v2512_v55 }
0x1ff8   :  { %v2518_v50 = vadd.f32 1e-06, %v2516_v33 }
0x1ff9   :  { %v2515_v56 = vpop.xlane.xlu1 %2514 }
0x1ffa   :  { %5122 = vrsqrt.f32 %v2518_v50  ;;  %v2517_v49 = vmul.f32 0.03125, %v2515_v56 }
0x1ffc   :  { %v2519_v53 = vadd.f32 1e-06, %v2517_v49  ;;  %v2660_v49 = vld [vmem:[#allocation7 + $0x180] sm:$0xff] }
0x1ffe   :  { %5124 = vrsqrt.f32 %v2519_v53 }
0x2007   :  { %v5123_v17 = vpop.eup %5122 }
0x2008   :  { %v2522_v60 = vmul.f32 %v5123_v17, %v5953_v61  ;;  %v2657_v17 = vld [vmem:[#allocation7 + $0x48] sm:$0xff] }
0x200a   :  { %v2528_v4 = vmul.f32 %v4039_v62, %v2522_v60  ;;  %v2658_v60 = vld [vmem:[#allocation7 + $0xb0] sm:$0xff] }
0x200b   :  { %v5125_v37 = vpop.eup %5124 }
0x200c   :  { %v2523_v3 = vmul.f32 %v5125_v37, %v5958_v51 }
0x200e   :  { %v2529_v2 = vmul.f32 %v4039_v62, %v2523_v3 }
0x2010   :  { %v2530_v58 = vpack.c.bf16 %v2529_v2, %v2528_v4 }
0x2012   :  { %4550 = vmatmul.mubr.msk.bf16.vlgmr.msra.gmra.mxu0 %vm179_vm4, %v2530_v58 }
0x2013   :  { %4569 = vmatprep.mubr.msk.bf16.mxu0 %vm5335_vm0, %v5334_v1 }
0x20d2   :  { %v2570_v19 = vpop.f32.mrf.mxu0 }
0x20d3   :  { %2597 = vrot.lane.b32.xlu0 %v2570_v19, %s5340_s12  ;;  %v2577_v28 = vmul.f32 %v2570_v19, %v2570_v19 }
0x20d4   :  { %v4551_v43 = vpop.f32.mrf.mxu0 }
0x20d5   :  { %v2579_v31 = vmul.f32 %v2577_v28, %v2570_v19 }
0x20d6   :  { %v2573_v32 = vpop.f32.mrf.mxu0 }
0x20d7   :  { %2599 = vrot.lane.b32.xlu1 %v2573_v32, %s5340_s12  ;;  %v2578_v29 = vmul.f32 %v2573_v32, %v2573_v32  ;;  %v2581_v35 = vmul.f32 0.044715, %v2579_v31 }
0x20d8   :  { %v4552_v26 = vpop.f32.mrf.mxu0 }
0x20d9   :  { %v2580_v48 = vmul.f32 %v2578_v29, %v2573_v32  ;;  %v2583_v13 = vadd.f32 %v2581_v35, %v2570_v19 }
0x20db   :  { %v2582_v39 = vmul.f32 0.044715, %v2580_v48  ;;  %v2585_v41 = vmul.f32 0.7978846, %v2583_v13 }
0x20dd   :  { %v2584_v40 = vadd.f32 %v2582_v39, %v2573_v32  ;;  %5126 = vtanh.f32 %v2585_v41 }
0x20df   :  { %v2586_v8 = vmul.f32 0.7978846, %v2584_v40 }
0x20e1   :  { %5128 = vtanh.f32 %v2586_v8 }
0x20ea   :  { %v5127_v9 = vpop.eup %5126 }
0x20eb   :  { %v2589_v15 = vadd.f32 1.0, %v5127_v9 }
0x20ed   :  { %v2591_v21 = vmul.f32 0.5, %v2589_v15 }
0x20ee   :  { %v5129_v12 = vpop.eup %5128 }
0x20ef   :  { %v2590_v18 = vadd.f32 1.0, %v5129_v12  ;;  %v2593_v63 = vmul.f32 %v2591_v21, %v2570_v19 }
0x20f1   :  { %v2592_v44 = vmul.f32 0.5, %v2590_v18 }
0x20f3   :  { %v2594_v45 = vmul.f32 %v2592_v44, %v2573_v32 }
0x2145   :  { %v2598_v27 = vpop.permute.xlu0 %2597 }
0x2146   :  { %v2603_v34 = vmul.f32 %v2598_v27, %v2593_v63 }
0x2149   :  { %v2600_v24 = vpop.permute.xlu1 %2599 }
0x214a   :  { %v2604_v46 = vmul.f32 %v2600_v24, %v2594_v45  ;;  %v3126_v45 = vld [vmem:[#allocation7 + $0x128] sm:$0xff]  ;;  %v3127_v24 = vld [vmem:[#allocation7 + $0x190] sm:$0xff] }
0x214c   :  { %v2605_v57 = vpack.c.bf16 %v2604_v46, %v2603_v34  ;;  %v3202_v34 = vpack.c.bf16 %v3127_v24, %v3126_v45  ;;  %v3124_v46 = vld [vmem:[#allocation7 + $0x58] sm:$0xff] }
0x214e   :  { %4562 = vmatmul.mubr.msk.bf16.vlgmr.msra.gmra.mxu1 %vm374_vm6, %v2605_v57  ;;  %v3125_v57 = vld [vmem:[#allocation7 + $0xc0] sm:$0xff] }
0x220e   :  { %v2647_v10 = vpop.f32.mrf.mxu1 }
0x220f   :  { %v5978_v42 = vadd.f32 %v2647_v10, %v5953_v61  ;;  %v2659_v61 = vld [vmem:[#allocation7 + $0x118] sm:$0xff]  ;;  %v3201_v10 = vpack.c.bf16 %v3125_v57, %v3124_v46 }
0x2210   :  { %v4563_v52 = vpop.f32.mrf.mxu1  ;;  %v2689_v53 = vpack.c.bf16 %v2660_v49, %v2659_v61 }
0x2211   :  { %v2665_v38 = vmul.f32 %v5978_v42, %v5978_v42 }
0x2212   :  { %v2650_v54 = vpop.f32.mrf.mxu1  ;;  %4566 = vmatpush3.bf16.msra.mxu0 %v2689_v53  ;;  %v5226_v53 = vld [vmem:[#allocation2 + $0x48] sm:$0xff] }
0x2213   :  { %v5983_v11 = vadd.f32 %v2650_v54, %v5958_v51  ;;  %v2667_v55 = vsel %vm179_vm4, %v2665_v38, 0.0  ;;  %4567 = vmatprep.subr.bf16.mxu0 %v5334_v1  ;;  %v2688_v51 = vpack.c.bf16 %v2658_v60, %v2657_v17  ;;  %v5224_v54 = vld [vmem:[#allocation2 + $0x40] sm:$0xff] }
0x2214   :  { %2668 = vadd.xlane.f32.xlu0 %v2667_v55  ;;  %v4564_v33 = vpop.f32.mrf.mxu1 }
0x2215   :  { %v2666_v50 = vmul.f32 %v5983_v11, %v5983_v11 }
0x2216   :  { %4568 = vmatpush3.bf16.msra.mxu0 %v2688_v51  ;;  %v5227_v51 = vld [vmem:[#allocation2 + $0x50] sm:$0xff] }
0x2217   :  { %v2670_v56 = vsel %vm179_vm4, %v2666_v50, 0.0  ;;  %v5225_v50 = vld [vmem:[#allocation2 + $0x58] sm:$0xff] }
0x2218   :  { %2671 = vadd.xlane.f32.xlu1 %v2670_v56 }
0x229d   :  { %v2669_v37 = vpop.xlane.xlu0 %2668 }
0x229e   :  { %v2673_v62 = vmul.f32 0.03125, %v2669_v37 }
0x22a0   :  { %v2675_v3 = vadd.f32 1e-06, %v2673_v62 }
0x22a1   :  { %v2672_v4 = vpop.xlane.xlu1 %2671 }
0x22a2   :  { %5130 = vrsqrt.f32 %v2675_v3  ;;  %v2674_v2 = vmul.f32 0.03125, %v2672_v4 }
0x22a4   :  { %v2676_v58 = vadd.f32 1e-06, %v2674_v2  ;;  %v5228_v2 = vld [vmem:[#allocation2 + $0x60] sm:$0xff] }
0x22a6   :  { %5132 = vrsqrt.f32 %v2676_v58 }
0x22af   :  { %v5131_v36 = vpop.eup %5130 }
0x22b0   :  { %v2679_v59 = vmul.f32 %v5131_v36, %v5978_v42 }
0x22b2   :  { %v2685_v16 = vmul.f32 %v4042_v14, %v2679_v59 }
0x22b3   :  { %v5133_v6 = vpop.eup %5132 }
0x22b4   :  { %v2680_v23 = vmul.f32 %v5133_v6, %v5983_v11  ;;  %v5229_v6 = vld [vmem:[#allocation2 + $0x68] sm:$0xff] }
0x22b6   :  { %v2686_v22 = vmul.f32 %v4042_v14, %v2680_v23  ;;  %v5230_v23 = vld [vmem:[#allocation2 + $0x70] sm:$0xff] }
0x22b8   :  { %v2687_v20 = vpack.c.bf16 %v2686_v22, %v2685_v16  ;;  %v5231_v22 = vld [vmem:[#allocation2 + $0x78] sm:$0xff] }
0x22ba   :  { %4570 = vmatmul.mubr.msk.bf16.vlgmr.msra.gmra.mxu0 %vm179_vm4, %v2687_v20 }
0x237a   :  { %v2727_v7 = vpop.f32.mrf.mxu0 }
0x237c   :  { %v4571_v47 = vpop.f32.mrf.mxu0 }
0x237e   :  { %v2730_v0 = vpop.f32.mrf.mxu0 }
0x237f   :  { %v4888_v25 = vpack.i.bf16 %v2730_v0, %v2727_v7  ;;  %v5993_v19 = vpack.c.bf16 %v2730_v0, %v2727_v7 }
0x2380   :  { %v4572_v43 = vpop.f32.mrf.mxu0 }
0x2381   :  { %4889 = vrot.lane.b32.xlu1 %v4888_v25, %s5337_s9  ;;  %4884 = vrot.lane.b32.xlu0 %v4888_v25, %s5332_s30 }
0x2382   :  { %4581 = vmatprep.mubr.msk.bf16.mxu1 %vm284_vm5, %v5993_v19 }
0x2385   :  { %4894 = vrot.lane.b32.xlu0 %v4888_v25, %s5338_s10 }
0x23f3   :  { %v4890_v32 = vpop.permute.xlu1 %4889  ;;  %v4885_v26 = vpop.permute.xlu0 %4884 }
0x23f4   :  { %v4892_v28 = vunpack.i.h.bf16 %v4890_v32  ;;  %v4891_v29 = vunpack.i.l.bf16 %v4890_v32  ;;  %v4887_v31 = vunpack.i.h.bf16 %v4885_v26  ;;  %v4886_v48 = vunpack.i.l.bf16 %v4885_v26 }
0x23f6   :  { %v6000_v35 = vpack.c.bf16 %v4892_v28, %v4891_v29  ;;  %v6002_v39 = vpack.c.bf16 %v4887_v31, %v4886_v48 }
0x23f7   :  { %v4895_v13 = vpop.permute.xlu0 %4894 }
0x23f8   :  { %v4897_v40 = vunpack.i.h.bf16 %v4895_v13  ;;  %v4896_v41 = vunpack.i.l.bf16 %v4895_v13  ;;  %2766 = vrot.lane.b32.xlu0 %v6000_v35, %s5339_s11  ;;  %2768 = vrot.lane.b32.xlu1 %v6002_v39, %s5339_s11 }
0x23fa   :  { %v6008_v8 = vpack.c.bf16 %v4897_v40, %v4896_v41 }
0x23fc   :  { %2764 = vrot.lane.b32.xlu1 %v6008_v8, %s5339_s11  ;;  %2762 = vrot.lane.b32.xlu0 %v5993_v19, %s5339_s11 }
0x246a   :  { %v2769_v9 = vpop.permute.xlu1 %2768  ;;  %v2767_v15 = vpop.permute.xlu0 %2766 }
0x246b   :  { %v2792_v12 = vsel %vm284_vm5, %v2769_v9, 0  ;;  %4713 = vmatprep.subr.msk.bf16.mxu1 %vm284_vm5, %v2769_v9  ;;  %v2789_v18 = vsel %vm284_vm5, %v2767_v15, 0 }
0x246c   :  { %4574 = vmatpush3.bf16.xpose.msra.mxu1 %v2792_v12 }
0x246d   :  { %4714 = vmatprep.subr.msk.bf16.mxu1 %vm284_vm5, %v2767_v15 }
0x246e   :  { %v2765_v21 = vpop.permute.xlu1 %2764  ;;  %v2763_v27 = vpop.permute.xlu0 %2762 }
0x246f   :  { %v2786_v44 = vsel %vm284_vm5, %v2765_v21, 0  ;;  %v2783_v63 = vsel %vm284_vm5, %v2763_v27, 0 }
0x2474   :  { %4576 = vmatpush3.bf16.xpose.msra.mxu1 %v2789_v18 }
0x2475   :  { %4715 = vmatprep.subr.msk.bf16.mxu1 %vm284_vm5, %v2765_v21 }
0x247c   :  { %4578 = vmatpush3.bf16.xpose.msra.mxu1 %v2786_v44 }
0x247d   :  { %4716 = vmatprep.subr.msk.bf16.mxu1 %vm284_vm5, %v2763_v27 }
0x2484   :  { %4580 = vmatpush3.bf16.xpose.msra.mxu1 %v2783_v63 }
0x2485   :  { %4621 = vmatprep.subr.bf16.mxu1 %v5334_v1 }
0x248b   :  { %4582 = vmatmul.mubr.msk.bf16.vlgmr.msra.gmra.mxu1 %vm284_vm5, %v6008_v8 }
0x248c   :  { %4585 = vmatprep.mubr.msk.bf16.mxu1 %vm284_vm5, %v6000_v35  ;;  %4622 = vmatpush3.bf16.msra.mxu1 %v3202_v34 }
0x248d   :  { %4623 = vmatprep.subr.bf16.mxu1 %v5334_v1 }
0x2490   :  { %4624 = vmatpush3.bf16.msra.mxu1 %v3201_v10 }
0x2493   :  { %4586 = vmatmul.mubr.msk.bf16.gmra.mxu1 %vm284_vm5, %v6002_v39 }
0x2494   :  { %4625 = vmatprep.mubr.msk.bf16.mxu1 %vm5335_vm0, %v5334_v1 }
0x249b   :  { %4626 = vmatmul.mubr.msk.bf16.vlgmr.msra.gmra.mxu1 %vm179_vm4, %v5850_v5 }
0x254b   :  { %v4583_v52 = vpop.f32.mrf.mxu1 }
0x254c   :  { %v2837_v37 = vadd.f32 %v5227_v51, %v4583_v52 }
0x254d   :  { %v2828_v38 = vpop.f32.mrf.mxu1 }
0x254e   :  { %v2829_v55 = vadd.f32 %v5224_v54, %v2828_v38  ;;  %v2865_v36 = vsel %vm374_vm6, %v2837_v37, -inf }
0x254f   :  { %v4584_v33 = vpop.f32.mrf.mxu1 }
0x2550   :  { %v2840_v56 = vadd.f32 %v5225_v50, %v4584_v33  ;;  %v2859_v61 = vsel %vm374_vm6, %v2829_v55, -inf }
0x2551   :  { %v2831_v49 = vpop.f32.mrf.mxu1  ;;  %2860 = vmax.xlane.f32.xlu1 %v2859_v61 }
0x2552   :  { %v2832_v17 = vadd.f32 %v5226_v53, %v2831_v49  ;;  %v2868_v5 = vsel %vm374_vm6, %v2840_v56, -inf }
0x2553   :  { %v4587_v60 = vpop.f32.mrf.mxu1 }
0x2554   :  { %v2862_v62 = vsel %vm374_vm6, %v2832_v17, -inf  ;;  %v2853_v16 = vadd.f32 %v5230_v23, %v4587_v60 }
0x2555   :  { %v2844_v3 = vpop.f32.mrf.mxu1  ;;  %2863 = vmax.xlane.f32.xlu0 %v2862_v62  ;;  %2869 = vmax.xlane.f32.xlu1 %v2868_v5 }
0x2556   :  { %v2845_v58 = vadd.f32 %v5228_v2, %v2844_v3  ;;  %v2877_v32 = vsel %vm374_vm6, %v2853_v16, -inf }
0x2557   :  { %v4588_v4 = vpop.f32.mrf.mxu1 }
0x2558   :  { %v2856_v20 = vadd.f32 %v5231_v22, %v4588_v4  ;;  %v2871_v47 = vsel %vm374_vm6, %v2845_v58, -inf }
0x2559   :  { %v2847_v59 = vpop.f32.mrf.mxu1  ;;  %2866 = vmax.xlane.f32.xlu0 %v2865_v36 }
0x255a   :  { %v2848_v14 = vadd.f32 %v5229_v6, %v2847_v59  ;;  %v2880_v26 = vsel %vm374_vm6, %v2856_v20, -inf }
0x255b   :  { %v3237_v7 = vpop.f32.mrf.mxu1 }
0x255c   :  { %v2874_v0 = vsel %vm374_vm6, %v2848_v14, -inf }
0x255d   :  { %v4627_v25 = vpop.f32.mrf.mxu1  ;;  %2872 = vmax.xlane.f32.xlu0 %v2871_v47  ;;  %2875 = vmax.xlane.f32.xlu1 %v2874_v0 }
0x255f   :  { %v3240_v43 = vpop.f32.mrf.mxu1 }
0x2560   :  { %v6042_v28 = vpack.i.bf16 %v3240_v43, %v3237_v7  ;;  %v6044_v29 = vpack.c.bf16 %v3240_v43, %v3237_v7 }
0x2561   :  { %v4628_v31 = vpop.f32.mrf.mxu1  ;;  %2878 = vmax.xlane.f32.xlu0 %v2877_v32  ;;  %2881 = vmax.xlane.f32.xlu1 %v2880_v26 }
0x2572   :  { %2955 = vrot.lane.b32.xlu1 %v6000_v35, %s5340_s12 }
0x2577   :  { %2957 = vrot.lane.b32.xlu0 %v6002_v39, %s5340_s12 }
0x25da   :  { %v2861_v48 = vpop.xlane.xlu1 %2860 }
0x25db   :  { %v2883_v12 = vsub.f32 %v2829_v55, %v2861_v48 }
0x25dd   :  { %v2891_v27 = vmul.f32 1.442695, %v2883_v12 }
0x25de   :  { %v2864_v13 = vpop.xlane.xlu0 %2863  ;;  %v2870_v40 = vpop.xlane.xlu1 %2869 }
0x25df   :  { %v2884_v41 = vsub.f32 %v2832_v17, %v2864_v13  ;;  %v2886_v9 = vsub.f32 %v2840_v56, %v2870_v40 }
0x25e1   :  { %v2897_v15 = vmul.f32 1.442695, %v2886_v9  ;;  %v2893_v18 = vmul.f32 1.442695, %v2884_v41 }
0x25e2   :  { %v2867_v21 = vpop.xlane.xlu0 %2866 }
0x25e3   :  { %v2885_v44 = vsub.f32 %v2837_v37, %v2867_v21  ;;  %5134 = vpow2.f32 %v2897_v15 }
0x25e4   :  { %5136 = vpow2.f32 %v2893_v18 }
0x25e5   :  { %v2895_v63 = vmul.f32 1.442695, %v2885_v44 }
0x25e6   :  { %v2873_v45 = vpop.xlane.xlu0 %2872  ;;  %v2876_v24 = vpop.xlane.xlu1 %2875 }
0x25e7   :  { %5138 = vpow2.f32 %v2895_v63  ;;  %v2887_v35 = vsub.f32 %v2845_v58, %v2873_v45  ;;  %v2888_v39 = vsub.f32 %v2848_v14, %v2876_v24 }
0x25e8   :  { %5140 = vpow2.f32 %v2891_v27 }
0x25e9   :  { %v2899_v52 = vmul.f32 1.442695, %v2887_v35  ;;  %v2901_v55 = vmul.f32 1.442695, %v2888_v39  ;;  %v2663_v35 = vld [vmem:[#allocation5 + $0x230] sm:$0xff]  ;;  %v2664_v39 = vld [vmem:[#allocation5 + $0x238] sm:$0xff] }
0x25ea   :  { %v2879_v34 = vpop.xlane.xlu0 %2878  ;;  %v2882_v46 = vpop.xlane.xlu1 %2881 }
0x25eb   :  { %v2889_v57 = vsub.f32 %v2853_v16, %v2879_v34  ;;  %v2890_v10 = vsub.f32 %v2856_v20, %v2882_v46  ;;  %v3072_v34 = vpack.c.bf16 %v2664_v39, %v2663_v35 }
0x25ed   :  { %v2903_v38 = vmul.f32 1.442695, %v2889_v57  ;;  %v2905_v54 = vmul.f32 1.442695, %v2890_v10  ;;  %v2661_v10 = vld [vmem:[#allocation5 + $0x220] sm:$0xff] }
0x25ee   :  { %v2958_v33 = vpop.permute.xlu0 %2957  ;;  %v2956_v50 = vpop.permute.xlu1 %2955 }
0x25ef   :  { %5142 = vpow2.f32 %v2903_v38  ;;  %4589 = vmatprep.subr.bf16.mxu0 %v2958_v33 }
0x25f0   :  { %5144 = vpow2.f32 %v2905_v54  ;;  %4590 = vmatpush3.bf16.msra.mxu0 %v2958_v33  ;;  %v5135_v56 = vpop.eup %5134 }
0x25f1   :  { %5146 = vpow2.f32 %v2899_v52  ;;  %4591 = vmatprep.subr.bf16.mxu0 %v2956_v50  ;;  %v2916_v61 = vsel %vm374_vm6, %v5135_v56, 0.0  ;;  %v5137_v49 = vpop.eup %5136  ;;  %v2662_v52 = vld [vmem:[#allocation5 + $0x228] sm:$0xff] }
0x25f2   :  { %5148 = vpow2.f32 %v2901_v55  ;;  %2917 = vadd.xlane.f32.xlu1 %v2916_v61  ;;  %v2910_v51 = vsel %vm374_vm6, %v5137_v49, 0.0  ;;  %v3071_v38 = vpack.c.bf16 %v2662_v52, %v2661_v10 }
0x25f4   :  { %v5139_v53 = vpop.eup %5138  ;;  %4592 = vmatpush3.bf16.msra.mxu0 %v2956_v50 }
0x25f5   :  { %v2913_v17 = vsel %vm374_vm6, %v5139_v53, 0.0  ;;  %v5141_v60 = vpop.eup %5140 }
0x25f6   :  { %2914 = vadd.xlane.f32.xlu0 %v2913_v17  ;;  %2911 = vadd.xlane.f32.xlu1 %v2910_v51  ;;  %v2907_v37 = vsel %vm374_vm6, %v5141_v60, 0.0 }
0x25fa   :  { %2908 = vadd.xlane.f32.xlu0 %v2907_v37 }
0x25fc   :  { %v5143_v62 = vpop.eup %5142 }
0x25fd   :  { %v5145_v5 = vpop.eup %5144  ;;  %v2925_v3 = vsel %vm374_vm6, %v5143_v62, 0.0 }
0x25fe   :  { %v5147_v4 = vpop.eup %5146  ;;  %2926 = vadd.xlane.f32.xlu0 %v2925_v3  ;;  %v2928_v2 = vsel %vm374_vm6, %v5145_v5, 0.0 }
0x25ff   :  { %v5149_v58 = vpop.eup %5148  ;;  %2929 = vadd.xlane.f32.xlu1 %v2928_v2  ;;  %v2919_v36 = vsel %vm374_vm6, %v5147_v4, 0.0 }
0x2600   :  { %v2922_v59 = vsel %vm374_vm6, %v5149_v58, 0.0 }
0x2602   :  { %2920 = vadd.xlane.f32.xlu0 %v2919_v36 }
0x2603   :  { %2923 = vadd.xlane.f32.xlu1 %v2922_v59 }
0x2614   :  { %2953 = vrot.lane.b32.xlu1 %v6008_v8, %s5340_s12 }
0x2618   :  { %2951 = vrot.lane.b32.xlu0 %v5993_v19, %s5340_s12 }
0x267b   :  { %v2918_v6 = vpop.xlane.xlu1 %2917 }
0x267f   :  { %v2915_v14 = vpop.xlane.xlu0 %2914  ;;  %v2912_v23 = vpop.xlane.xlu1 %2911 }
0x2680   :  { %5150 = vrcp.f32 %v2912_v23 }
0x2681   :  { %5152 = vrcp.f32 %v2915_v14 }
0x2683   :  { %v2909_v16 = vpop.xlane.xlu0 %2908 }
0x2684   :  { %5154 = vrcp.f32 %v2909_v16 }
0x2685   :  { %5156 = vrcp.f32 %v2918_v6 }
0x2687   :  { %v2927_v22 = vpop.xlane.xlu0 %2926 }
0x2688   :  { %v2930_v20 = vpop.xlane.xlu1 %2929  ;;  %5158 = vrcp.f32 %v2927_v22 }
0x2689   :  { %5160 = vrcp.f32 %v2930_v20 }
0x268b   :  { %v2921_v7 = vpop.xlane.xlu0 %2920 }
0x268c   :  { %5162 = vrcp.f32 %v2921_v7  ;;  %v2924_v47 = vpop.xlane.xlu1 %2923 }
0x268d   :  { %5164 = vrcp.f32 %v2924_v47  ;;  %v5151_v8 = vpop.eup %5150 }
0x268e   :  { %v5153_v0 = vpop.eup %5152  ;;  %v2940_v31 = vmul.f32 %v5151_v8, %v5137_v49 }
0x268f   :  { %v2952_v32 = vpop.permute.xlu0 %2951  ;;  %v2941_v48 = vmul.f32 %v5153_v0, %v5139_v53 }
0x2690   :  { %v2954_v25 = vpop.permute.xlu1 %2953 }
0x2691   :  { %v5155_v19 = vpop.eup %5154  ;;  %4593 = vmatprep.subr.bf16.mxu0 %v2954_v25 }
0x2692   :  { %v5157_v43 = vpop.eup %5156  ;;  %4594 = vmatpush3.bf16.msra.mxu0 %v2954_v25  ;;  %v2939_v26 = vmul.f32 %v5155_v19, %v5141_v60 }
0x2693   :  { %4595 = vmatprep.subr.bf16.mxu0 %v2952_v32  ;;  %v2942_v40 = vmul.f32 %v5157_v43, %v5135_v56 }
0x2694   :  { %v2947_v13 = vpack.c.bf16 %v2940_v31, %v2939_v26  ;;  %v3123_v31 = vld [vmem:[#allocation7 + $0x188] sm:$0xff] }
0x2695   :  { %v5159_v41 = vpop.eup %5158  ;;  %v2948_v9 = vpack.c.bf16 %v2942_v40, %v2941_v48  ;;  %v3121_v40 = vld [vmem:[#allocation7 + $0xb8] sm:$0xff] }
0x2696   :  { %4596 = vmatpush3.bf16.msra.mxu0 %v2952_v32  ;;  %4597 = vmatprep.mubr.msk.bf16.mxu0 %vm374_vm6, %v2947_v13  ;;  %v5161_v12 = vpop.eup %5160  ;;  %v2945_v27 = vmul.f32 %v5159_v41, %v5143_v62  ;;  %v3120_v13 = vld [vmem:[#allocation7 + $0x50] sm:$0xff] }
0x2697   :  { %4605 = vmatprep.subr.bf16.mxu0 %v5334_v1  ;;  %v2946_v63 = vmul.f32 %v5161_v12, %v5145_v5 }
0x2699   :  { %v5163_v15 = vpop.eup %5162  ;;  %4598 = vmatmul.mubr.msk.bf16.vlgmr.msra.gmra.mxu0 %vm374_vm6, %v2948_v9  ;;  %v2950_v24 = vpack.c.bf16 %v2946_v63, %v2945_v27 }
0x269a   :  { %v5165_v18 = vpop.eup %5164  ;;  %v2943_v21 = vmul.f32 %v5163_v15, %v5147_v4  ;;  %4606 = vmatpush3.bf16.msra.mxu0 %v3072_v34  ;;  %v4053_v34 = vld [vmem:[#allocation5 + $0xd0] ss:$0 sm:$0xff] }
0x269b   :  { %v2944_v44 = vmul.f32 %v5165_v18, %v5149_v58  ;;  %4607 = vmatprep.subr.bf16.mxu0 %v5334_v1 }
0x269d   :  { %v2949_v45 = vpack.c.bf16 %v2944_v44, %v2943_v21 }
0x269e   :  { %4608 = vmatpush3.bf16.msra.mxu0 %v3071_v38 }
0x269f   :  { %4601 = vmatprep.mubr.msk.bf16.mxu0 %vm374_vm6, %v2949_v45  ;;  %4613 = vmatprep.subr.bf16.mxu0 %v5334_v1 }
0x26a1   :  { %4602 = vmatmul.mubr.msk.bf16.gmra.mxu0 %vm374_vm6, %v2950_v24 }
0x26a2   :  { %4609 = vmatprep.mubr.msk.bf16.mxu0 %vm5335_vm0, %v5334_v1 }
0x2759   :  { %v4599_v46 = vpop.f32.mrf.mxu0 }
0x275b   :  { %v3009_v57 = vpop.f32.mrf.mxu0 }
0x275d   :  { %v4600_v54 = vpop.f32.mrf.mxu0 }
0x275e   :  { %v4898_v55 = vpack.i.bf16 %v4600_v54, %v4599_v46 }
0x275f   :  { %v3012_v33 = vpop.f32.mrf.mxu0 }
0x2760   :  { %4899 = vrot.lane.b32.xlu1 %v4898_v55, %s5329_s21 }
0x2761   :  { %v4603_v50 = vpop.f32.mrf.mxu0 }
0x2763   :  { %v3025_v56 = vpop.f32.mrf.mxu0 }
0x2765   :  { %v4604_v61 = vpop.f32.mrf.mxu0 }
0x2766   :  { %v4908_v49 = vpack.i.bf16 %v4604_v61, %v4603_v50 }
0x2767   :  { %v3028_v53 = vpop.f32.mrf.mxu0 }
0x2768   :  { %v4903_v17 = vpack.i.bf16 %v3028_v53, %v3025_v56  ;;  %4909 = vrot.lane.b32.xlu1 %v4908_v49, %s5341_s13 }
0x276a   :  { %4904 = vrot.lane.b32.xlu0 %v4903_v17, %s5342_s14 }
0x27d2   :  { %v4900_v60 = vpop.permute.xlu1 %4899 }
0x27d3   :  { %v4902_v51 = vunpack.i.h.bf16 %v4900_v60  ;;  %v4901_v37 = vunpack.i.l.bf16 %v4900_v60  ;;  %v3305_v60 = vsel %vm284_vm5, %v6044_v29, 0 }
0x27d5   :  { %v3064_v2 = vsel %vm284_vm5, %v3009_v57, %v4901_v37  ;;  %v3065_v58 = vsel %vm284_vm5, %v3012_v33, %v4902_v51 }
0x27da   :  { %v4910_v62 = vpop.permute.xlu1 %4909 }
0x27db   :  { %v4912_v36 = vunpack.i.h.bf16 %v4910_v62  ;;  %v4911_v59 = vunpack.i.l.bf16 %v4910_v62 }
0x27dc   :  { %v4905_v5 = vpop.permute.xlu0 %4904 }
0x27dd   :  { %v4907_v3 = vunpack.i.h.bf16 %v4905_v5  ;;  %v4906_v4 = vunpack.i.l.bf16 %v4905_v5 }
0x27df   :  { %v3067_v6 = vsel %vm582_vm7, %v3065_v58, %v4907_v3  ;;  %v3066_v14 = vsel %vm582_vm7, %v3064_v2, %v4906_v4 }
0x27e0   :  { %v3069_v23 = vsel %vm585_vm8, %v3067_v6, %v4912_v36  ;;  %v3068_v16 = vsel %vm585_vm8, %v3066_v14, %v4911_v59 }
0x27e1   :  { %v3070_v22 = vpack.c.bf16 %v3069_v23, %v3068_v16 }
0x27e3   :  { %4610 = vmatmul.mubr.msk.bf16.vlgmr.msra.gmra.mxu0 %vm179_vm4, %v3070_v22 }
0x27e4   :  { %4617 = vmatprep.mubr.msk.bf16.mxu0 %vm5335_vm0, %v5334_v1 }
0x28a3   :  { %v3110_v20 = vpop.f32.mrf.mxu0 }
0x28a4   :  { %v6084_v7 = vadd.f32 %v3110_v20, %v5978_v42  ;;  %v3122_v42 = vld [vmem:[#allocation7 + $0x120] sm:$0xff] }
0x28a5   :  { %v4611_v47 = vpop.f32.mrf.mxu0  ;;  %v3156_v48 = vpack.c.bf16 %v3123_v31, %v3122_v42  ;;  %v5233_v42 = vld [vmem:[#allocation2 + $0x90] sm:$0xff] }
0x28a6   :  { %v3132_v8 = vmul.f32 %v6084_v7, %v6084_v7 }
0x28a7   :  { %v3113_v0 = vpop.f32.mrf.mxu0  ;;  %4614 = vmatpush3.bf16.msra.mxu0 %v3156_v48 }
0x28a8   :  { %v6089_v25 = vadd.f32 %v3113_v0, %v5983_v11  ;;  %v3134_v19 = vsel %vm179_vm4, %v3132_v8, 0.0  ;;  %4615 = vmatprep.subr.bf16.mxu0 %v5334_v1  ;;  %v3155_v11 = vpack.c.bf16 %v3121_v40, %v3120_v13  ;;  %v5234_v40 = vld [vmem:[#allocation2 + $0x88] sm:$0xff] }
0x28a9   :  { %3135 = vadd.xlane.f32.xlu0 %v3134_v19  ;;  %v4612_v43 = vpop.f32.mrf.mxu0 }
0x28aa   :  { %v3133_v32 = vmul.f32 %v6089_v25, %v6089_v25  ;;  %v5232_v43 = vld [vmem:[#allocation2 + $0x80] sm:$0xff] }
0x28ab   :  { %4616 = vmatpush3.bf16.msra.mxu0 %v3155_v11 }
0x28ac   :  { %v3137_v26 = vsel %vm179_vm4, %v3133_v32, 0.0 }
0x28ad   :  { %3138 = vadd.xlane.f32.xlu1 %v3137_v26 }
0x28be   :  { %4919 = vrot.lane.b32.xlu1 %v6042_v28, %s5337_s9 }
0x28bf   :  { %4914 = vrot.lane.b32.xlu0 %v6042_v28, %s5332_s30 }
0x28c3   :  { %4924 = vrot.lane.b32.xlu0 %v6042_v28, %s5338_s10 }
0x2932   :  { %v3136_v41 = vpop.xlane.xlu0 %3135 }
0x2933   :  { %v3140_v9 = vmul.f32 0.03125, %v3136_v41 }
0x2935   :  { %v3142_v12 = vadd.f32 1e-06, %v3140_v9  ;;  %v5235_v9 = vld [vmem:[#allocation2 + $0x98] sm:$0xff] }
0x2936   :  { %v4915_v15 = vpop.permute.xlu0 %4914  ;;  %v3139_v18 = vpop.xlane.xlu1 %3138 }
0x2937   :  { %5166 = vrsqrt.f32 %v3142_v12  ;;  %v4917_v21 = vunpack.i.h.bf16 %v4915_v15  ;;  %v4916_v44 = vunpack.i.l.bf16 %v4915_v15  ;;  %v3141_v27 = vmul.f32 0.03125, %v3139_v18 }
0x2939   :  { %v6102_v63 = vpack.c.bf16 %v4917_v21, %v4916_v44  ;;  %v3143_v45 = vadd.f32 1e-06, %v3141_v27  ;;  %v5236_v44 = vld [vmem:[#allocation2 + $0xa0] sm:$0xff] }
0x293a   :  { %v4920_v39 = vpop.permute.xlu1 %4919  ;;  %v4925_v50 = vpop.permute.xlu0 %4924 }
0x293b   :  { %5168 = vrsqrt.f32 %v3143_v45  ;;  %4717 = vmatprep.subr.msk.bf16.mxu0 %vm284_vm5, %v6102_v63  ;;  %v4922_v57 = vunpack.i.h.bf16 %v4920_v39  ;;  %v4921_v10 = vunpack.i.l.bf16 %v4920_v39  ;;  %v3314_v33 = vsel %vm284_vm5, %v6102_v63, 0 }
0x293c   :  { %v4927_v56 = vunpack.i.h.bf16 %v4925_v50  ;;  %v4926_v61 = vunpack.i.l.bf16 %v4925_v50 }
0x293d   :  { %v6108_v55 = vpack.c.bf16 %v4922_v57, %v4921_v10  ;;  %v5239_v10 = vld [vmem:[#allocation2 + $0xb8] sm:$0xff] }
0x293e   :  { %v6115_v49 = vpack.c.bf16 %v4927_v56, %v4926_v61 }
0x293f   :  { %v3311_v53 = vsel %vm284_vm5, %v6108_v55, 0 }
0x2940   :  { %v3308_v17 = vsel %vm284_vm5, %v6115_v49, 0 }
0x2944   :  { %v5167_v24 = vpop.eup %5166 }
0x2945   :  { %v3146_v35 = vmul.f32 %v5167_v24, %v6084_v7  ;;  %v5237_v24 = vld [vmem:[#allocation2 + $0xb0] sm:$0xff] }
0x2947   :  { %v3152_v52 = vmul.f32 %v4053_v34, %v3146_v35 }
0x2948   :  { %v5169_v28 = vpop.eup %5168 }
0x2949   :  { %v3147_v46 = vmul.f32 %v5169_v28, %v6089_v25 }
0x294b   :  { %v3153_v38 = vmul.f32 %v4053_v34, %v3147_v46  ;;  %v5238_v46 = vld [vmem:[#allocation2 + $0xa8] sm:$0xff] }
0x294d   :  { %v3154_v54 = vpack.c.bf16 %v3153_v38, %v3152_v52 }
0x294f   :  { %4618 = vmatmul.mubr.msk.bf16.vlgmr.msra.gmra.mxu0 %vm179_vm4, %v3154_v54 }
0x2950   :  { %4630 = vmatpush3.bf16.xpose.msra.mxu0 %v3314_v33 }
0x2951   :  { %4718 = vmatprep.subr.msk.bf16.mxu0 %vm284_vm5, %v6108_v55 }
0x2958   :  { %4632 = vmatpush3.bf16.xpose.msra.mxu0 %v3311_v53 }
0x2959   :  { %4719 = vmatprep.subr.msk.bf16.mxu0 %vm284_vm5, %v6115_v49 }
0x2960   :  { %4634 = vmatpush3.bf16.xpose.msra.mxu0 %v3308_v17 }
0x2961   :  { %4720 = vmatprep.subr.msk.bf16.mxu0 %vm284_vm5, %v6044_v29 }
0x2968   :  { %4636 = vmatpush3.bf16.xpose.msra.mxu0 %v3305_v60 }
0x2969   :  { %4677 = vmatprep.subr.bf16.mxu0 %v5334_v1 }
0x2a0f   :  { %v3194_v51 = vpop.f32.mrf.mxu0 }
0x2a11   :  { %v4619_v37 = vpop.f32.mrf.mxu0 }
0x2a13   :  { %v3197_v62 = vpop.f32.mrf.mxu0 }
0x2a14   :  { %v4933_v5 = vpack.i.bf16 %v3197_v62, %v3194_v51  ;;  %v3284_v3 = vpack.c.bf16 %v3197_v62, %v3194_v51 }
0x2a15   :  { %v4620_v4 = vpop.f32.mrf.mxu0 }
0x2a16   :  { %4934 = vrot.lane.b32.xlu0 %v4933_v5, %s5337_s9  ;;  %4929 = vrot.lane.b32.xlu1 %v4933_v5, %s5338_s10 }
0x2a17   :  { %4637 = vmatprep.mubr.msk.bf16.mxu0 %vm284_vm5, %v3284_v3 }
0x2a1a   :  { %4939 = vrot.lane.b32.xlu1 %v4933_v5, %s5332_s30  ;;  %s5304_s30 = scalar_lea.vmem %s3968_s28, 32 }
0x2a1b   :  { %p5306_p3 = scmp.lt.s32.totalorder %s5304_s30, %s5300_s2 }
0x2a1d   :  { %p5307_p4 = por %p5306_p3, %p5305_p2 }
0x2a1f   :  { %p5308_p5 = pnand %p5307_p4, %p5301_p1 }
0x2a88   :  { %v4935_v2 = vpop.permute.xlu0 %4934  ;;  %v4930_v58 = vpop.permute.xlu1 %4929 }
0x2a89   :  { %v4937_v36 = vunpack.i.h.bf16 %v4935_v2  ;;  %v4936_v59 = vunpack.i.l.bf16 %v4935_v2  ;;  %v4932_v6 = vunpack.i.h.bf16 %v4930_v58  ;;  %v4931_v14 = vunpack.i.l.bf16 %v4930_v58 }
0x2a8b   :  { %v3286_v23 = vpack.c.bf16 %v4937_v36, %v4936_v59  ;;  %v3285_v16 = vpack.c.bf16 %v4932_v6, %v4931_v14 }
0x2a8c   :  { %v4940_v22 = vpop.permute.xlu1 %4939 }
0x2a8d   :  { %4638 = vmatmul.mubr.msk.bf16.vlgmr.msra.gmra.mxu0 %vm284_vm5, %v3285_v16  ;;  %v4942_v20 = vunpack.i.h.bf16 %v4940_v22  ;;  %v4941_v47 = vunpack.i.l.bf16 %v4940_v22 }
0x2a8e   :  { %4641 = vmatprep.mubr.msk.bf16.mxu0 %vm284_vm5, %v3286_v23 }
0x2a8f   :  { %v3287_v8 = vpack.c.bf16 %v4942_v20, %v4941_v47 }
0x2a95   :  { %4642 = vmatmul.mubr.msk.bf16.gmra.mxu0 %vm284_vm5, %v3287_v8 }
0x2a96   :  { %4685 = vmatprep.mubr.msk.bf16.mxu0 %vm5335_vm0, %v5334_v1 }
0x2b4d   :  { %v4639_v0 = vpop.f32.mrf.mxu0 }
0x2b4e   :  { %v3359_v31 = vadd.f32 %v5233_v42, %v4639_v0 }
0x2b4f   :  { %v3350_v19 = vpop.f32.mrf.mxu0 }
0x2b50   :  { %v3351_v32 = vadd.f32 %v5232_v43, %v3350_v19  ;;  %v3387_v18 = vsel %vm374_vm6, %v3359_v31, -inf }
0x2b51   :  { %v4640_v26 = vpop.f32.mrf.mxu0 }
0x2b52   :  { %v3381_v48 = vsel %vm374_vm6, %v3351_v32, -inf  ;;  %v3362_v12 = vadd.f32 %v5235_v9, %v4640_v26 }
0x2b53   :  { %v3353_v13 = vpop.f32.mrf.mxu0  ;;  %3382 = vmax.xlane.f32.xlu0 %v3381_v48 }
0x2b54   :  { %v3354_v11 = vadd.f32 %v5234_v40, %v3353_v13  ;;  %v3390_v39 = vsel %vm374_vm6, %v3362_v12, -inf }
0x2b55   :  { %v4643_v41 = vpop.f32.mrf.mxu0 }
0x2b56   :  { %v3384_v15 = vsel %vm374_vm6, %v3354_v11, -inf  ;;  %v3375_v35 = vadd.f32 %v5237_v24, %v4643_v41 }
0x2b57   :  { %v3366_v21 = vpop.f32.mrf.mxu0  ;;  %3385 = vmax.xlane.f32.xlu1 %v3384_v15  ;;  %3388 = vmax.xlane.f32.xlu0 %v3387_v18 }
0x2b58   :  { %v3367_v27 = vadd.f32 %v5236_v44, %v3366_v21  ;;  %v3399_v38 = vsel %vm374_vm6, %v3375_v35, -inf }
0x2b59   :  { %v4644_v45 = vpop.f32.mrf.mxu0 }
0x2b5a   :  { %v3393_v28 = vsel %vm374_vm6, %v3367_v27, -inf  ;;  %v3378_v52 = vadd.f32 %v5239_v10, %v4644_v45 }
0x2b5b   :  { %v3369_v34 = vpop.f32.mrf.mxu0  ;;  %3394 = vmax.xlane.f32.xlu1 %v3393_v28  ;;  %3391 = vmax.xlane.f32.xlu0 %v3390_v39 }
0x2b5c   :  { %v3370_v57 = vadd.f32 %v5238_v46, %v3369_v34  ;;  %v3402_v33 = vsel %vm374_vm6, %v3378_v52, -inf }
0x2b5e   :  { %v3396_v54 = vsel %vm374_vm6, %v3370_v57, -inf }
0x2b5f   :  { %3400 = vmax.xlane.f32.xlu1 %v3399_v38  ;;  %3397 = vmax.xlane.f32.xlu0 %v3396_v54 }
0x2b63   :  { %3403 = vmax.xlane.f32.xlu0 %v3402_v33 }
0x2b70   :  { %3483 = vrot.lane.b32.xlu1 %v6102_v63, %s5339_s11 }
0x2bdc   :  { %v3383_v50 = vpop.xlane.xlu0 %3382 }
0x2bdd   :  { %v3405_v56 = vsub.f32 %v3351_v32, %v3383_v50 }
0x2bdf   :  { %v3413_v51 = vmul.f32 1.442695, %v3405_v56 }
0x2be0   :  { %v3386_v61 = vpop.xlane.xlu1 %3385  ;;  %v3389_v53 = vpop.xlane.xlu0 %3388 }
0x2be1   :  { %v3407_v17 = vsub.f32 %v3359_v31, %v3389_v53  ;;  %v3406_v37 = vsub.f32 %v3354_v11, %v3386_v61 }
0x2be3   :  { %v3417_v60 = vmul.f32 1.442695, %v3407_v17  ;;  %v3415_v2 = vmul.f32 1.442695, %v3406_v37 }
0x2be4   :  { %v3395_v62 = vpop.xlane.xlu1 %3394  ;;  %v3392_v5 = vpop.xlane.xlu0 %3391 }
0x2be5   :  { %v3408_v3 = vsub.f32 %v3362_v12, %v3392_v5  ;;  %5170 = vpow2.f32 %v3417_v60  ;;  %v3409_v58 = vsub.f32 %v3367_v27, %v3395_v62 }
0x2be6   :  { %5172 = vpow2.f32 %v3413_v51 }
0x2be7   :  { %v3419_v4 = vmul.f32 1.442695, %v3408_v3  ;;  %v3421_v14 = vmul.f32 1.442695, %v3409_v58  ;;  %v3131_v58 = vld [vmem:[#allocation5 + $0x258] sm:$0xff] }
0x2be8   :  { %v3401_v36 = vpop.xlane.xlu1 %3400  ;;  %v3398_v59 = vpop.xlane.xlu0 %3397 }
0x2be9   :  { %v3411_v6 = vsub.f32 %v3375_v35, %v3401_v36  ;;  %5174 = vpow2.f32 %v3419_v4  ;;  %v3410_v23 = vsub.f32 %v3370_v57, %v3398_v59 }
0x2bea   :  { %5176 = vpow2.f32 %v3415_v2  ;;  %v3130_v2 = vld [vmem:[#allocation5 + $0x250] sm:$0xff] }
0x2beb   :  { %v3425_v63 = vmul.f32 1.442695, %v3411_v6  ;;  %v3423_v8 = vmul.f32 1.442695, %v3410_v23  ;;  %v3598_v36 = vpack.c.bf16 %v3131_v58, %v3130_v2  ;;  %v3656_v58 = vld [vmem:[#allocation5 + $0x290] sm:$0xff] }
0x2bec   :  { %v3484_v16 = vpop.permute.xlu1 %3483  ;;  %v3404_v22 = vpop.xlane.xlu0 %3403 }
0x2bed   :  { %5178 = vpow2.f32 %v3425_v63  ;;  %v3412_v20 = vsub.f32 %v3378_v52, %v3404_v22  ;;  %4645 = vmatprep.subr.bf16.mxu1 %v3484_v16  ;;  %v3128_v63 = vld [vmem:[#allocation5 + $0x240] sm:$0xff] }
0x2bee   :  { %4646 = vmatpush3.bf16.msra.mxu1 %v3484_v16  ;;  %5180 = vpow2.f32 %v3421_v14  ;;  %v3129_v14 = vld [vmem:[#allocation5 + $0x248] sm:$0xff] }
0x2bef   :  { %v3427_v47 = vmul.f32 1.442695, %v3412_v20  ;;  %v3597_v23 = vpack.c.bf16 %v3129_v14, %v3128_v63  ;;  %v3655_v63 = vld [vmem:[#allocation5 + $0x288] sm:$0xff] }
0x2bf1   :  { %5182 = vpow2.f32 %v3427_v47 }
0x2bf2   :  { %v5171_v0 = vpop.eup %5170  ;;  %5184 = vpow2.f32 %v3423_v8 }
0x2bf3   :  { %v3435_v19 = vsel %vm374_vm6, %v5171_v0, 0.0  ;;  %v5173_v43 = vpop.eup %5172 }
0x2bf4   :  { %3436 = vadd.xlane.f32.xlu1 %v3435_v19  ;;  %v3429_v26 = vsel %vm374_vm6, %v5173_v43, 0.0 }
0x2bf6   :  { %v5175_v32 = vpop.eup %5174 }
0x2bf7   :  { %v3438_v42 = vsel %vm374_vm6, %v5175_v32, 0.0  ;;  %v5177_v31 = vpop.eup %5176 }
0x2bf8   :  { %3430 = vadd.xlane.f32.xlu1 %v3429_v26  ;;  %3439 = vadd.xlane.f32.xlu0 %v3438_v42  ;;  %v3432_v40 = vsel %vm374_vm6, %v5177_v31, 0.0 }
0x2bfa   :  { %v6150_v48 = vpop.eup %5178 }
0x2bfb   :  { %v3447_v13 = vsel %vm374_vm6, %v6150_v48, 0.0  ;;  %v5181_v11 = vpop.eup %5180 }
0x2bfc   :  { %3448 = vadd.xlane.f32.xlu1 %v3447_v13  ;;  %3433 = vadd.xlane.f32.xlu0 %v3432_v40  ;;  %v3441_v12 = vsel %vm374_vm6, %v5181_v11, 0.0 }
0x2bfe   :  { %v5183_v41 = vpop.eup %5182 }
0x2bff   :  { %v3450_v9 = vsel %vm374_vm6, %v5183_v41, 0.0  ;;  %v5185_v15 = vpop.eup %5184 }
0x2c00   :  { %3442 = vadd.xlane.f32.xlu1 %v3441_v12  ;;  %3451 = vadd.xlane.f32.xlu0 %v3450_v9  ;;  %v3444_v18 = vsel %vm374_vm6, %v5185_v15, 0.0 }
0x2c04   :  { %3445 = vadd.xlane.f32.xlu0 %v3444_v18 }
0x2c11   :  { %3479 = vrot.lane.b32.xlu1 %v6115_v49, %s5339_s11 }
0x2c15   :  { %3477 = vrot.lane.b32.xlu1 %v6044_v29, %s5339_s11 }
0x2c1a   :  { %3481 = vrot.lane.b32.xlu0 %v6108_v55, %s5339_s11 }
0x2c7d   :  { %v3437_v21 = vpop.xlane.xlu1 %3436 }
0x2c81   :  { %v3431_v44 = vpop.xlane.xlu1 %3430  ;;  %v3440_v27 = vpop.xlane.xlu0 %3439 }
0x2c82   :  { %5186 = vrcp.f32 %v3431_v44 }
0x2c85   :  { %v3449_v45 = vpop.xlane.xlu1 %3448  ;;  %v3434_v24 = vpop.xlane.xlu0 %3433 }
0x2c86   :  { %5188 = vrcp.f32 %v3434_v24 }
0x2c87   :  { %5190 = vrcp.f32 %v3440_v27 }
0x2c88   :  { %5192 = vrcp.f32 %v3437_v21 }
0x2c89   :  { %v3443_v35 = vpop.xlane.xlu1 %3442  ;;  %v3452_v28 = vpop.xlane.xlu0 %3451 }
0x2c8a   :  { %5194 = vrcp.f32 %v3443_v35 }
0x2c8d   :  { %v3446_v39 = vpop.xlane.xlu0 %3445  ;;  %v3480_v49 = vpop.permute.xlu1 %3479 }
0x2c8e   :  { %5196 = vrcp.f32 %v3446_v39 }
0x2c8f   :  { %5198 = vrcp.f32 %v3452_v28  ;;  %v5187_v34 = vpop.eup %5186 }
0x2c90   :  { %5200 = vrcp.f32 %v3449_v45  ;;  %v3461_v57 = vmul.f32 %v5187_v34, %v5173_v43 }
0x2c91   :  { %v3482_v29 = vpop.permute.xlu0 %3481  ;;  %v3478_v38 = vpop.permute.xlu1 %3477 }
0x2c92   :  { %4647 = vmatprep.subr.bf16.mxu1 %v3482_v29 }
0x2c93   :  { %4648 = vmatpush3.bf16.msra.mxu1 %v3482_v29  ;;  %v5189_v55 = vpop.eup %5188 }
0x2c94   :  { %4649 = vmatprep.subr.bf16.mxu1 %v3480_v49  ;;  %v5191_v46 = vpop.eup %5190  ;;  %v3462_v10 = vmul.f32 %v5189_v55, %v5177_v31 }
0x2c95   :  { %v5193_v52 = vpop.eup %5192  ;;  %v3464_v33 = vmul.f32 %v5191_v46, %v5175_v32 }
0x2c96   :  { %v3469_v54 = vpack.c.bf16 %v3462_v10, %v3461_v57  ;;  %v3463_v56 = vmul.f32 %v5193_v52, %v5171_v0  ;;  %v3649_v10 = vld [vmem:[#allocation7 + $0x198] sm:$0xff] }
0x2c97   :  { %4650 = vmatpush3.bf16.msra.mxu1 %v3480_v49  ;;  %v5195_v50 = vpop.eup %5194 }
0x2c98   :  { %4651 = vmatprep.subr.bf16.mxu1 %v3478_v38  ;;  %4653 = vmatprep.mubr.msk.bf16.mxu1 %vm374_vm6, %v3469_v54  ;;  %v3470_v53 = vpack.c.bf16 %v3464_v33, %v3463_v56  ;;  %v3465_v17 = vmul.f32 %v5195_v50, %v5181_v11  ;;  %v3647_v54 = vld [vmem:[#allocation7 + $0xc8] sm:$0xff] }
0x2c9b   :  { %v5197_v61 = vpop.eup %5196  ;;  %4652 = vmatpush3.bf16.msra.mxu1 %v3478_v38  ;;  %v3646_v38 = vld [vmem:[#allocation7 + $0x60] sm:$0xff] }
0x2c9c   :  { %v3466_v60 = vmul.f32 %v5197_v61, %v5185_v15  ;;  %4661 = vmatprep.subr.bf16.mxu1 %v5334_v1  ;;  %v5199_v51 = vpop.eup %5198 }
0x2c9d   :  { %v5201_v62 = vpop.eup %5200  ;;  %v3468_v5 = vmul.f32 %v5199_v51, %v5183_v41 }
0x2c9e   :  { %4654 = vmatmul.mubr.msk.bf16.vlgmr.msra.gmra.mxu1 %vm374_vm6, %v3470_v53  ;;  %v3471_v37 = vpack.c.bf16 %v3466_v60, %v3465_v17  ;;  %v3467_v3 = vmul.f32 %v5201_v62, %v6150_v48  ;;  %v4065_v62 = vld [vmem:[#allocation5 + $0xd8] ss:$0 sm:$0xff] }
0x2c9f   :  { %4662 = vmatpush3.bf16.msra.mxu1 %v3598_v36  ;;  %v3657_v36 = vld [vmem:[#allocation5 + $0x298] sm:$0xff] }
0x2ca0   :  { %4657 = vmatprep.mubr.msk.bf16.mxu1 %vm374_vm6, %v3471_v37  ;;  %v3472_v4 = vpack.c.bf16 %v3468_v5, %v3467_v3  ;;  %4663 = vmatprep.subr.bf16.mxu1 %v5334_v1 }
0x2ca3   :  { %4664 = vmatpush3.bf16.msra.mxu1 %v3597_v23  ;;  %v3652_v23 = vld [vmem:[#allocation5 + $0x270] sm:$0xff] }
0x2ca4   :  { %4669 = vmatprep.subr.bf16.mxu1 %v5334_v1 }
0x2ca6   :  { %4658 = vmatmul.mubr.msk.bf16.gmra.mxu1 %vm374_vm6, %v3472_v4 }
0x2ca7   :  { %4665 = vmatprep.mubr.msk.bf16.mxu1 %vm5335_vm0, %v5334_v1 }
0x2d5e   :  { %v4655_v59 = vpop.f32.mrf.mxu1 }
0x2d60   :  { %v3535_v6 = vpop.f32.mrf.mxu1 }
0x2d62   :  { %v4656_v16 = vpop.f32.mrf.mxu1 }
0x2d63   :  { %v4943_v22 = vpack.i.bf16 %v4656_v16, %v4655_v59  ;;  %v3654_v59 = vld [vmem:[#allocation5 + $0x280] sm:$0xff]  ;;  %v3653_v16 = vld [vmem:[#allocation5 + $0x278] sm:$0xff] }
0x2d64   :  { %v3538_v20 = vpop.f32.mrf.mxu1  ;;  %v3758_v14 = vpack.c.bf16 %v3655_v63, %v3654_v59  ;;  %v4068_v59 = vld [vmem:[#allocation5 + $0x88] ss:$0 sm:$0xff] }
0x2d65   :  { %4944 = vrot.lane.b32.xlu0 %v4943_v22, %s5329_s21  ;;  %v3757_v22 = vpack.c.bf16 %v3653_v16, %v3652_v23 }
0x2d66   :  { %v4659_v47 = vpop.f32.mrf.mxu1 }
0x2d68   :  { %v3551_v8 = vpop.f32.mrf.mxu1 }
0x2d6a   :  { %v4660_v0 = vpop.f32.mrf.mxu1 }
0x2d6b   :  { %v4953_v19 = vpack.i.bf16 %v4660_v0, %v4659_v47  ;;  %v3651_v47 = vld [vmem:[#allocation5 + $0x268] sm:$0xff] }
0x2d6c   :  { %v3554_v43 = vpop.f32.mrf.mxu1 }
0x2d6d   :  { %v4948_v32 = vpack.i.bf16 %v3554_v43, %v3551_v8  ;;  %4954 = vrot.lane.b32.xlu0 %v4953_v19, %s5341_s13 }
0x2d6f   :  { %4949 = vrot.lane.b32.xlu1 %v4948_v32, %s5342_s14 }
0x2dd7   :  { %v4945_v26 = vpop.permute.xlu0 %4944 }
0x2dd8   :  { %v4947_v42 = vunpack.i.h.bf16 %v4945_v26  ;;  %v4946_v31 = vunpack.i.l.bf16 %v4945_v26 }
0x2dda   :  { %v3590_v41 = vsel %vm284_vm5, %v3535_v6, %v4946_v31  ;;  %v3591_v9 = vsel %vm284_vm5, %v3538_v20, %v4947_v42  ;;  %v3759_v6 = vpack.c.bf16 %v3657_v36, %v3656_v58  ;;  %v3650_v20 = vld [vmem:[#allocation5 + $0x260] sm:$0xff] }
0x2ddb   :  { %v3756_v8 = vpack.c.bf16 %v3651_v47, %v3650_v20 }
0x2ddc   :  { %4678 = vmatpush3.bf16.msra.mxu0 %v3759_v6 }
0x2ddd   :  { %4679 = vmatprep.subr.bf16.mxu0 %v5334_v1 }
0x2ddf   :  { %v4955_v48 = vpop.permute.xlu0 %4954 }
0x2de0   :  { %v4957_v12 = vunpack.i.h.bf16 %v4955_v48  ;;  %v4956_v15 = vunpack.i.l.bf16 %v4955_v48  ;;  %4680 = vmatpush3.bf16.msra.mxu0 %v3758_v14 }
0x2de1   :  { %v4950_v13 = vpop.permute.xlu1 %4949  ;;  %4681 = vmatprep.subr.bf16.mxu0 %v5334_v1 }
0x2de2   :  { %v4952_v40 = vunpack.i.h.bf16 %v4950_v13  ;;  %v4951_v11 = vunpack.i.l.bf16 %v4950_v13 }
0x2de4   :  { %v3593_v18 = vsel %vm582_vm7, %v3591_v9, %v4952_v40  ;;  %v3592_v21 = vsel %vm582_vm7, %v3590_v41, %v4951_v11  ;;  %4682 = vmatpush3.bf16.msra.mxu0 %v3757_v22 }
0x2de5   :  { %v3595_v44 = vsel %vm585_vm8, %v3593_v18, %v4957_v12  ;;  %v3594_v27 = vsel %vm585_vm8, %v3592_v21, %v4956_v15  ;;  %4683 = vmatprep.subr.bf16.mxu0 %v5334_v1 }
0x2de6   :  { %v3596_v45 = vpack.c.bf16 %v3595_v44, %v3594_v27 }
0x2de8   :  { %4666 = vmatmul.mubr.msk.bf16.vlgmr.msra.gmra.mxu1 %vm179_vm4, %v3596_v45  ;;  %4684 = vmatpush3.bf16.msra.mxu0 %v3756_v8  ;;  %v4071_v8 = vld [vmem:[%s6235_s0 + $0x28] sm:$0xff] }
0x2de9   :  { %4673 = vmatprep.mubr.msk.bf16.mxu1 %vm5335_vm0, %v5334_v1  ;;  %vm3918_vm14 = vcmp.ne.s32.totalorder %v4071_v8, 4294967196 }
0x2ea8   :  { %v3636_v24 = vpop.f32.mrf.mxu1 }
0x2ea9   :  { %v6187_v35 = vadd.f32 %v3636_v24, %v6084_v7  ;;  %v3648_v7 = vld [vmem:[#allocation7 + $0x130] sm:$0xff] }
0x2eaa   :  { %v4667_v28 = vpop.f32.mrf.mxu1  ;;  %v3682_v52 = vpack.c.bf16 %v3649_v10, %v3648_v7 }
0x2eab   :  { %v3658_v39 = vmul.f32 %v6187_v35, %v6187_v35 }
0x2eac   :  { %v3639_v49 = vpop.f32.mrf.mxu1  ;;  %4670 = vmatpush3.bf16.msra.mxu1 %v3682_v52 }
0x2ead   :  { %v6192_v29 = vadd.f32 %v3639_v49, %v6089_v25  ;;  %v3660_v34 = vsel %vm179_vm4, %v3658_v39, 0.0  ;;  %4671 = vmatprep.subr.bf16.mxu1 %v5334_v1  ;;  %v3681_v25 = vpack.c.bf16 %v3647_v54, %v3646_v38 }
0x2eae   :  { %3661 = vadd.xlane.f32.xlu1 %v3660_v34  ;;  %v4668_v55 = vpop.f32.mrf.mxu1 }
0x2eaf   :  { %v3659_v46 = vmul.f32 %v6192_v29, %v6192_v29 }
0x2eb0   :  { %4672 = vmatpush3.bf16.msra.mxu1 %v3681_v25 }
0x2eb1   :  { %v3663_v57 = vsel %vm179_vm4, %v3659_v46, 0.0  ;;  %4689 = vmatprep.subr.bf16.mxu1 %v5334_v1 }
0x2eb2   :  { %3664 = vadd.xlane.f32.xlu0 %v3663_v57 }
0x2f37   :  { %v3662_v33 = vpop.xlane.xlu1 %3661 }
0x2f38   :  { %v3666_v50 = vmul.f32 0.03125, %v3662_v33 }
0x2f3a   :  { %v3668_v56 = vadd.f32 1e-06, %v3666_v50 }
0x2f3b   :  { %v3665_v61 = vpop.xlane.xlu0 %3664 }
0x2f3c   :  { %5202 = vrsqrt.f32 %v3668_v56  ;;  %v3667_v53 = vmul.f32 0.03125, %v3665_v61  ;;  %v3831_v61 = vld [vmem:[#allocation7 + $0xd0] sm:$0xff] }
0x2f3e   :  { %v3669_v17 = vadd.f32 1e-06, %v3667_v53  ;;  %v3832_v53 = vld [vmem:[#allocation7 + $0x138] sm:$0xff] }
0x2f40   :  { %5204 = vrsqrt.f32 %v3669_v17  ;;  %v3835_v17 = vpack.c.bf16 %v3832_v53, %v3831_v61 }
0x2f49   :  { %v5203_v60 = vpop.eup %5202 }
0x2f4a   :  { %v3672_v51 = vmul.f32 %v5203_v60, %v6187_v35  ;;  %v3829_v60 = vld [vmem:[#allocation7] sm:$0xff] }
0x2f4c   :  { %v3678_v3 = vmul.f32 %v4065_v62, %v3672_v51  ;;  %v3830_v51 = vld [vmem:[#allocation7 + $0x68] sm:$0xff] }
0x2f4d   :  { %v5205_v37 = vpop.eup %5204 }
0x2f4e   :  { %v3673_v5 = vmul.f32 %v5205_v37, %v6192_v29 }
0x2f50   :  { %v3679_v4 = vmul.f32 %v4065_v62, %v3673_v5 }
0x2f52   :  { %v3680_v2 = vpack.c.bf16 %v3679_v4, %v3678_v3 }
0x2f54   :  { %4674 = vmatmul.mubr.msk.bf16.vlgmr.msra.gmra.mxu1 %vm179_vm4, %v3680_v2 }
0x2f55   :  { %4693 = vmatprep.mubr.msk.bf16.mxu1 %vm5335_vm0, %v5334_v1  ;;  %4690 = vmatpush3.bf16.msra.mxu1 %v3835_v17  ;;  %vm3927_vm0 = vcmask 7168  }
0x2f56   :  { %4691 = vmatprep.subr.bf16.mxu1 %v5334_v1 }
0x3014   :  { %v3720_v0 = vpop.f32.mrf.mxu1 }
0x3015   :  { %3747 = vrot.lane.b32.xlu0 %v3720_v0, %s5340_s12  ;;  %v3727_v26 = vmul.f32 %v3720_v0, %v3720_v0 }
0x3016   :  { %v4675_v19 = vpop.f32.mrf.mxu1 }
0x3017   :  { %v3729_v31 = vmul.f32 %v3727_v26, %v3720_v0 }
0x3018   :  { %v3723_v43 = vpop.f32.mrf.mxu1 }
0x3019   :  { %3749 = vrot.lane.b32.xlu1 %v3723_v43, %s5340_s12  ;;  %v3728_v42 = vmul.f32 %v3723_v43, %v3723_v43  ;;  %v3731_v13 = vmul.f32 0.044715, %v3729_v31 }
0x301a   :  { %v4676_v32 = vpop.f32.mrf.mxu1 }
0x301b   :  { %v3730_v48 = vmul.f32 %v3728_v42, %v3723_v43  ;;  %v3733_v11 = vadd.f32 %v3731_v13, %v3720_v0 }
0x301d   :  { %v3732_v40 = vmul.f32 0.044715, %v3730_v48  ;;  %v3735_v9 = vmul.f32 0.7978846, %v3733_v11 }
0x301f   :  { %v3734_v41 = vadd.f32 %v3732_v40, %v3723_v43  ;;  %5206 = vtanh.f32 %v3735_v9 }
0x3021   :  { %v3736_v12 = vmul.f32 0.7978846, %v3734_v41 }
0x3023   :  { %5208 = vtanh.f32 %v3736_v12  ;;  %v4073_v12 = vsel %vm3918_vm14, 1.0, %v5334_v1 }
0x302c   :  { %v5207_v15 = vpop.eup %5206 }
0x302d   :  { %v3739_v21 = vadd.f32 1.0, %v5207_v15 }
0x302f   :  { %v3741_v27 = vmul.f32 0.5, %v3739_v21 }
0x3030   :  { %v5209_v18 = vpop.eup %5208 }
0x3031   :  { %v3740_v44 = vadd.f32 1.0, %v5209_v18  ;;  %v3743_v28 = vmul.f32 %v3741_v27, %v3720_v0  ;;  %v4070_v0 = vld [vmem:[%s6235_s0 + $0x20] sm:$0xff]  ;;  %v3941_v18 = vsel %vm3927_vm0, %v4073_v12, 0.0 }
0x3032   :  { %vm3917_vm15 = vcmp.ne.s32.totalorder %v4070_v0, 4294967196 }
0x3033   :  { %v3742_v45 = vmul.f32 0.5, %v3740_v44  ;;  %v4072_v15 = vsel %vm3917_vm15, 1.0, %v5334_v1 }
0x3034   :  { %v3940_v21 = vsel %vm3927_vm0, %v4072_v15, 0.0 }
0x3035   :  { %v3744_v39 = vmul.f32 %v3742_v45, %v3723_v43  ;;  %v3942_v44 = vadd.f32 %v3941_v18, %v3940_v21 }
0x3087   :  { %v3748_v24 = vpop.permute.xlu0 %3747 }
0x3088   :  { %v3753_v34 = vmul.f32 %v3748_v24, %v3743_v28 }
0x308b   :  { %v3750_v49 = vpop.permute.xlu1 %3749 }
0x308c   :  { %v3754_v55 = vmul.f32 %v3750_v49, %v3744_v39 }
0x308e   :  { %v3755_v46 = vpack.c.bf16 %v3754_v55, %v3753_v34 }
0x3090   :  { %4686 = vmatmul.mubr.msk.bf16.vlgmr.msra.gmra.mxu0 %vm374_vm6, %v3755_v46 }
0x3150   :  { %v3797_v57 = vpop.f32.mrf.mxu0 }
0x3151   :  { %v3804_v7 = vadd.f32 %v3797_v57, %v6187_v35  ;;  %v3834_v35 = vpack.c.bf16 %v3830_v51, %v3829_v60 }
0x3152   :  { %v4687_v10 = vpop.f32.mrf.mxu0 }
0x3153   :  { %v3807_v52 = vmul.f32 %v3804_v7, %v3804_v7  ;;  %4692 = vmatpush3.bf16.msra.mxu1 %v3834_v35 }
0x3154   :  { %v3800_v38 = vpop.f32.mrf.mxu0 }
0x3155   :  { %v3805_v54 = vadd.f32 %v3800_v38, %v6192_v29  ;;  %v3809_v25 = vsel %vm179_vm4, %v3807_v52, 0.0 }
0x3156   :  { %3810 = vadd.xlane.f32.xlu1 %v3809_v25  ;;  %v4688_v33 = vpop.f32.mrf.mxu0 }
0x3157   :  { %v3808_v50 = vmul.f32 %v3805_v54, %v3805_v54 }
0x3159   :  { %v3812_v56 = vsel %vm179_vm4, %v3808_v50, 0.0 }
0x315a   :  { %3813 = vadd.xlane.f32.xlu0 %v3812_v56 }
0x31df   :  { %v3811_v37 = vpop.xlane.xlu1 %3810 }
0x31e0   :  { %v3815_v29 = vmul.f32 0.03125, %v3811_v37 }
0x31e2   :  { %v3817_v62 = vadd.f32 1e-06, %v3815_v29 }
0x31e3   :  { %v3814_v5 = vpop.xlane.xlu0 %3813 }
0x31e4   :  { %5210 = vrsqrt.f32 %v3817_v62  ;;  %v3816_v3 = vmul.f32 0.03125, %v3814_v5 }
0x31e6   :  { %v3818_v4 = vadd.f32 1e-06, %v3816_v3 }
0x31e8   :  { %5212 = vrsqrt.f32 %v3818_v4 }
0x31f1   :  { %v5211_v2 = vpop.eup %5210 }
0x31f2   :  { %v3821_v58 = vmul.f32 %v5211_v2, %v3804_v7 }
0x31f4   :  { %v3827_v63 = vmul.f32 %v4068_v59, %v3821_v58 }
0x31f5   :  { %v5213_v36 = vpop.eup %5212 }
0x31f6   :  { %v3822_v6 = vmul.f32 %v5213_v36, %v3805_v54 }
0x31f8   :  { %v3828_v14 = vmul.f32 %v4068_v59, %v3822_v6 }
0x31fa   :  { %v3833_v23 = vpack.c.bf16 %v3828_v14, %v3827_v63 }
0x31fc   :  { %4694 = vmatmul.mubr.msk.bf16.vlgmr.msra.gmra.mxu1 %vm179_vm4, %v3833_v23 }
0x32bc   :  { %v3873_v16 = vpop.f32.mrf.mxu1 }
0x32bd   :  { %3883 = vmax.xlane.f32.xlu0 %v3873_v16 }
0x32be   :  { %v4695_v22 = vpop.f32.mrf.mxu1 }
0x32c0   :  { %v3876_v20 = vpop.f32.mrf.mxu1 }
0x32c1   :  { %3885 = vmax.xlane.f32.xlu1 %v3876_v20 }
0x32c2   :  { %v4696_v47 = vpop.f32.mrf.mxu1 }
0x32d2   :  { %3907 = vperm.xlu1 %4807, %v4071_v8  }
0x32d3   :  { %3904 = vperm.xlu0 %4746, %v4070_v0  }
0x3346   :  { %v3884_v19 = vpop.xlane.xlu0 %3883 }
0x3347   :  { %v3887_v43 = vsub.f32 %v3873_v16, %v3884_v19 }
0x3349   :  { %v3889_v32 = vmul.f32 1.442695, %v3887_v43 }
0x334a   :  { %v3886_v26 = vpop.xlane.xlu1 %3885 }
0x334b   :  { %5214 = vpow2.f32 %v3889_v32  ;;  %v3888_v42 = vsub.f32 %v3876_v20, %v3886_v26 }
0x334d   :  { %v3891_v31 = vmul.f32 1.442695, %v3888_v42 }
0x334e   :  { %v3908_v48 = vpop.permute.xlu1 %3907  ;;  %v3905_v40 = vpop.permute.xlu0 %3904 }
0x334f   :  { %5216 = vpow2.f32 %v3891_v31  ;;  %vm3910_vm12 = vcmp.eq.s32.totalorder %v5425_v30, %v3908_v48  ;;  %vm3909_vm13 = vcmp.eq.s32.totalorder %v5425_v30, %v3905_v40 }
0x3350   :  { %v3912_v41 = vsel %vm3910_vm12, %v3876_v20, 0.0  ;;  %v3911_v9 = vsel %vm3909_vm13, %v3873_v16, 0.0 }
0x3358   :  { %v5215_v13 = vpop.eup %5214 }
0x3359   :  { %3893 = vadd.xlane.f32.xlu1 %v5215_v13 }
0x335c   :  { %v5217_v11 = vpop.eup %5216 }
0x335d   :  { %3895 = vadd.xlane.f32.xlu0 %v5217_v11  ;;  %3915 = vadd.xlane.f32.xlu1 %v3912_v41 }
0x3361   :  { %3913 = vadd.xlane.f32.xlu0 %v3911_v9  ;;  %3943 = vadd.xlane.f32.xlu1 %v3942_v44 }
0x33e2   :  { %v3894_v27 = vpop.xlane.xlu1 %3893 }
0x33e3   :  { %5218 = vlog2.f32 %v3894_v27 }
0x33e6   :  { %v3896_v45 = vpop.xlane.xlu0 %3895  ;;  %v3916_v7 = vpop.xlane.xlu1 %3915 }
0x33e7   :  { %5220 = vlog2.f32 %v3896_v45 }
0x33ea   :  { %v3914_v34 = vpop.xlane.xlu0 %3913  ;;  %v3944_v33 = vpop.xlane.xlu1 %3943 }
0x33eb   :  { %v3945_v50 = vrot.slane %v3944_v33, 4 }
0x33ed   :  { %v3946_v56 = vadd.f32 %v3945_v50, %v3944_v33 }
0x33ef   :  { %v3947_v61 = vrot.slane %v3946_v56, 2 }
0x33f0   :  { %v5219_v24 = vpop.eup %5218 }
0x33f1   :  { %v3898_v28 = vmul.f32 0.6931472, %v5219_v24  ;;  %v3948_v51 = vadd.f32 %v3947_v61, %v3946_v56 }
0x33f3   :  { %v3901_v39 = vadd.f32 %v3898_v28, %v3884_v19  ;;  %v3949_v29 = vrot.slane %v3948_v51, 1 }
0x33f4   :  { %v5221_v49 = vpop.eup %5220 }
0x33f5   :  { %v3900_v55 = vmul.f32 0.6931472, %v5221_v49  ;;  %v3923_v46 = vsub.f32 %v3901_v39, %v3914_v34  ;;  %v3950_v3 = vadd.f32 %v3949_v29, %v3948_v51 }
0x33f7   :  { %v3902_v57 = vadd.f32 %v3900_v55, %v3886_v26  ;;  %v3925_v10 = vmul.f32 %v4072_v15, %v3923_v46 }
0x33f9   :  { %v3924_v1 = vsub.f32 %v3902_v57, %v3916_v7  ;;  %v3928_v54 = vsel %vm3927_vm0, %v3925_v10, 0.0 }
0x33fb   :  { %v3926_v52 = vmul.f32 %v4073_v12, %v3924_v1 }
0x33fd   :  { %v3929_v38 = vsel %vm3927_vm0, %v3926_v52, 0.0 }
0x33fe   :  { %v3930_v25 = vadd.f32 %v3929_v38, %v3928_v54 }
0x3400   :  { %3931 = vadd.xlane.f32.xlu0 %v3930_v25 }
0x3489   :  { %v3932_v53 = vpop.xlane.xlu0 %3931 }
0x348a   :  { %v3933_v17 = vrot.slane %v3932_v53, 4 }
0x348c   :  { %v3934_v60 = vadd.f32 %v3933_v17, %v3932_v53 }
0x348e   :  { %v3935_v35 = vrot.slane %v3934_v60, 2 }
0x3490   :  { %v3936_v37 = vadd.f32 %v3935_v35, %v3934_v60 }
0x3492   :  { %v3937_v62 = vrot.slane %v3936_v37, 1 }
0x3494   :  { %v3938_v5 = vadd.f32 %v3937_v62, %v3936_v37 }
0x3496   :  { %4721 = vpush %v3938_v5 }
0x3497   :  { %4723 = vpush %v3950_v3 }
0x34c7   :  { %s4722_s0 = spop %4721 }
0x34c8   :  { %s4724_s23 = spop %4723 }
0x34c9   :  { %s3952_s25 = smax.f32 %s5343_s24, %s4724_s23 }
0x34ca   :  { %v3953_v4 = vstv %s3952_s25 }
0x34cb   :  { %5222 = vrcp.f32 %v3953_v4 }
0x34d8   :  { %v5223_v2 = vpop.eup %5222 }
0x34d9   :  { %4725 = vpush %v5223_v2 }
0x350a   :  { %s4726_s26 = spop %4725 }
0x350b   :  { %s3956_s29 = smul.f32 %s4726_s26, %s4722_s0 }
0x350d   :  { %v3958_v58 = vstv %s3956_s29 }
0x350e   :  { %v3959_v36 = vsel %vm3957_vm1, %v3958_v58, 0.0 }
0x350f   :  { %3960 = vst [vmem:[#allocation8] sm:$0x1] %v3959_v36 }
0x3510   :  { %5311 = shalt.err (!%p5308_p5)
}
0x3511   :  { %3970 = dma.vmem_to_hbm [thread:$0]  %s3968_s28, 16, %s6239_s4, [#allocation4]  }
0x3512   :  { %5324 = dma.done.wait [#allocation4], 16  }
0x3513   :  { %5325 = vsyncadd [#allocation4], 4294967280 }
0x3514   :  { %3974 = vsyncpa [#allocation3], 1 }
0x3515   :  { %3975 = vsyncpa [#allocation6], 1 }
0x3516   :  { %3976 = vsyncpa [#allocation4], 1 }

</bundles_post_ra>
